<compile_context>
chip_gen: v5e
topology: v5e:2x2
jax: 0.10.0
libtpu: 0.0.40
codegen_flags: <defaults>
</compile_context>

<pallas_src>
import functools

import jax
import jax.numpy as jnp
from jax import lax
from jax.experimental import pallas as pl
from jax.experimental.pallas import tpu as pltpu


# -----------------------------------------------------------------------------
# Fused MixedOp kernel: B whole images stacked along lanes per grid step.
# -----------------------------------------------------------------------------
def _mixed_op_kernel(alpha_ref, x_ref, w1_ref, w2_ref, w3_ref, mask_ref, o_ref,
                     *, img_w, ksize, use_mxu_expand):
    """Layouts (all 2-D, batch*H*W kept in lanes end-to-end):
         x_ref    (C_in,    B*H*W)  f32
         w1_ref   (2*C_exp, C_in)   f32 (VPU path) / bf16 (MXU path)  fused expand
         w2_ref   (2*C_exp, k*k)    f32  fused depthwise taps (k3 zero-embedded in 5x5)
         w3_ref   (C_out,   2*C_exp) bf16 alpha-folded fused project
         mask_ref (k*k,     B*H*W)  f32  per-tap spatial validity masks
         o_ref    (C_out,   B*H*W)  f32  lane-dense output
    """
    pad = ksize // 2
    lanes = x_ref.shape[-1]
    x_f = x_ref[...]                                            # (C_in, lanes) f32

    # ---- fused 1x1 expand (k3 & k5 branches) + ReLU, H*W stays in lanes -----
    if use_mxu_expand:
        e = lax.dot_general(w1_ref[...], x_f.astype(w1_ref.dtype),
                            dimension_numbers=(((1,), (0,)), ((), ())),
                            preferred_element_type=jnp.float32)
    else:
        # Tiny C_in: a handful of VPU broadcast-FMAs beats MXU fill/drain.
        c_in = x_ref.shape[0]
        e = w1_ref[:, 0:1] * x_ref[0:1, :]
        for c in range(1, c_in):
            e = e + w1_ref[:, c:c + 1] * x_ref[c:c + 1, :]
    e = jnp.maximum(e, 0.0)                                     # (2*C_exp, lanes) f32

    # ---- shared depthwise 5x5 + ReLU: 25 masked lane-rolls (XLU) + VPU FMAs -
    acc = jnp.zeros_like(e)
    for kh in range(ksize):
        for kw in range(ksize):
            t = kh * ksize + kw
            s = (kh - pad) * img_w + (kw - pad)                 # flat lane offset of tap
            tap = e if s == 0 else pltpu.roll(e, (-s) % lanes, axis=1)
            # zero out-of-image (and cross-image wrap) contributions, then scale
            # per expanded channel; w2 / mask blocks stay VMEM-resident.
            acc = acc + (tap * mask_ref[t:t + 1, :]) * w2_ref[:, t:t + 1]
    acc = jnp.maximum(acc, 0.0)

    # ---- fused 1x1 project (alphas pre-folded, bf16 MXU) + alpha_skip * x ---
    out = lax.dot_general(w3_ref[...], acc.astype(w3_ref.dtype),
                          dimension_numbers=(((1,), (0,)), ((), ())),
                          preferred_element_type=jnp.float32)
    out = out + alpha_ref[0] * x_f                              # skip (identity) branch
    o_ref[...] = out.astype(o_ref.dtype)                        # lane-dense store


def _pick_images_per_step(n, hw, max_lanes=512):
    """How many whole images to stack along the lane axis per grid step.

    Amortizes the ~0.35us fixed grid-step cost while
      * keeping grid length >= 2 so both v7x TensorCores get work,
      * keeping block lane widths a multiple of 128 (unmasked loads/stores),
      * bounding the VMEM / vreg footprint of the 6x-expanded activations.
    """
    best = None
    for b in range(1, n + 1):
        if n % b or (b * hw) % 128 or b * hw > max_lanes:
            continue
        if n // b >= 2 or n == 1:
            best = b
    if best is None:
        best = n          # single step over the whole array (block == full, always legal)
    return best


# -----------------------------------------------------------------------------
# MixedOp.forward in 'soft' mode: returns (result, kl_loss)
# -----------------------------------------------------------------------------
def mixed_op_forward(x_nchw, alpha, params_k3, params_k5):
    """x_nchw: (N, C_in, H, W) f32; alpha: (3,) weights for [k3_e6, k5_e6, skip]."""
    n, c_in, h, w = x_nchw.shape
    c_exp = params_k3["conv1"].shape[0]
    c_out = params_k3["conv3"].shape[0]
    assert c_in == c_out, "skip (identity) branch requires C_in == C_out at stride=1"
    ksize = 5                         # unified depthwise kernel (k3 zero-embedded)
    pad = ksize // 2
    c_exp2 = 2 * c_exp
    hw = h * w
    f32 = jnp.float32
    a = alpha.astype(f32)

    # --- tiny host-side weight fusion / alpha folding (O(k^2 * C^2), free) ----
    w1_cat = jnp.concatenate([params_k3["conv1"][:, :, 0, 0],
                              params_k5["conv1"][:, :, 0, 0]], axis=0)          # (2*C_exp, C_in)
    w2_k3 = jnp.pad(params_k3["conv2"][:, 0], ((0, 0), (1, 1), (1, 1)))         # (C_exp, 5, 5)
    w2_k5 = params_k5["conv2"][:, 0]                                            # (C_exp, 5, 5)
    w2_cat = jnp.concatenate([w2_k3, w2_k5], axis=0).reshape(c_exp2, ksize * ksize)
    w3_cat = jnp.concatenate([a[0] * params_k3["conv3"][:, :, 0, 0],
                              a[1] * params_k5["conv3"][:, :, 0, 0]], axis=1)   # (C_out, 2*C_exp)
    alpha_skip = a[2:3]                                                         # (1,) SMEM scalar

    # --- layout: channels in sublanes, batch*H*W in lanes ---------------------
    imgs = _pick_images_per_step(n, hw)
    lanes = imgs * hw
    grid = n // imgs
    x2d = jnp.transpose(x_nchw, (1, 0, 2, 3)).reshape(c_in, n * hw).astype(f32)

    # Per-tap spatial validity masks (static, position-in-image only).
    lane = jnp.arange(lanes, dtype=jnp.int32)
    col = lane % w
    row = (lane // w) % h
    masks = []
    for dh in range(-pad, pad + 1):
        vok = (row + dh >= 0) & (row + dh < h)
        for dw in range(-pad, pad + 1):
            hok = (col + dw >= 0) & (col + dw < w)
            masks.append((vok & hok).astype(f32))
    tap_mask = jnp.stack(masks, axis=0)                                         # (25, lanes)

    use_mxu_expand = c_in > 8          # tiny C_in: VPU broadcast-FMAs beat the MXU
    w1_used = w1_cat.astype(jnp.bfloat16 if use_mxu_expand else f32)

    kernel = functools.partial(_mixed_op_kernel, img_w=w, ksize=ksize,
                               use_mxu_expand=use_mxu_expand)
    out2d = pl.pallas_call(
        kernel,
        grid=(grid,),
        in_specs=[
            pl.BlockSpec(memory_space=pltpu.MemorySpace.SMEM),            # alpha_skip (1,)
            pl.BlockSpec((c_in, lanes), lambda i: (0, i)),                # x, lane-dense
            pl.BlockSpec((c_exp2, c_in), lambda i: (0, 0)),               # fused expand weights
            pl.BlockSpec((c_exp2, ksize * ksize), lambda i: (0, 0)),      # fused depthwise weights
            pl.BlockSpec((c_out, c_exp2), lambda i: (0, 0)),              # alpha-folded project
            pl.BlockSpec((ksize * ksize, lanes), lambda i: (0, 0)),       # per-tap masks
        ],
        out_specs=pl.BlockSpec((c_out, lanes), lambda i: (0, i)),         # lane-dense output
        out_shape=jax.ShapeDtypeStruct((c_out, n * hw), f32),
        compiler_params=pltpu.CompilerParams(dimension_semantics=("parallel",)),
    )(alpha_skip, x2d, w1_used, w2_cat.astype(f32),
      w3_cat.astype(jnp.bfloat16), tap_mask)

    result = jnp.transpose(out2d.reshape(c_out, n, h, w), (1, 0, 2, 3))   # back to NCHW
    kl_loss = jnp.float32(0.0)               # 'soft' mode: kl_loss stays 0
    return result, kl_loss


# -----------------------------------------------------------------------------
# Pure-JAX reference (f32) of the same 'soft' MixedOp — used for a sanity check.
# -----------------------------------------------------------------------------
def _reference_forward(x, alpha, p3, p5):
    def branch(p, k):
        e = jnp.einsum('oi,nihw->nohw', p["conv1"][:, :, 0, 0], x)
        e = jnp.maximum(e, 0.0)
        d = lax.conv_general_dilated(
            e, p["conv2"], window_strides=(1, 1),
            padding=[(k // 2, k // 2)] * 2,
            dimension_numbers=("NCHW", "OIHW", "NCHW"),
            feature_group_count=e.shape[1])
        d = jnp.maximum(d, 0.0)
        return jnp.einsum('oi,nihw->nohw', p["conv3"][:, :, 0, 0], d)
    r = alpha[0] * branch(p3, 3) + alpha[1] * branch(p5, 5) + alpha[2] * x
    return r, jnp.float32(0.0)


# -----------------------------------------------------------------------------
# Deterministic parameter init (shared_parameters: kaiming_normal_, fan_out)
# -----------------------------------------------------------------------------
def make_shared_parameters(key, c_in, c_out, kernel, expansion=6):
    c_exp = c_in * expansion
    k1, k2, k3 = jax.random.split(key, 3)

    def kaiming_fan_out(k, shape):
        fan_out = shape[0] * shape[2] * shape[3]
        std = (2.0 / fan_out) ** 0.5
        return std * jax.random.normal(k, shape, dtype=jnp.float32)

    return {
        "conv1": kaiming_fan_out(k1, (c_exp, c_in, 1, 1)),
        "conv2": kaiming_fan_out(k2, (c_exp, 1, kernel, kernel)),
        "conv3": kaiming_fan_out(k3, (c_out, c_exp, 1, 1)),
    }


# -----------------------------------------------------------------------------
if __name__ == "__main__":
    N, C_IN, C_OUT, H, W = 2, 4, 4, 16, 16

    root = jax.random.PRNGKey(0)
    k_x, k_alpha, k_p3, k_p5 = jax.random.split(root, 4)

    x = jax.random.normal(k_x, (N, C_IN, H, W), dtype=jnp.float32)          # NCHW input
    alpha_logits = jax.random.normal(k_alpha, (3,), dtype=jnp.float32)
    alpha = jax.nn.softmax(alpha_logits)   # architecture weights for [k3_e6, k5_e6, skip]

    params_k3 = make_shared_parameters(k_p3, C_IN, C_OUT, kernel=3)
    params_k5 = make_shared_parameters(k_p5, C_IN, C_OUT, kernel=5)

    mixed_op = jax.jit(mixed_op_forward)
    result, kl_loss = mixed_op(x, alpha, params_k3, params_k5)
    jax.block_until_ready(result)
    jax.block_until_ready(kl_loss)
    assert result.shape == (N, C_OUT, H, W)

    # Correctness check vs. pure-JAX f32 reference (kernel projects in bf16 -> loose tol).
    ref, _ = _reference_forward(x, alpha, params_k3, params_k5)
    max_err = float(jnp.max(jnp.abs(result - ref)))
    assert max_err < 5e-2, f"max |kernel - reference| = {max_err}"
    print("KERNEL_OK")
</pallas_src>

<mosaic_0001>
module attributes {stable_mosaic.version = 11 : i64} {
  func.func @_mixed_op_kernel(%arg0: i32, %arg1: memref<1xf32, #tpu.memory_space<smem>>, %arg2: memref<4x256xf32, #tpu.memory_space<vmem>>, %arg3: memref<48x4xf32, #tpu.memory_space<vmem>>, %arg4: memref<48x25xf32, #tpu.memory_space<vmem>>, %arg5: memref<4x48xbf16, #tpu.memory_space<vmem>>, %arg6: memref<25x256xf32, #tpu.memory_space<vmem>>, %arg7: memref<4x256xf32, #tpu.memory_space<vmem>>) attributes {dimension_semantics = [#tpu.dimension_semantics<parallel>], iteration_bounds = array<i64: 2>, scalar_prefetch = 0 : i64, scratch_operands = 0 : i64, tpu.core_type = #tpu.core_type<tc>, window_params = [{transform_indices = @transform_0, window_bounds = array<i64: 1>}, {transform_indices = @transform_1, window_bounds = array<i64: 4, 256>}, {pipeline_mode = #tpu.pipeline_mode<synchronous>, transform_indices = @transform_2, window_bounds = array<i64: 48, 4>}, {pipeline_mode = #tpu.pipeline_mode<synchronous>, transform_indices = @transform_3, window_bounds = array<i64: 48, 25>}, {pipeline_mode = #tpu.pipeline_mode<synchronous>, transform_indices = @transform_4, window_bounds = array<i64: 4, 48>}, {pipeline_mode = #tpu.pipeline_mode<synchronous>, transform_indices = @transform_5, window_bounds = array<i64: 25, 256>}, {transform_indices = @transform_6, window_bounds = array<i64: 4, 256>}]} {
    %c0 = arith.constant 0 : index
    %c0_0 = arith.constant 0 : index
    %0 = vector.load %arg2[%c0, %c0_0] : memref<4x256xf32, #tpu.memory_space<vmem>>, vector<4x256xf32>
    %c0_1 = arith.constant 0 : index
    %c0_2 = arith.constant 0 : index
    %1 = vector.load %arg3[%c0_1, %c0_2] : memref<48x4xf32, #tpu.memory_space<vmem>>, vector<48x1xf32>
    %c0_3 = arith.constant 0 : index
    %c0_4 = arith.constant 0 : index
    %2 = vector.load %arg2[%c0_3, %c0_4] : memref<4x256xf32, #tpu.memory_space<vmem>>, vector<1x256xf32>
    %3 = vector.broadcast %1 : vector<48x1xf32> to vector<48x256xf32>
    %4 = vector.broadcast %2 : vector<1x256xf32> to vector<48x256xf32>
    %5 = arith.mulf %3, %4 : vector<48x256xf32>
    %c0_5 = arith.constant 0 : index
    %c1 = arith.constant 1 : index
    %6 = vector.load %arg3[%c0_5, %c1] : memref<48x4xf32, #tpu.memory_space<vmem>>, vector<48x1xf32>
    %c1_6 = arith.constant 1 : index
    %c0_7 = arith.constant 0 : index
    %7 = vector.load %arg2[%c1_6, %c0_7] : memref<4x256xf32, #tpu.memory_space<vmem>>, vector<1x256xf32>
    %8 = vector.broadcast %6 : vector<48x1xf32> to vector<48x256xf32>
    %9 = vector.broadcast %7 : vector<1x256xf32> to vector<48x256xf32>
    %10 = arith.mulf %8, %9 : vector<48x256xf32>
    %11 = arith.addf %5, %10 : vector<48x256xf32>
    %c0_8 = arith.constant 0 : index
    %c2 = arith.constant 2 : index
    %12 = vector.load %arg3[%c0_8, %c2] : memref<48x4xf32, #tpu.memory_space<vmem>>, vector<48x1xf32>
    %c2_9 = arith.constant 2 : index
    %c0_10 = arith.constant 0 : index
    %13 = vector.load %arg2[%c2_9, %c0_10] : memref<4x256xf32, #tpu.memory_space<vmem>>, vector<1x256xf32>
    %14 = vector.broadcast %12 : vector<48x1xf32> to vector<48x256xf32>
    %15 = vector.broadcast %13 : vector<1x256xf32> to vector<48x256xf32>
    %16 = arith.mulf %14, %15 : vector<48x256xf32>
    %17 = arith.addf %11, %16 : vector<48x256xf32>
    %c0_11 = arith.constant 0 : index
    %c3 = arith.constant 3 : index
    %18 = vector.load %arg3[%c0_11, %c3] : memref<48x4xf32, #tpu.memory_space<vmem>>, vector<48x1xf32>
    %c3_12 = arith.constant 3 : index
    %c0_13 = arith.constant 0 : index
    %19 = vector.load %arg2[%c3_12, %c0_13] : memref<4x256xf32, #tpu.memory_space<vmem>>, vector<1x256xf32>
    %20 = vector.broadcast %18 : vector<48x1xf32> to vector<48x256xf32>
    %21 = vector.broadcast %19 : vector<1x256xf32> to vector<48x256xf32>
    %22 = arith.mulf %20, %21 : vector<48x256xf32>
    %23 = arith.addf %17, %22 : vector<48x256xf32>
    %cst = arith.constant 0.000000e+00 : f32
    %24 = vector.broadcast %cst : f32 to vector<48x256xf32>
    %25 = arith.maximumf %23, %24 : vector<48x256xf32>
    %cst_14 = arith.constant 0.000000e+00 : f32
    %26 = vector.broadcast %cst_14 : f32 to vector<48x256xf32>
    %c34_i32 = arith.constant 34 : i32
    %27 = tpu.dynamic_rotate %25 by %c34_i32 dim 1 : vector<48x256xf32>, i32 -> vector<48x256xf32>
    %c0_15 = arith.constant 0 : index
    %c0_16 = arith.constant 0 : index
    %28 = vector.load %arg6[%c0_15, %c0_16] : memref<25x256xf32, #tpu.memory_space<vmem>>, vector<1x256xf32>
    %29 = vector.broadcast %28 : vector<1x256xf32> to vector<48x256xf32>
    %30 = arith.mulf %27, %29 : vector<48x256xf32>
    %c0_17 = arith.constant 0 : index
    %c0_18 = arith.constant 0 : index
    %31 = vector.load %arg4[%c0_17, %c0_18] : memref<48x25xf32, #tpu.memory_space<vmem>>, vector<48x1xf32>
    %32 = vector.broadcast %31 : vector<48x1xf32> to vector<48x256xf32>
    %33 = arith.mulf %30, %32 : vector<48x256xf32>
    %34 = arith.addf %26, %33 : vector<48x256xf32>
    %c33_i32 = arith.constant 33 : i32
    %35 = tpu.dynamic_rotate %25 by %c33_i32 dim 1 : vector<48x256xf32>, i32 -> vector<48x256xf32>
    %c1_19 = arith.constant 1 : index
    %c0_20 = arith.constant 0 : index
    %36 = vector.load %arg6[%c1_19, %c0_20] : memref<25x256xf32, #tpu.memory_space<vmem>>, vector<1x256xf32>
    %37 = vector.broadcast %36 : vector<1x256xf32> to vector<48x256xf32>
    %38 = arith.mulf %35, %37 : vector<48x256xf32>
    %c0_21 = arith.constant 0 : index
    %c1_22 = arith.constant 1 : index
    %39 = vector.load %arg4[%c0_21, %c1_22] : memref<48x25xf32, #tpu.memory_space<vmem>>, vector<48x1xf32>
    %40 = vector.broadcast %39 : vector<48x1xf32> to vector<48x256xf32>
    %41 = arith.mulf %38, %40 : vector<48x256xf32>
    %42 = arith.addf %34, %41 : vector<48x256xf32>
    %c32_i32 = arith.constant 32 : i32
    %43 = tpu.dynamic_rotate %25 by %c32_i32 dim 1 : vector<48x256xf32>, i32 -> vector<48x256xf32>
    %c2_23 = arith.constant 2 : index
    %c0_24 = arith.constant 0 : index
    %44 = vector.load %arg6[%c2_23, %c0_24] : memref<25x256xf32, #tpu.memory_space<vmem>>, vector<1x256xf32>
    %45 = vector.broadcast %44 : vector<1x256xf32> to vector<48x256xf32>
    %46 = arith.mulf %43, %45 : vector<48x256xf32>
    %c0_25 = arith.constant 0 : index
    %c2_26 = arith.constant 2 : index
    %47 = vector.load %arg4[%c0_25, %c2_26] : memref<48x25xf32, #tpu.memory_space<vmem>>, vector<48x1xf32>
    %48 = vector.broadcast %47 : vector<48x1xf32> to vector<48x256xf32>
    %49 = arith.mulf %46, %48 : vector<48x256xf32>
    %50 = arith.addf %42, %49 : vector<48x256xf32>
    %c31_i32 = arith.constant 31 : i32
    %51 = tpu.dynamic_rotate %25 by %c31_i32 dim 1 : vector<48x256xf32>, i32 -> vector<48x256xf32>
    %c3_27 = arith.constant 3 : index
    %c0_28 = arith.constant 0 : index
    %52 = vector.load %arg6[%c3_27, %c0_28] : memref<25x256xf32, #tpu.memory_space<vmem>>, vector<1x256xf32>
    %53 = vector.broadcast %52 : vector<1x256xf32> to vector<48x256xf32>
    %54 = arith.mulf %51, %53 : vector<48x256xf32>
    %c0_29 = arith.constant 0 : index
    %c3_30 = arith.constant 3 : index
    %55 = vector.load %arg4[%c0_29, %c3_30] : memref<48x25xf32, #tpu.memory_space<vmem>>, vector<48x1xf32>
    %56 = vector.broadcast %55 : vector<48x1xf32> to vector<48x256xf32>
    %57 = arith.mulf %54, %56 : vector<48x256xf32>
    %58 = arith.addf %50, %57 : vector<48x256xf32>
    %c30_i32 = arith.constant 30 : i32
    %59 = tpu.dynamic_rotate %25 by %c30_i32 dim 1 : vector<48x256xf32>, i32 -> vector<48x256xf32>
    %c4 = arith.constant 4 : index
    %c0_31 = arith.constant 0 : index
    %60 = vector.load %arg6[%c4, %c0_31] : memref<25x256xf32, #tpu.memory_space<vmem>>, vector<1x256xf32>
    %61 = vector.broadcast %60 : vector<1x256xf32> to vector<48x256xf32>
    %62 = arith.mulf %59, %61 : vector<48x256xf32>
    %c0_32 = arith.constant 0 : index
    %c4_33 = arith.constant 4 : index
    %63 = vector.load %arg4[%c0_32, %c4_33] : memref<48x25xf32, #tpu.memory_space<vmem>>, vector<48x1xf32>
    %64 = vector.broadcast %63 : vector<48x1xf32> to vector<48x256xf32>
    %65 = arith.mulf %62, %64 : vector<48x256xf32>
    %66 = arith.addf %58, %65 : vector<48x256xf32>
    %c18_i32 = arith.constant 18 : i32
    %67 = tpu.dynamic_rotate %25 by %c18_i32 dim 1 : vector<48x256xf32>, i32 -> vector<48x256xf32>
    %c5 = arith.constant 5 : index
    %c0_34 = arith.constant 0 : index
    %68 = vector.load %arg6[%c5, %c0_34] : memref<25x256xf32, #tpu.memory_space<vmem>>, vector<1x256xf32>
    %69 = vector.broadcast %68 : vector<1x256xf32> to vector<48x256xf32>
    %70 = arith.mulf %67, %69 : vector<48x256xf32>
    %c0_35 = arith.constant 0 : index
    %c5_36 = arith.constant 5 : index
    %71 = vector.load %arg4[%c0_35, %c5_36] : memref<48x25xf32, #tpu.memory_space<vmem>>, vector<48x1xf32>
    %72 = vector.broadcast %71 : vector<48x1xf32> to vector<48x256xf32>
    %73 = arith.mulf %70, %72 : vector<48x256xf32>
    %74 = arith.addf %66, %73 : vector<48x256xf32>
    %c17_i32 = arith.constant 17 : i32
    %75 = tpu.dynamic_rotate %25 by %c17_i32 dim 1 : vector<48x256xf32>, i32 -> vector<48x256xf32>
    %c6 = arith.constant 6 : index
    %c0_37 = arith.constant 0 : index
    %76 = vector.load %arg6[%c6, %c0_37] : memref<25x256xf32, #tpu.memory_space<vmem>>, vector<1x256xf32>
    %77 = vector.broadcast %76 : vector<1x256xf32> to vector<48x256xf32>
    %78 = arith.mulf %75, %77 : vector<48x256xf32>
    %c0_38 = arith.constant 0 : index
    %c6_39 = arith.constant 6 : index
    %79 = vector.load %arg4[%c0_38, %c6_39] : memref<48x25xf32, #tpu.memory_space<vmem>>, vector<48x1xf32>
    %80 = vector.broadcast %79 : vector<48x1xf32> to vector<48x256xf32>
    %81 = arith.mulf %78, %80 : vector<48x256xf32>
    %82 = arith.addf %74, %81 : vector<48x256xf32>
    %c16_i32 = arith.constant 16 : i32
    %83 = tpu.dynamic_rotate %25 by %c16_i32 dim 1 : vector<48x256xf32>, i32 -> vector<48x256xf32>
    %c7 = arith.constant 7 : index
    %c0_40 = arith.constant 0 : index
    %84 = vector.load %arg6[%c7, %c0_40] : memref<25x256xf32, #tpu.memory_space<vmem>>, vector<1x256xf32>
    %85 = vector.broadcast %84 : vector<1x256xf32> to vector<48x256xf32>
    %86 = arith.mulf %83, %85 : vector<48x256xf32>
    %c0_41 = arith.constant 0 : index
    %c7_42 = arith.constant 7 : index
    %87 = vector.load %arg4[%c0_41, %c7_42] : memref<48x25xf32, #tpu.memory_space<vmem>>, vector<48x1xf32>
    %88 = vector.broadcast %87 : vector<48x1xf32> to vector<48x256xf32>
    %89 = arith.mulf %86, %88 : vector<48x256xf32>
    %90 = arith.addf %82, %89 : vector<48x256xf32>
    %c15_i32 = arith.constant 15 : i32
    %91 = tpu.dynamic_rotate %25 by %c15_i32 dim 1 : vector<48x256xf32>, i32 -> vector<48x256xf32>
    %c8 = arith.constant 8 : index
    %c0_43 = arith.constant 0 : index
    %92 = vector.load %arg6[%c8, %c0_43] : memref<25x256xf32, #tpu.memory_space<vmem>>, vector<1x256xf32>
    %93 = vector.broadcast %92 : vector<1x256xf32> to vector<48x256xf32>
    %94 = arith.mulf %91, %93 : vector<48x256xf32>
    %c0_44 = arith.constant 0 : index
    %c8_45 = arith.constant 8 : index
    %95 = vector.load %arg4[%c0_44, %c8_45] : memref<48x25xf32, #tpu.memory_space<vmem>>, vector<48x1xf32>
    %96 = vector.broadcast %95 : vector<48x1xf32> to vector<48x256xf32>
    %97 = arith.mulf %94, %96 : vector<48x256xf32>
    %98 = arith.addf %90, %97 : vector<48x256xf32>
    %c14_i32 = arith.constant 14 : i32
    %99 = tpu.dynamic_rotate %25 by %c14_i32 dim 1 : vector<48x256xf32>, i32 -> vector<48x256xf32>
    %c9 = arith.constant 9 : index
    %c0_46 = arith.constant 0 : index
    %100 = vector.load %arg6[%c9, %c0_46] : memref<25x256xf32, #tpu.memory_space<vmem>>, vector<1x256xf32>
    %101 = vector.broadcast %100 : vector<1x256xf32> to vector<48x256xf32>
    %102 = arith.mulf %99, %101 : vector<48x256xf32>
    %c0_47 = arith.constant 0 : index
    %c9_48 = arith.constant 9 : index
    %103 = vector.load %arg4[%c0_47, %c9_48] : memref<48x25xf32, #tpu.memory_space<vmem>>, vector<48x1xf32>
    %104 = vector.broadcast %103 : vector<48x1xf32> to vector<48x256xf32>
    %105 = arith.mulf %102, %104 : vector<48x256xf32>
    %106 = arith.addf %98, %105 : vector<48x256xf32>
    %c2_i32 = arith.constant 2 : i32
    %107 = tpu.dynamic_rotate %25 by %c2_i32 dim 1 : vector<48x256xf32>, i32 -> vector<48x256xf32>
    %c10 = arith.constant 10 : index
    %c0_49 = arith.constant 0 : index
    %108 = vector.load %arg6[%c10, %c0_49] : memref<25x256xf32, #tpu.memory_space<vmem>>, vector<1x256xf32>
    %109 = vector.broadcast %108 : vector<1x256xf32> to vector<48x256xf32>
    %110 = arith.mulf %107, %109 : vector<48x256xf32>
    %c0_50 = arith.constant 0 : index
    %c10_51 = arith.constant 10 : index
    %111 = vector.load %arg4[%c0_50, %c10_51] : memref<48x25xf32, #tpu.memory_space<vmem>>, vector<48x1xf32>
    %112 = vector.broadcast %111 : vector<48x1xf32> to vector<48x256xf32>
    %113 = arith.mulf %110, %112 : vector<48x256xf32>
    %114 = arith.addf %106, %113 : vector<48x256xf32>
    %c1_i32 = arith.constant 1 : i32
    %115 = tpu.dynamic_rotate %25 by %c1_i32 dim 1 : vector<48x256xf32>, i32 -> vector<48x256xf32>
    %c11 = arith.constant 11 : index
    %c0_52 = arith.constant 0 : index
    %116 = vector.load %arg6[%c11, %c0_52] : memref<25x256xf32, #tpu.memory_space<vmem>>, vector<1x256xf32>
    %117 = vector.broadcast %116 : vector<1x256xf32> to vector<48x256xf32>
    %118 = arith.mulf %115, %117 : vector<48x256xf32>
    %c0_53 = arith.constant 0 : index
    %c11_54 = arith.constant 11 : index
    %119 = vector.load %arg4[%c0_53, %c11_54] : memref<48x25xf32, #tpu.memory_space<vmem>>, vector<48x1xf32>
    %120 = vector.broadcast %119 : vector<48x1xf32> to vector<48x256xf32>
    %121 = arith.mulf %118, %120 : vector<48x256xf32>
    %122 = arith.addf %114, %121 : vector<48x256xf32>
    %c12 = arith.constant 12 : index
    %c0_55 = arith.constant 0 : index
    %123 = vector.load %arg6[%c12, %c0_55] : memref<25x256xf32, #tpu.memory_space<vmem>>, vector<1x256xf32>
    %124 = vector.broadcast %123 : vector<1x256xf32> to vector<48x256xf32>
    %125 = arith.mulf %25, %124 : vector<48x256xf32>
    %c0_56 = arith.constant 0 : index
    %c12_57 = arith.constant 12 : index
    %126 = vector.load %arg4[%c0_56, %c12_57] : memref<48x25xf32, #tpu.memory_space<vmem>>, vector<48x1xf32>
    %127 = vector.broadcast %126 : vector<48x1xf32> to vector<48x256xf32>
    %128 = arith.mulf %125, %127 : vector<48x256xf32>
    %129 = arith.addf %122, %128 : vector<48x256xf32>
    %c255_i32 = arith.constant 255 : i32
    %130 = tpu.dynamic_rotate %25 by %c255_i32 dim 1 : vector<48x256xf32>, i32 -> vector<48x256xf32>
    %c13 = arith.constant 13 : index
    %c0_58 = arith.constant 0 : index
    %131 = vector.load %arg6[%c13, %c0_58] : memref<25x256xf32, #tpu.memory_space<vmem>>, vector<1x256xf32>
    %132 = vector.broadcast %131 : vector<1x256xf32> to vector<48x256xf32>
    %133 = arith.mulf %130, %132 : vector<48x256xf32>
    %c0_59 = arith.constant 0 : index
    %c13_60 = arith.constant 13 : index
    %134 = vector.load %arg4[%c0_59, %c13_60] : memref<48x25xf32, #tpu.memory_space<vmem>>, vector<48x1xf32>
    %135 = vector.broadcast %134 : vector<48x1xf32> to vector<48x256xf32>
    %136 = arith.mulf %133, %135 : vector<48x256xf32>
    %137 = arith.addf %129, %136 : vector<48x256xf32>
    %c254_i32 = arith.constant 254 : i32
    %138 = tpu.dynamic_rotate %25 by %c254_i32 dim 1 : vector<48x256xf32>, i32 -> vector<48x256xf32>
    %c14 = arith.constant 14 : index
    %c0_61 = arith.constant 0 : index
    %139 = vector.load %arg6[%c14, %c0_61] : memref<25x256xf32, #tpu.memory_space<vmem>>, vector<1x256xf32>
    %140 = vector.broadcast %139 : vector<1x256xf32> to vector<48x256xf32>
    %141 = arith.mulf %138, %140 : vector<48x256xf32>
    %c0_62 = arith.constant 0 : index
    %c14_63 = arith.constant 14 : index
    %142 = vector.load %arg4[%c0_62, %c14_63] : memref<48x25xf32, #tpu.memory_space<vmem>>, vector<48x1xf32>
    %143 = vector.broadcast %142 : vector<48x1xf32> to vector<48x256xf32>
    %144 = arith.mulf %141, %143 : vector<48x256xf32>
    %145 = arith.addf %137, %144 : vector<48x256xf32>
    %c242_i32 = arith.constant 242 : i32
    %146 = tpu.dynamic_rotate %25 by %c242_i32 dim 1 : vector<48x256xf32>, i32 -> vector<48x256xf32>
    %c15 = arith.constant 15 : index
    %c0_64 = arith.constant 0 : index
    %147 = vector.load %arg6[%c15, %c0_64] : memref<25x256xf32, #tpu.memory_space<vmem>>, vector<1x256xf32>
    %148 = vector.broadcast %147 : vector<1x256xf32> to vector<48x256xf32>
    %149 = arith.mulf %146, %148 : vector<48x256xf32>
    %c0_65 = arith.constant 0 : index
    %c15_66 = arith.constant 15 : index
    %150 = vector.load %arg4[%c0_65, %c15_66] : memref<48x25xf32, #tpu.memory_space<vmem>>, vector<48x1xf32>
    %151 = vector.broadcast %150 : vector<48x1xf32> to vector<48x256xf32>
    %152 = arith.mulf %149, %151 : vector<48x256xf32>
    %153 = arith.addf %145, %152 : vector<48x256xf32>
    %c241_i32 = arith.constant 241 : i32
    %154 = tpu.dynamic_rotate %25 by %c241_i32 dim 1 : vector<48x256xf32>, i32 -> vector<48x256xf32>
    %c16 = arith.constant 16 : index
    %c0_67 = arith.constant 0 : index
    %155 = vector.load %arg6[%c16, %c0_67] : memref<25x256xf32, #tpu.memory_space<vmem>>, vector<1x256xf32>
    %156 = vector.broadcast %155 : vector<1x256xf32> to vector<48x256xf32>
    %157 = arith.mulf %154, %156 : vector<48x256xf32>
    %c0_68 = arith.constant 0 : index
    %c16_69 = arith.constant 16 : index
    %158 = vector.load %arg4[%c0_68, %c16_69] : memref<48x25xf32, #tpu.memory_space<vmem>>, vector<48x1xf32>
    %159 = vector.broadcast %158 : vector<48x1xf32> to vector<48x256xf32>
    %160 = arith.mulf %157, %159 : vector<48x256xf32>
    %161 = arith.addf %153, %160 : vector<48x256xf32>
    %c240_i32 = arith.constant 240 : i32
    %162 = tpu.dynamic_rotate %25 by %c240_i32 dim 1 : vector<48x256xf32>, i32 -> vector<48x256xf32>
    %c17 = arith.constant 17 : index
    %c0_70 = arith.constant 0 : index
    %163 = vector.load %arg6[%c17, %c0_70] : memref<25x256xf32, #tpu.memory_space<vmem>>, vector<1x256xf32>
    %164 = vector.broadcast %163 : vector<1x256xf32> to vector<48x256xf32>
    %165 = arith.mulf %162, %164 : vector<48x256xf32>
    %c0_71 = arith.constant 0 : index
    %c17_72 = arith.constant 17 : index
    %166 = vector.load %arg4[%c0_71, %c17_72] : memref<48x25xf32, #tpu.memory_space<vmem>>, vector<48x1xf32>
    %167 = vector.broadcast %166 : vector<48x1xf32> to vector<48x256xf32>
    %168 = arith.mulf %165, %167 : vector<48x256xf32>
    %169 = arith.addf %161, %168 : vector<48x256xf32>
    %c239_i32 = arith.constant 239 : i32
    %170 = tpu.dynamic_rotate %25 by %c239_i32 dim 1 : vector<48x256xf32>, i32 -> vector<48x256xf32>
    %c18 = arith.constant 18 : index
    %c0_73 = arith.constant 0 : index
    %171 = vector.load %arg6[%c18, %c0_73] : memref<25x256xf32, #tpu.memory_space<vmem>>, vector<1x256xf32>
    %172 = vector.broadcast %171 : vector<1x256xf32> to vector<48x256xf32>
    %173 = arith.mulf %170, %172 : vector<48x256xf32>
    %c0_74 = arith.constant 0 : index
    %c18_75 = arith.constant 18 : index
    %174 = vector.load %arg4[%c0_74, %c18_75] : memref<48x25xf32, #tpu.memory_space<vmem>>, vector<48x1xf32>
    %175 = vector.broadcast %174 : vector<48x1xf32> to vector<48x256xf32>
    %176 = arith.mulf %173, %175 : vector<48x256xf32>
    %177 = arith.addf %169, %176 : vector<48x256xf32>
    %c238_i32 = arith.constant 238 : i32
    %178 = tpu.dynamic_rotate %25 by %c238_i32 dim 1 : vector<48x256xf32>, i32 -> vector<48x256xf32>
    %c19 = arith.constant 19 : index
    %c0_76 = arith.constant 0 : index
    %179 = vector.load %arg6[%c19, %c0_76] : memref<25x256xf32, #tpu.memory_space<vmem>>, vector<1x256xf32>
    %180 = vector.broadcast %179 : vector<1x256xf32> to vector<48x256xf32>
    %181 = arith.mulf %178, %180 : vector<48x256xf32>
    %c0_77 = arith.constant 0 : index
    %c19_78 = arith.constant 19 : index
    %182 = vector.load %arg4[%c0_77, %c19_78] : memref<48x25xf32, #tpu.memory_space<vmem>>, vector<48x1xf32>
    %183 = vector.broadcast %182 : vector<48x1xf32> to vector<48x256xf32>
    %184 = arith.mulf %181, %183 : vector<48x256xf32>
    %185 = arith.addf %177, %184 : vector<48x256xf32>
    %c226_i32 = arith.constant 226 : i32
    %186 = tpu.dynamic_rotate %25 by %c226_i32 dim 1 : vector<48x256xf32>, i32 -> vector<48x256xf32>
    %c20 = arith.constant 20 : index
    %c0_79 = arith.constant 0 : index
    %187 = vector.load %arg6[%c20, %c0_79] : memref<25x256xf32, #tpu.memory_space<vmem>>, vector<1x256xf32>
    %188 = vector.broadcast %187 : vector<1x256xf32> to vector<48x256xf32>
    %189 = arith.mulf %186, %188 : vector<48x256xf32>
    %c0_80 = arith.constant 0 : index
    %c20_81 = arith.constant 20 : index
    %190 = vector.load %arg4[%c0_80, %c20_81] : memref<48x25xf32, #tpu.memory_space<vmem>>, vector<48x1xf32>
    %191 = vector.broadcast %190 : vector<48x1xf32> to vector<48x256xf32>
    %192 = arith.mulf %189, %191 : vector<48x256xf32>
    %193 = arith.addf %185, %192 : vector<48x256xf32>
    %c225_i32 = arith.constant 225 : i32
    %194 = tpu.dynamic_rotate %25 by %c225_i32 dim 1 : vector<48x256xf32>, i32 -> vector<48x256xf32>
    %c21 = arith.constant 21 : index
    %c0_82 = arith.constant 0 : index
    %195 = vector.load %arg6[%c21, %c0_82] : memref<25x256xf32, #tpu.memory_space<vmem>>, vector<1x256xf32>
    %196 = vector.broadcast %195 : vector<1x256xf32> to vector<48x256xf32>
    %197 = arith.mulf %194, %196 : vector<48x256xf32>
    %c0_83 = arith.constant 0 : index
    %c21_84 = arith.constant 21 : index
    %198 = vector.load %arg4[%c0_83, %c21_84] : memref<48x25xf32, #tpu.memory_space<vmem>>, vector<48x1xf32>
    %199 = vector.broadcast %198 : vector<48x1xf32> to vector<48x256xf32>
    %200 = arith.mulf %197, %199 : vector<48x256xf32>
    %201 = arith.addf %193, %200 : vector<48x256xf32>
    %c224_i32 = arith.constant 224 : i32
    %202 = tpu.dynamic_rotate %25 by %c224_i32 dim 1 : vector<48x256xf32>, i32 -> vector<48x256xf32>
    %c22 = arith.constant 22 : index
    %c0_85 = arith.constant 0 : index
    %203 = vector.load %arg6[%c22, %c0_85] : memref<25x256xf32, #tpu.memory_space<vmem>>, vector<1x256xf32>
    %204 = vector.broadcast %203 : vector<1x256xf32> to vector<48x256xf32>
    %205 = arith.mulf %202, %204 : vector<48x256xf32>
    %c0_86 = arith.constant 0 : index
    %c22_87 = arith.constant 22 : index
    %206 = vector.load %arg4[%c0_86, %c22_87] : memref<48x25xf32, #tpu.memory_space<vmem>>, vector<48x1xf32>
    %207 = vector.broadcast %206 : vector<48x1xf32> to vector<48x256xf32>
    %208 = arith.mulf %205, %207 : vector<48x256xf32>
    %209 = arith.addf %201, %208 : vector<48x256xf32>
    %c223_i32 = arith.constant 223 : i32
    %210 = tpu.dynamic_rotate %25 by %c223_i32 dim 1 : vector<48x256xf32>, i32 -> vector<48x256xf32>
    %c23 = arith.constant 23 : index
    %c0_88 = arith.constant 0 : index
    %211 = vector.load %arg6[%c23, %c0_88] : memref<25x256xf32, #tpu.memory_space<vmem>>, vector<1x256xf32>
    %212 = vector.broadcast %211 : vector<1x256xf32> to vector<48x256xf32>
    %213 = arith.mulf %210, %212 : vector<48x256xf32>
    %c0_89 = arith.constant 0 : index
    %c23_90 = arith.constant 23 : index
    %214 = vector.load %arg4[%c0_89, %c23_90] : memref<48x25xf32, #tpu.memory_space<vmem>>, vector<48x1xf32>
    %215 = vector.broadcast %214 : vector<48x1xf32> to vector<48x256xf32>
    %216 = arith.mulf %213, %215 : vector<48x256xf32>
    %217 = arith.addf %209, %216 : vector<48x256xf32>
    %c222_i32 = arith.constant 222 : i32
    %218 = tpu.dynamic_rotate %25 by %c222_i32 dim 1 : vector<48x256xf32>, i32 -> vector<48x256xf32>
    %c24 = arith.constant 24 : index
    %c0_91 = arith.constant 0 : index
    %219 = vector.load %arg6[%c24, %c0_91] : memref<25x256xf32, #tpu.memory_space<vmem>>, vector<1x256xf32>
    %220 = vector.broadcast %219 : vector<1x256xf32> to vector<48x256xf32>
    %221 = arith.mulf %218, %220 : vector<48x256xf32>
    %c0_92 = arith.constant 0 : index
    %c24_93 = arith.constant 24 : index
    %222 = vector.load %arg4[%c0_92, %c24_93] : memref<48x25xf32, #tpu.memory_space<vmem>>, vector<48x1xf32>
    %223 = vector.broadcast %222 : vector<48x1xf32> to vector<48x256xf32>
    %224 = arith.mulf %221, %223 : vector<48x256xf32>
    %225 = arith.addf %217, %224 : vector<48x256xf32>
    %cst_94 = arith.constant 0.000000e+00 : f32
    %226 = vector.broadcast %cst_94 : f32 to vector<48x256xf32>
    %227 = arith.maximumf %225, %226 : vector<48x256xf32>
    %c0_95 = arith.constant 0 : index
    %c0_96 = arith.constant 0 : index
    %228 = vector.load %arg5[%c0_95, %c0_96] : memref<4x48xbf16, #tpu.memory_space<vmem>>, vector<4x48xbf16>
    %229 = arith.truncf %227 : vector<48x256xf32> to vector<48x256xbf16>
    %cst_97 = arith.constant dense<0.000000e+00> : vector<4x256xf32>
    %230 = tpu.matmul %228, %229, %cst_97 {dimension_numbers = #tpu.dot_dimension_numbers<[1], [0], [0], [1], [0, 0, 1, 1], [], []>} : vector<4x48xbf16>, vector<48x256xbf16>, vector<4x256xf32> -> vector<4x256xf32>
    %c0_98 = arith.constant 0 : index
    %231 = memref.load %arg1[%c0_98] : memref<1xf32, #tpu.memory_space<smem>>
    %232 = vector.broadcast %231 : f32 to vector<4x256xf32>
    %233 = arith.mulf %232, %0 : vector<4x256xf32>
    %234 = arith.addf %230, %233 : vector<4x256xf32>
    %c0_99 = arith.constant 0 : index
    %c0_100 = arith.constant 0 : index
    %235 = vector.load %arg7[%c0_99, %c0_100] : memref<4x256xf32, #tpu.memory_space<vmem>>, vector<4x256xf32>
    tpu.vector_store %arg7[%c0_99, %c0_100], %234 {strides = array<i32>} : memref<4x256xf32, #tpu.memory_space<vmem>>, vector<4x256xf32>,
    return
  }
  func.func @transform_0(%arg0: i32) -> i32 {
    %c0_i32 = arith.constant 0 : i32
    %c0_i32_0 = arith.constant 0 : i32
    return %c0_i32 : i32
  }
  func.func @transform_1(%arg0: i32) -> (i32, i32) {
    %c0_i32 = arith.constant 0 : i32
    %c0_i32_0 = arith.constant 0 : i32
    return %c0_i32, %arg0 : i32, i32
  }
  func.func @transform_2(%arg0: i32) -> (i32, i32) {
    %c0_i32 = arith.constant 0 : i32
    %c0_i32_0 = arith.constant 0 : i32
    %c0_i32_1 = arith.constant 0 : i32
    return %c0_i32, %c0_i32_0 : i32, i32
  }
  func.func @transform_3(%arg0: i32) -> (i32, i32) {
    %c0_i32 = arith.constant 0 : i32
    %c0_i32_0 = arith.constant 0 : i32
    %c0_i32_1 = arith.constant 0 : i32
    return %c0_i32, %c0_i32_0 : i32, i32
  }
  func.func @transform_4(%arg0: i32) -> (i32, i32) {
    %c0_i32 = arith.constant 0 : i32
    %c0_i32_0 = arith.constant 0 : i32
    %c0_i32_1 = arith.constant 0 : i32
    return %c0_i32, %c0_i32_0 : i32, i32
  }
  func.func @transform_5(%arg0: i32) -> (i32, i32) {
    %c0_i32 = arith.constant 0 : i32
    %c0_i32_0 = arith.constant 0 : i32
    %c0_i32_1 = arith.constant 0 : i32
    return %c0_i32, %c0_i32_0 : i32, i32
  }
  func.func @transform_6(%arg0: i32) -> (i32, i32) {
    %c0_i32 = arith.constant 0 : i32
    %c0_i32_0 = arith.constant 0 : i32
    return %c0_i32, %arg0 : i32, i32
  }
}

</mosaic_0001>

<bundles_post_ra>
// kernel: mixed_op_forward.1
= control target key start
LH: loop header
LB: loop body
LE: loop exit
PB: predicated region body
PF: predicated region fallthrough
CT: control target
= control target key end

     0   :  { %s3488_s23 = smov 0   ;;  %s7161_s0 = inlined_call_operand.<no memory space> [shape: f32[1], index: 0, kind: input, shape index: {}]   ;;  %s7162_s1 = inlined_call_operand.vmem [shape: f32[4,512], index: 1, kind: input, shape index: {}]   ;;  %s7163_s2 = inlined_call_operand.vmem [shape: f32[48,4], index: 2, kind: input, shape index: {}]   ;;  %s7164_s3 = inlined_call_operand.vmem [shape: f32[48,25], index: 3, kind: input, shape index: {}]   ;;  %s7165_s4 = inlined_call_operand.vmem [shape: bf16[4,48], index: 4, kind: input, shape index: {}]   ;;  %s7166_s5 = inlined_call_operand.vmem [shape: f32[25,256], index: 5, kind: input, shape index: {}]   ;;  %s7167_s6 = inlined_call_operand.vmem [shape: f32[4,512], index: 6, kind: output, shape index: {}]  }
   0x1   :  { %11 = sst [smem:[#allocation2]] %s7161_s0 }
   0x2 LB: > { %s3186_s24 = sadd.s32 4294967295, %s3399_s23   ;;  %p3190_p0 = scmp.ge.s32.totalorder %s3399_s23, 1  ;;  %s3399_s23 = sphi %s3488_s23, %s17_s23  }
   0x3   : > { %p214_p1 = scmp.lt.s32.totalorder %s3399_s23, 3 }
   0x5   : > { %p215_p2 = pnand %p3190_p0, %p214_p1 }
   0x7   : > { %218 = sbr.rel (%p215_p2) target bundleno = 1676 (0x68c), region = 44 }
   0xc   : > { %v260_v0 = vld [vmem:[%s7163_s2 + $0x10] sm:$0xff]  ;;  %v3401_v1 = vmov 2   ;;  %v3402_v2 = vmov 0   ;;  %v262_v3 = vld [vmem:[%s7163_s2 + $0x20] sm:$0xff]  ;;  %v261_v4 = vld [vmem:[%s7163_s2 + $0x18] sm:$0xff]  ;;  %v3403_v7 = vmov 3  }
   0xd   : > { %3289 = vset.pattern.permute.xlu0 %v3401_v1  ;;  %3283 = vset.pattern.permute.xlu1 %v3402_v2  ;;  %v259_v5 = vld [vmem:[%s7163_s2 + $0x8] sm:$0xff]  ;;  %v258_v8 = vld [vmem:[%s7163_s2] sm:$0xff]  ;;  %v3404_v9 = vmov 1   ;;  %v3548_v15 = vld [vmem:[%s7164_s3 + $0x18] sm:$0xff]  ;;  %s3191_s20 = sshll.u32 %s3186_s24, 1  ;;  %s3405_s29 = smov 34  }
   0xe   : > { %378 = vperm.xlu0 %3289, %v260_v0   ;;  %277 = vperm.xlu1 %3283, %v260_v0   ;;  %v263_v6 = vld [vmem:[%s7163_s2 + $0x28] sm:$0xff]  ;;  %v3521_v10 = vld [vmem:[%s7164_s3] sm:$0xff]  ;;  %p245_p3 = scmp.lt.s32.totalorder %s3191_s20, 3  ;;  %v3574_v23 = vld [vmem:[%s7164_s3 + $0x10] sm:$0xff]  ;;  %s3406_s30 = smov 33  }
   0xf   : > { %3284 = vset.pattern.permute.xlu2 %v3402_v2  ;;  %v3529_v11 = vld [vmem:[%s7164_s3 + $0x28] sm:$0xff]  ;;  %v3605_v34 = vld [vmem:[%s7164_s3 + $0x20] sm:$0xff]  ;;  %s3407_s7 = smov 32   ;;  %s3408_s8 = smov 31  }
  0x10   : > { %287 = vperm.xlu2 %3284, %v262_v3   ;;  %v3540_v13 = vld [vmem:[%s7164_s3 + $0x8] sm:$0xff]  ;;  %s8145_s20 = smov (!%p245_p3, %s3191_s20), 3  ;;  %s3409_s13 = smov 30  }
  0x11   : > { %s3192_s21 = sshll.u32 %s8145_s20, 2  ;;  %s3411_s16 = smov 18  }
  0x12   : > { %s3581_s0 = scalar_lea.vmem %s7162_s1, %s3192_s21  ;;  %s3413_s19 = smov 17  }
  0x13   : > { %v264_v25 = vld [vmem:[%s3581_s0] ss:$4 sm:$0x3]  ;;  %v3195_v26 = vld [vmem:[%s3581_s0 + $0x1] ss:$4 sm:$0x3] }
  0x14   : > { %v3589_v27 = vld [vmem:[%s3581_s0 + $0x2] ss:$4 sm:$0x3]  ;;  %v3592_v28 = vld [vmem:[%s3581_s0 + $0x3] ss:$4 sm:$0x3] }
  0x15   : > { %v296_v29 = vperm.slane %v264_v25, 0  ;;  %v339_v30 = vperm.slane %v3195_v26, 0  ;;  %v3595_v31 = vperm.slane %v3589_v27, 0  ;;  %v3598_v32 = vperm.slane %v3592_v28, 0  ;;  %s3415_s22 = smov 16   ;;  %s3417_s28 = smov 15  }
  0x16   : > { %3291 = vset.pattern.permute.xlu0 %v3403_v7  ;;  %282 = vperm.xlu1 %3283, %v261_v4   ;;  %s3419_s9 = smov 14   ;;  %s3421_s18 = smov 2  }
  0x17   : > { %429 = vperm.xlu0 %3291, %v259_v5   ;;  %s3423_s26 = smov 1   ;;  %s3426_s27 = smov 127  }
  0x18   : > { %292 = vperm.xlu2 %3284, %v263_v6   ;;  %s3434_s17 = smov 112   ;;  %s3440_s15 = smov 98  }
  0x19   : > { %s3447_s10 = smov 94  }
  0x1e   : > { %3285 = vset.pattern.permute.xlu1 %v3404_v9 }
  0x1f   : > { %3292 = vset.pattern.permute.xlu0 %v3402_v2  ;;  %319 = vperm.xlu1 %3285, %v259_v5  }
  0x20   : > { %267 = vperm.xlu0 %3292, %v258_v8   ;;  %3286 = vset.pattern.permute.xlu2 %v3404_v9 }
  0x21   : > { %323 = vperm.xlu2 %3286, %v260_v0  }
  0x27   : > { %327 = vperm.xlu1 %3285, %v261_v4  }
  0x28   : > { %272 = vperm.xlu0 %3292, %v259_v5  }
  0x29   : > { %331 = vperm.xlu2 %3286, %v262_v3  }
  0x2f   : > { %3287 = vset.pattern.permute.xlu1 %v3401_v1 }
  0x30   : > { %554 = vperm.xlu0 %3292, %v3521_v10   ;;  %370 = vperm.xlu1 %3287, %v258_v8  }
  0x31   : > { %3288 = vset.pattern.permute.xlu2 %v3401_v1 }
  0x32   : > { %374 = vperm.xlu2 %3288, %v259_v5  }
  0x38   : > { %579 = vperm.xlu0 %3292, %v3529_v11   ;;  %382 = vperm.xlu1 %3287, %v261_v4  }
  0x3a   : > { %386 = vperm.xlu2 %3288, %v262_v3  }
  0x40   : > { %3296 = vset.pattern.permute.xlu0 %v3404_v9  ;;  %390 = vperm.xlu1 %3287, %v263_v6  }
  0x41   : > { %315 = vperm.xlu0 %3296, %v258_v8  }
  0x42   : > { %3290 = vset.pattern.permute.xlu2 %v3403_v7 }
  0x43   : > { %425 = vperm.xlu2 %3290, %v258_v8  }
  0x48   : > { %3293 = vset.pattern.permute.xlu1 %v3403_v7 }
  0x49   : > { %335 = vperm.xlu0 %3296, %v263_v6   ;;  %433 = vperm.xlu1 %3293, %v260_v0  }
  0x4b   : > { %437 = vperm.xlu2 %3290, %v261_v4  }
  0x51   : > { %441 = vperm.xlu1 %3293, %v262_v3  }
  0x53   : > { %445 = vperm.xlu2 %3290, %v263_v6  }
  0x59   : > { %3294 = vset.pattern.permute.xlu1 %v3402_v2 }
  0x5a   : > { %559 = vperm.xlu1 %3294, %v3540_v13  }
  0x5b   : > { %3295 = vset.pattern.permute.xlu2 %v3402_v2  ;;  %v3641_v2 = vperm.slane %v3195_v26, 1 }
  0x5c   : > { %564 = vperm.xlu2 %3295, %v3574_v23  }
  0x62   : > { %569 = vperm.xlu1 %3294, %v3548_v15  }
  0x64   : > { %574 = vperm.xlu2 %3295, %v3605_v34  }
  0x6a   : > { %v3535_v12 = vpop.permute.xlu2 %287  ;;  %3297 = vset.pattern.permute.xlu1 %v3404_v9 }
  0x6b   : > { %v308_v5 = vmul.f32 %v296_v29, %v3535_v12 }
  0x6c   : > { %3298 = vset.pattern.permute.xlu2 %v3404_v9 }
  0x72   : > { %v3543_v14 = vpop.permute.xlu2 %292 }
  0x7b   : > { %v3558_v18 = vpop.permute.xlu2 %323 }
  0x7c   : > { %v347_v55 = vmul.f32 %v339_v30, %v3558_v18 }
  0x80   : > { %v3551_v16 = vpop.permute.xlu1 %277  ;;  %v3553_v17 = vpop.permute.xlu0 %378 }
  0x81   : > { %v304_v56 = vmul.f32 %v296_v29, %v3551_v16  ;;  %v402_v4 = vmul.f32 %v3595_v31, %v3553_v17 }
  0x83   : > { %v3567_v21 = vpop.permute.xlu2 %331  ;;  %v359_v3 = vadd.f32 %v347_v55, %v304_v56 }
  0x84   : > { %v351_v6 = vmul.f32 %v339_v30, %v3567_v21 }
  0x86   : > { %v363_v56 = vadd.f32 %v351_v6, %v308_v5  ;;  %v348_v5 = vmul.f32 %v3641_v2, %v3558_v18 }
  0x88   : > { %v3560_v19 = vpop.permute.xlu1 %282 }
  0x89   : > { %v3562_v20 = vpop.permute.xlu0 %429  ;;  %v306_v62 = vmul.f32 %v296_v29, %v3560_v19 }
  0x8a   : > { %v455_v40 = vmul.f32 %v3598_v32, %v3562_v20 }
  0x8c   : > { %v3607_v35 = vpop.permute.xlu2 %374 }
  0x8d   : > { %v400_v37 = vmul.f32 %v3595_v31, %v3607_v35 }
  0x91   : > { %v3569_v22 = vpop.permute.xlu1 %319 }
  0x92   : > { %v3583_v24 = vpop.permute.xlu0 %267  ;;  %v345_v38 = vmul.f32 %v339_v30, %v3569_v22 }
  0x93   : > { %v300_v53 = vmul.f32 %v296_v29, %v3583_v24 }
  0x94   : > { %v3620_v47 = vpop.permute.xlu2 %386 }
  0x99   : > { %v3600_v33 = vpop.permute.xlu1 %327 }
  0x9a   : > { %v273_v36 = vpop.permute.xlu0 %272  ;;  %v349_v57 = vmul.f32 %v339_v30, %v3600_v33 }
  0x9b   : > { %v302_v39 = vmul.f32 %v296_v29, %v273_v36 }
  0x9c   : > { %v361_v8 = vadd.f32 %v349_v57, %v306_v62 }
  0x9d   : > { %v357_v41 = vadd.f32 %v345_v38, %v302_v39  ;;  %v426_v50 = vpop.permute.xlu2 %425  ;;  %v310_v38 = vmul.f32 %v296_v29, %v3543_v14 }
  0x9e   : > { %v453_v59 = vmul.f32 %v3598_v32, %v426_v50 }
  0x9f   : > { %v412_v42 = vadd.f32 %v400_v37, %v357_v41  ;;  %v297_v37 = vperm.slane %v264_v25, 1 }
  0xa1   : > { %v467_v43 = vadd.f32 %v455_v40, %v412_v42  ;;  %v301_v57 = vmul.f32 %v297_v37, %v3583_v24  ;;  %v346_v24 = vmul.f32 %v3641_v2, %v3569_v22 }
  0xa2   : > { %v371_v44 = vpop.permute.xlu1 %370  ;;  %v3615_v45 = vpop.permute.xlu0 %554 }
  0xa3   : > { %v3618_v46 = vmax.f32 %v467_v43, 0.0  ;;  %v398_v58 = vmul.f32 %v3595_v31, %v371_v44 }
  0xa5   : > { %7515 = vst [vmem:[#allocation3_spill] sm:$0xff] %v3618_v46  ;;  %491 = vrot.lane.b32.xlu1 %v3618_v46, %s3405_s29  ;;  %v3636_v60 = vpop.permute.xlu2 %437 }
  0xa6   : > { %v459_v39 = vmul.f32 %v3598_v32, %v3636_v60 }
  0xaa   : > { %v3624_v48 = vpop.permute.xlu1 %382  ;;  %v3626_v49 = vpop.permute.xlu0 %579 }
  0xab   : > { %7516 = vst [vmem:[#allocation4_spill] sm:$0xff] %v3626_v49  ;;  %v404_v63 = vmul.f32 %v3595_v31, %v3624_v48 }
  0xad   : > { %v416_v26 = vadd.f32 %v404_v63, %v361_v8  ;;  %v446_v29 = vpop.permute.xlu2 %445 }
  0xaf   : > { %v471_v62 = vadd.f32 %v459_v39, %v416_v26 }
  0xb1   : > { %v3674_v39 = vmax.f32 %v471_v62, 0.0 }
  0xb2   : > { %v3628_v51 = vpop.permute.xlu1 %390 }
  0xb3   : > { %v316_v52 = vpop.permute.xlu0 %315  ;;  %7519 = vst [vmem:[#allocation7_spill] sm:$0xff] %v3674_v39 }
  0xb4   : > { %v343_v54 = vmul.f32 %v339_v30, %v316_v52  ;;  %v344_v42 = vmul.f32 %v3641_v2, %v316_v52  ;;  %v408_v52 = vmul.f32 %v3595_v31, %v3628_v51 }
  0xb6   : > { %v355_v61 = vadd.f32 %v343_v54, %v300_v53  ;;  %v414_v54 = vadd.f32 %v402_v4, %v359_v3  ;;  %v356_v63 = vadd.f32 %v344_v42, %v301_v57  ;;  %v463_v4 = vmul.f32 %v3598_v32, %v446_v29 }
  0xb8   : > { %v410_v0 = vadd.f32 %v398_v58, %v355_v61  ;;  %v406_v58 = vmul.f32 %v3595_v31, %v3620_v47  ;;  %v305_v31 = vmul.f32 %v297_v37, %v3551_v16 }
  0xba   : > { %v465_v9 = vadd.f32 %v453_v59, %v410_v0  ;;  %v303_v59 = vmul.f32 %v297_v37, %v273_v36  ;;  %v450_v36 = vperm.slane %v3592_v28, 1  ;;  %v418_v8 = vadd.f32 %v406_v58, %v363_v56 }
  0xbb   : > { %v336_v40 = vpop.permute.xlu0 %335  ;;  %v434_v41 = vpop.permute.xlu1 %433  ;;  %v350_v28 = vmul.f32 %v3641_v2, %v3600_v33  ;;  %v360_v16 = vadd.f32 %v348_v5, %v305_v31  ;;  %v309_v58 = vmul.f32 %v297_v37, %v3535_v12 }
  0xbc   : > { %v3651_v43 = vmax.f32 %v465_v9, 0.0  ;;  %v353_v53 = vmul.f32 %v339_v30, %v336_v40  ;;  %v457_v55 = vmul.f32 %v3598_v32, %v434_v41  ;;  %v395_v30 = vperm.slane %v3589_v27, 1 }
  0xbd   : > { %v358_v9 = vadd.f32 %v346_v24, %v303_v59  ;;  %v354_v57 = vmul.f32 %v3641_v2, %v336_v40  ;;  %v458_v33 = vmul.f32 %v450_v36, %v434_v41  ;;  %v460_v41 = vmul.f32 %v450_v36, %v3636_v60 }
  0xbe   : > { %7517 = vst [vmem:[#allocation5_spill] sm:$0xff] %v3651_v43  ;;  %v365_v25 = vadd.f32 %v353_v53, %v310_v38  ;;  %489 = vrot.lane.b32.xlu0 %v3651_v43, %s3405_s29  ;;  %v469_v61 = vadd.f32 %v457_v55, %v414_v54  ;;  %v399_v6 = vmul.f32 %v395_v30, %v371_v44 }
  0xbf   : > { %v401_v27 = vmul.f32 %v395_v30, %v3607_v35  ;;  %v454_v38 = vmul.f32 %v450_v36, %v426_v50  ;;  %v403_v35 = vmul.f32 %v395_v30, %v3553_v17  ;;  %v307_v53 = vmul.f32 %v297_v37, %v3560_v19 }
  0xc0   : > { %v3664_v0 = vmax.f32 %v469_v61, 0.0  ;;  %v420_v3 = vadd.f32 %v408_v52, %v365_v25  ;;  %v411_v26 = vadd.f32 %v399_v6, %v356_v63  ;;  %v456_v50 = vmul.f32 %v450_v36, %v3562_v20 }
  0xc1   : > { %v413_v54 = vadd.f32 %v401_v27, %v358_v9  ;;  %v405_v55 = vmul.f32 %v395_v30, %v3624_v48  ;;  %v352_v17 = vmul.f32 %v3641_v2, %v3567_v21  ;;  %v362_v59 = vadd.f32 %v350_v28, %v307_v53 }
  0xc2   : > { %7518 = vst [vmem:[#allocation6_spill] sm:$0xff] %v3664_v0  ;;  %493 = vrot.lane.b32.xlu2 %v3664_v0, %s3405_s29  ;;  %v475_v18 = vadd.f32 %v463_v4, %v420_v3  ;;  %v466_v56 = vadd.f32 %v454_v38, %v411_v26  ;;  %v311_v19 = vmul.f32 %v297_v37, %v3543_v14 }
  0xc3   : > { %v442_v22 = vpop.permute.xlu1 %441  ;;  %v415_v20 = vadd.f32 %v403_v35, %v360_v16  ;;  %v468_v48 = vadd.f32 %v456_v50, %v413_v54  ;;  %v417_v40 = vadd.f32 %v405_v55, %v362_v59  ;;  %v364_v62 = vadd.f32 %v352_v17, %v309_v58  ;;  %v528_v16 = vld [vmem:[%s7166_s5] ss:$8 sm:$0x3] }
  0xc4   : > { %v461_v42 = vmul.f32 %v3598_v32, %v442_v22  ;;  %v3688_v25 = vmax.f32 %v475_v18, 0.0  ;;  %v3699_v52 = vmax.f32 %v466_v56, 0.0  ;;  %v366_v12 = vadd.f32 %v354_v57, %v311_v19 }
  0xc5   : > { %v470_v61 = vadd.f32 %v458_v33, %v415_v20  ;;  %v407_v21 = vmul.f32 %v395_v30, %v3620_v47  ;;  %v409_v14 = vmul.f32 %v395_v30, %v3628_v51  ;;  %v3705_v2 = vmax.f32 %v468_v48, 0.0 }
  0xc6   : > { %v473_v44 = vadd.f32 %v461_v42, %v418_v8  ;;  %495 = vrot.lane.b32.xlu0 %v3674_v39, %s3405_s29  ;;  %7521 = vst [vmem:[#allocation9_spill] sm:$0xff] %v3688_v25  ;;  %v472_v37 = vadd.f32 %v460_v41, %v417_v40  ;;  %v462_v63 = vmul.f32 %v450_v36, %v442_v22  ;;  %v513_v42 = vlaneseq  ;;  %v3198_v41 = vld [vmem:[%s7166_s5 + $0x1] ss:$8 sm:$0x3] }
  0xc7   : > { %7522 = vst [vmem:[#allocation10_spill] sm:$0xff] %v3699_v52  ;;  %v3707_v24 = vmax.f32 %v470_v61, 0.0  ;;  %v421_v3 = vadd.f32 %v409_v14, %v366_v12  ;;  %v464_v60 = vmul.f32 %v450_v36, %v446_v29  ;;  %v419_v4 = vadd.f32 %v407_v21, %v364_v62  ;;  %v3742_v29 = vpop.permute.xlu2 %564 }
  0xc8   : > { %v3685_v32 = vmax.f32 %v473_v44, 0.0  ;;  %7523 = vst [vmem:[#allocation11_spill] sm:$0xff] %v3705_v2  ;;  %v3713_v47 = vmax.f32 %v472_v37, 0.0  ;;  %v3785_v28 = vand.u32 127, %v513_v42  ;;  %v3795_v53 = vperm.slane %v528_v16, 0 }
  0xc9   : > { %7524 = vst [vmem:[#allocation12_spill] sm:$0xff] %v3707_v24  ;;  %v474_v5 = vadd.f32 %v462_v63, %v419_v4  ;;  %v476_v6 = vadd.f32 %v464_v60, %v421_v3  ;;  %v3797_v50 = vperm.slane %v528_v16, 1  ;;  %v3831_v12 = vperm.slane %v3198_v41, 0 }
  0xca   : > { %7520 = vst [vmem:[#allocation8_spill] sm:$0xff] %v3685_v32  ;;  %497 = vrot.lane.b32.xlu1 %v3685_v32, %s3405_s29  ;;  %499 = vrot.lane.b32.xlu2 %v3688_v25, %s3405_s29  ;;  %vm515_vm0 = vcmp.lt.s32.totalorder %v3785_v28, 34  ;;  %vm630_vm1 = vcmp.lt.s32.totalorder %v3785_v28, 33  ;;  %v3833_v61 = vperm.slane %v3198_v41, 1  ;;  %vm734_vm2 = vcmp.lt.s32.totalorder %v3785_v28, 32 }
  0xcb   : > { %7525 = vst [vmem:[#allocation13_spill] sm:$0xff] %v3713_v47  ;;  %v3717_v51 = vmax.f32 %v474_v5, 0.0  ;;  %v3719_v30 = vmax.f32 %v476_v6, 0.0  ;;  %vm838_vm3 = vcmp.lt.s32.totalorder %v3785_v28, 31  ;;  %vm942_vm4 = vcmp.lt.s32.totalorder %v3785_v28, 30 }
  0xcc   : > { %7528 = vst [vmem:[#allocation16_spill] sm:$0xff] %v3742_v29  ;;  %v3759_v27 = vpop.permute.xlu1 %559  ;;  %vm1046_vm5 = vcmp.lt.s32.totalorder %v3785_v28, 18  ;;  %vm1150_vm6 = vcmp.lt.s32.totalorder %v3785_v28, 17  ;;  %vm1254_vm7 = vcmp.lt.s32.totalorder %v3785_v28, 16  ;;  %vm1462_vm8 = vcmp.lt.s32.totalorder %v3785_v28, 14 }
  0xcd   : > { %7526 = vst [vmem:[#allocation14_spill] sm:$0xff] %v3717_v51  ;;  %vm1358_vm9 = vcmp.lt.s32.totalorder %v3785_v28, 15  ;;  %vm1566_vm10 = vcmp.lt.s32.totalorder %v3785_v28, 2  ;;  %vm7400_vm11 = vcmp.lt.s32.totalorder %v3785_v28, 1  ;;  %vm2153_vm12 = vcmp.lt.s32.totalorder %v3785_v28, 113 }
  0xce   : > { %501 = vrot.lane.b32.xlu0 %v3699_v52, %s3405_s29  ;;  %7527 = vst [vmem:[#allocation15_spill] sm:$0xff] %v3719_v30  ;;  %vm1841_vm13 = vcmp.lt.s32.totalorder %v3785_v28, 127  ;;  %vm1945_vm14 = vcmp.lt.s32.totalorder %v3785_v28, 126  ;;  %vm2049_vm15 = vcmp.lt.s32.totalorder %v3785_v28, 114 }
  0xcf   : > { %v3749_v36 = vpop.permute.xlu2 %574  ;;  %7537 = vst [vmem:[#allocation25_spill] sm:$0xff] %v3795_v53 }
  0xd0   : > { %7529 = vst [vmem:[#allocation17_spill] sm:$0xff] %v3749_v36 }
  0xd1   : > { %7538 = vst [vmem:[#allocation26_spill] sm:$0xff] %v3797_v50 }
  0xd2   : > { %503 = vrot.lane.b32.xlu1 %v3705_v2, %s3405_s29  ;;  %505 = vrot.lane.b32.xlu2 %v3707_v24, %s3405_s29  ;;  %7541 = vst [vmem:[#allocation29_spill] sm:$0xff] %v3831_v12 }
  0xd3   : > { %7542 = vst [vmem:[#allocation30_spill] sm:$0xff] %v3833_v61 }
  0xd4   : > { %v3766_v9 = vpop.permute.xlu1 %569 }
  0xd5   : > { %7532 = vst [vmem:[#allocation20_spill] sm:$0xff] %v3766_v9  ;;  %v7680_v9 = vmov 13  }
  0xd6   : > { %507 = vrot.lane.b32.xlu0 %v3713_v47, %s3405_s29 }
  0xda   : > { %509 = vrot.lane.b32.xlu1 %v3717_v51, %s3405_s29  ;;  %511 = vrot.lane.b32.xlu2 %v3719_v30, %s3405_s29  ;;  %s3430_s29 = smov 114  }
  0xde   : > { %610 = vrot.lane.b32.xlu0 %v3664_v0, %s3406_s30 }
  0xe2   : > { %606 = vrot.lane.b32.xlu1 %v3651_v43, %s3406_s30  ;;  %608 = vrot.lane.b32.xlu2 %v3618_v46, %s3406_s30 }
  0xe6   : > { %616 = vrot.lane.b32.xlu0 %v3688_v25, %s3406_s30 }
  0xea   : > { %612 = vrot.lane.b32.xlu1 %v3674_v39, %s3406_s30  ;;  %614 = vrot.lane.b32.xlu2 %v3685_v32, %s3406_s30 }
  0xee   : > { %622 = vrot.lane.b32.xlu0 %v3707_v24, %s3406_s30 }
  0xf2   : > { %618 = vrot.lane.b32.xlu1 %v3699_v52, %s3406_s30  ;;  %620 = vrot.lane.b32.xlu2 %v3705_v2, %s3406_s30 }
  0xf6   : > { %628 = vrot.lane.b32.xlu0 %v3719_v30, %s3406_s30 }
  0xfa   : > { %624 = vrot.lane.b32.xlu1 %v3713_v47, %s3406_s30  ;;  %626 = vrot.lane.b32.xlu2 %v3717_v51, %s3406_s30  ;;  %s3432_s30 = smov 113  }
  0xfe   : > { %671 = vperm.xlu0 %3296, %v3574_v23  }
 0x102   : > { %663 = vperm.xlu1 %3297, %v3521_v10   ;;  %667 = vperm.xlu2 %3298, %v3540_v13  }
 0x106   : > { %712 = vrot.lane.b32.xlu0 %v3618_v46, %s3407_s7 }
 0x107   : > { %3300 = vset.pattern.permute.xlu0 %v3401_v1 }
 0x10a   : > { %675 = vperm.xlu1 %3297, %v3548_v15   ;;  %679 = vperm.xlu2 %3298, %v3605_v34  }
 0x10e   : > { %718 = vrot.lane.b32.xlu0 %v3685_v32, %s3407_s7 }
 0x112   : > { %683 = vperm.xlu1 %3297, %v3529_v11   ;;  %710 = vrot.lane.b32.xlu2 %v3651_v43, %s3407_s7 }
 0x113   : > { %3299 = vset.pattern.permute.xlu2 %v3401_v1 }
 0x116   : > { %724 = vrot.lane.b32.xlu0 %v3705_v2, %s3407_s7 }
 0x117   : > { %v492_v38 = vpop.permute.xlu1 %491 }
 0x11a   : > { %714 = vrot.lane.b32.xlu1 %v3664_v0, %s3407_s7  ;;  %716 = vrot.lane.b32.xlu2 %v3674_v39, %s3407_s7 }
 0x11b   : > { %3301 = vset.pattern.permute.xlu1 %v3401_v1 }
 0x11c   : > { %v3756_v31 = vpop.permute.xlu2 %493 }
 0x11d   : > { %7530 = vst [vmem:[#allocation18_spill] sm:$0xff] %v3756_v31 }
 0x11e   : > { %730 = vrot.lane.b32.xlu0 %v3717_v51, %s3407_s7 }
 0x122   : > { %720 = vrot.lane.b32.xlu1 %v3688_v25, %s3407_s7  ;;  %722 = vrot.lane.b32.xlu2 %v3699_v52, %s3407_s7 }
 0x124   : > { %v3763_v8 = vpop.permute.xlu2 %499 }
 0x125   : > { %7531 = vst [vmem:[#allocation19_spill] sm:$0xff] %v3763_v8 }
 0x126   : > { %771 = vperm.xlu0 %3300, %v3540_v13  }
 0x12a   : > { %726 = vrot.lane.b32.xlu1 %v3707_v24, %s3407_s7  ;;  %728 = vrot.lane.b32.xlu2 %v3713_v47, %s3407_s7 }
 0x12c   : > { %v3770_v1 = vpop.permute.xlu2 %505 }
 0x12d   : > { %7533 = vst [vmem:[#allocation21_spill] sm:$0xff] %v3770_v1 }
 0x12e   : > { %814 = vrot.lane.b32.xlu0 %v3651_v43, %s3408_s8 }
 0x12f   : > { %3302 = vset.pattern.permute.xlu0 %v3403_v7 }
 0x130   : > { %v490_v22 = vpop.permute.xlu0 %489 }
 0x132   : > { %732 = vrot.lane.b32.xlu1 %v3719_v30, %s3407_s7  ;;  %767 = vperm.xlu2 %3299, %v3521_v10  }
 0x134   : > { %v3777_v26 = vpop.permute.xlu2 %511 }
 0x135   : > { %7534 = vst [vmem:[#allocation22_spill] sm:$0xff] %v3777_v26 }
 0x136   : > { %820 = vrot.lane.b32.xlu0 %v3674_v39, %s3408_s8 }
 0x138   : > { %v3781_v18 = vpop.permute.xlu0 %495 }
 0x139   : > { %7535 = vst [vmem:[#allocation23_spill] sm:$0xff] %v3781_v18 }
 0x13a   : > { %775 = vperm.xlu1 %3301, %v3574_v23   ;;  %779 = vperm.xlu2 %3299, %v3548_v15  }
 0x13c   : > { %v3787_v44 = vpop.permute.xlu1 %497  ;;  %v609_v35 = vpop.permute.xlu2 %608 }
 0x13d   : > { %7536 = vst [vmem:[#allocation24_spill] sm:$0xff] %v3787_v44 }
 0x13e   : > { %826 = vrot.lane.b32.xlu0 %v3699_v52, %s3408_s8 }
 0x140   : > { %v502_v54 = vpop.permute.xlu0 %501 }
 0x141   : > { %v516_v55 = vsel %vm515_vm0, %v490_v22, %v502_v54  ;;  %v522_v56 = vsel %vm515_vm0, %v502_v54, %v490_v22  ;;  %v3410_v54 = vmov 4  }
 0x142   : > { %v3804_v57 = vmul.f32 %v3795_v53, %v522_v56  ;;  %v3807_v33 = vmul.f32 %v3797_v50, %v516_v55  ;;  %783 = vperm.xlu1 %3301, %v3605_v34   ;;  %787 = vperm.xlu2 %3299, %v3529_v11  }
 0x144   : > { %v504_v58 = vpop.permute.xlu1 %503  ;;  %v3811_v17 = vpop.permute.xlu2 %614 }
 0x145   : > { %7539 = vst [vmem:[#allocation27_spill] sm:$0xff] %v3811_v17  ;;  %v517_v59 = vsel %vm515_vm0, %v492_v38, %v504_v58  ;;  %v523_v19 = vsel %vm515_vm0, %v504_v58, %v492_v38 }
 0x146   : > { %v536_v20 = vmul.f32 %v3795_v53, %v523_v19  ;;  %v537_v48 = vmul.f32 %v3797_v50, %v517_v59  ;;  %832 = vrot.lane.b32.xlu0 %v3713_v47, %s3408_s8 }
 0x148   : > { %v3821_v40 = vpop.permute.xlu0 %507  ;;  %v584_v38 = vmul.f32 %v3759_v27, %v536_v20  ;;  %v585_v42 = vmul.f32 %v3759_v27, %v537_v48 }
 0x149   : > { %7540 = vst [vmem:[#allocation28_spill] sm:$0xff] %v3821_v40 }
 0x14a   : > { %816 = vrot.lane.b32.xlu1 %v3618_v46, %s3408_s8  ;;  %818 = vrot.lane.b32.xlu2 %v3664_v0, %s3408_s8 }
 0x14b   : > { %3303 = vset.pattern.permute.xlu1 %v3403_v7  ;;  %3304 = vset.pattern.permute.xlu2 %v3403_v7 }
 0x14c   : > { %v3836_v62 = vpop.permute.xlu1 %509  ;;  %v621_v21 = vpop.permute.xlu2 %620 }
 0x14d   : > { %7543 = vst [vmem:[#allocation31_spill] sm:$0xff] %v3836_v62  ;;  %v632_v14 = vsel %vm630_vm1, %v609_v35, %v621_v21  ;;  %v638_v37 = vsel %vm630_vm1, %v621_v21, %v609_v35 }
 0x14e   : > { %871 = vperm.xlu0 %3302, %v3521_v10   ;;  %v652_v63 = vmul.f32 %v3831_v12, %v638_v37  ;;  %v653_v3 = vmul.f32 %v3833_v61, %v632_v14 }
 0x150   : > { %v3846_v60 = vpop.permute.xlu0 %610 }
 0x151   : > { %7544 = vst [vmem:[#allocation32_spill] sm:$0xff] %v3846_v60  ;;  %v3205_v60 = vld [vmem:[%s7166_s5 + $0x10] ss:$8 sm:$0x3] }
 0x152   : > { %822 = vrot.lane.b32.xlu1 %v3685_v32, %s3408_s8  ;;  %824 = vrot.lane.b32.xlu2 %v3688_v25, %s3408_s8  ;;  %v4694_v17 = vperm.slane %v3205_v60, 0 }
 0x154   : > { %v607_v7 = vpop.permute.xlu1 %606  ;;  %v3852_v4 = vpop.permute.xlu2 %626  ;;  %7690 = vst [vmem:[#allocation170_spill] sm:$0xff] %v4694_v17 }
 0x155   : > { %7545 = vst [vmem:[#allocation33_spill] sm:$0xff] %v3852_v4  ;;  %v4696_v4 = vperm.slane %v3205_v60, 1  ;;  %v3207_v60 = vld [vmem:[%s7166_s5 + $0x12] ss:$8 sm:$0x3] }
 0x156   : > { %891 = vperm.xlu0 %3302, %v3529_v11   ;;  %v4732_v53 = vperm.slane %v3207_v60, 0  ;;  %v4734_v26 = vperm.slane %v3207_v60, 1 }
 0x157   : > { %7691 = vst [vmem:[#allocation171_spill] sm:$0xff] %v4696_v4 }
 0x158   : > { %v3855_v5 = vpop.permute.xlu0 %616  ;;  %7696 = vst [vmem:[#allocation176_spill] sm:$0xff] %v4732_v53 }
 0x159   : > { %7546 = vst [vmem:[#allocation34_spill] sm:$0xff] %v3855_v5 }
 0x15a   : > { %828 = vrot.lane.b32.xlu1 %v3705_v2, %s3408_s8  ;;  %830 = vrot.lane.b32.xlu2 %v3707_v24, %s3408_s8  ;;  %7697 = vst [vmem:[#allocation177_spill] sm:$0xff] %v4734_v26 }
 0x15c   : > { %v3861_v6 = vpop.permute.xlu1 %612  ;;  %v668_v22 = vpop.permute.xlu2 %667 }
 0x15d   : > { %7547 = vst [vmem:[#allocation35_spill] sm:$0xff] %v3861_v6  ;;  %v688_v16 = vmul.f32 %v668_v22, %v652_v63  ;;  %v689_v35 = vmul.f32 %v668_v22, %v653_v3  ;;  %v583_v22 = vmul.f32 %v3615_v45, %v3807_v33 }
 0x15e   : > { %922 = vrot.lane.b32.xlu0 %v3664_v0, %s3409_s13 }
 0x15f   : > { %3307 = vset.pattern.permute.xlu0 %v3410_v54  ;;  %v3867_v55 = vadd.f32 %v688_v16, %v584_v38  ;;  %v3869_v56 = vadd.f32 %v689_v35, %v585_v42 }
 0x160   : > { %v3871_v58 = vpop.permute.xlu0 %622 }
 0x161   : > { %7548 = vst [vmem:[#allocation36_spill] sm:$0xff] %v3871_v58  ;;  %v3206_v58 = vld [vmem:[%s7166_s5 + $0x11] ss:$8 sm:$0x3] }
 0x162   : > { %834 = vrot.lane.b32.xlu1 %v3717_v51, %s3408_s8  ;;  %836 = vrot.lane.b32.xlu2 %v3719_v30, %s3408_s8  ;;  %v4704_v40 = vperm.slane %v3206_v58, 1 }
 0x164   : > { %v619_v27 = vpop.permute.xlu1 %618  ;;  %v3877_v59 = vpop.permute.xlu2 %679  ;;  %7693 = vst [vmem:[#allocation173_spill] sm:$0xff] %v4704_v40 }
 0x165   : > { %7549 = vst [vmem:[#allocation37_spill] sm:$0xff] %v3877_v59  ;;  %v631_v19 = vsel %vm630_vm1, %v607_v7, %v619_v27  ;;  %v637_v20 = vsel %vm630_vm1, %v619_v27, %v607_v7  ;;  %v582_v7 = vmul.f32 %v3615_v45, %v3804_v57 }
 0x166   : > { %v650_v48 = vmul.f32 %v3831_v12, %v637_v20  ;;  %v651_v41 = vmul.f32 %v3833_v61, %v631_v19  ;;  %928 = vrot.lane.b32.xlu0 %v3688_v25, %s3409_s13  ;;  %v3199_v20 = vld [vmem:[%s7166_s5 + $0x2] ss:$8 sm:$0x3]  ;;  %v7342_v12 = vmov 16  }
 0x167   : > { %v3915_v45 = vperm.slane %v3199_v20, 0  ;;  %v3917_v57 = vperm.slane %v3199_v20, 1 }
 0x168   : > { %v3887_v21 = vpop.permute.xlu0 %628 }
 0x169   : > { %7550 = vst [vmem:[#allocation38_spill] sm:$0xff] %v3887_v21  ;;  %v7676_v21 = vmov 12  }
 0x16a   : > { %875 = vperm.xlu1 %3303, %v3540_v13   ;;  %879 = vperm.xlu2 %3304, %v3574_v23   ;;  %7554 = vst [vmem:[#allocation42_spill] sm:$0xff] %v3915_v45 }
 0x16b   : > { %7555 = vst [vmem:[#allocation43_spill] sm:$0xff] %v3917_v57 }
 0x16c   : > { %v3891_v14 = vpop.permute.xlu1 %624  ;;  %v711_v37 = vpop.permute.xlu2 %710 }
 0x16d   : > { %7551 = vst [vmem:[#allocation39_spill] sm:$0xff] %v3891_v14 }
 0x16e   : > { %934 = vrot.lane.b32.xlu0 %v3707_v24, %s3409_s13 }
 0x170   : > { %v3895_v63 = vpop.permute.xlu0 %671 }
 0x171   : > { %7552 = vst [vmem:[#allocation40_spill] sm:$0xff] %v3895_v63 }
 0x172   : > { %883 = vperm.xlu1 %3303, %v3548_v15   ;;  %887 = vperm.xlu2 %3304, %v3605_v34  }
 0x174   : > { %v664_v3 = vpop.permute.xlu1 %663  ;;  %v3903_v38 = vpop.permute.xlu2 %716 }
 0x175   : > { %7553 = vst [vmem:[#allocation41_spill] sm:$0xff] %v3903_v38  ;;  %v686_v42 = vmul.f32 %v664_v3, %v650_v48  ;;  %v687_v16 = vmul.f32 %v664_v3, %v651_v41 }
 0x176   : > { %940 = vrot.lane.b32.xlu0 %v3719_v30, %s3409_s13 }
 0x177   : > { %v698_v35 = vadd.f32 %v686_v42, %v582_v7  ;;  %v699_v27 = vadd.f32 %v687_v16, %v583_v22 }
 0x178   : > { %v713_v19 = vpop.permute.xlu0 %712 }
 0x17a   : > { %918 = vrot.lane.b32.xlu1 %v3651_v43, %s3409_s13  ;;  %920 = vrot.lane.b32.xlu2 %v3618_v46, %s3409_s13 }
 0x17b   : > { %3305 = vset.pattern.permute.xlu1 %v3410_v54  ;;  %3306 = vset.pattern.permute.xlu2 %v3410_v54 }
 0x17c   : > { %v3919_v33 = vpop.permute.xlu1 %675  ;;  %v723_v48 = vpop.permute.xlu2 %722 }
 0x17d   : > { %7556 = vst [vmem:[#allocation44_spill] sm:$0xff] %v3919_v33  ;;  %v735_v41 = vsel %vm734_vm2, %v711_v37, %v723_v48  ;;  %v741_v3 = vsel %vm734_vm2, %v723_v48, %v711_v37  ;;  %v3412_v37 = vmov 5  }
 0x17e   : > { %983 = vperm.xlu0 %3307, %v3574_v23   ;;  %v754_v7 = vmul.f32 %v3915_v45, %v741_v3  ;;  %v755_v22 = vmul.f32 %v3917_v57, %v735_v41 }
 0x180   : > { %v3928_v42 = vpop.permute.xlu0 %718 }
 0x181   : > { %7557 = vst [vmem:[#allocation45_spill] sm:$0xff] %v3928_v42 }
 0x182   : > { %924 = vrot.lane.b32.xlu1 %v3674_v39, %s3409_s13  ;;  %926 = vrot.lane.b32.xlu2 %v3685_v32, %s3409_s13 }
 0x184   : > { %v3934_v54 = vpop.permute.xlu1 %683  ;;  %v3936_v16 = vpop.permute.xlu2 %728 }
 0x185   : > { %7558 = vst [vmem:[#allocation46_spill] sm:$0xff] %v3934_v54 }
 0x186   : > { %7559 = vst [vmem:[#allocation47_spill] sm:$0xff] %v3936_v16  ;;  %1024 = vrot.lane.b32.xlu0 %v3618_v46, %s3411_s16 }
 0x187   : > { %3309 = vset.pattern.permute.xlu0 %v3412_v37 }
 0x188   : > { %v725_v20 = vpop.permute.xlu0 %724 }
 0x189   : > { %v736_v48 = vsel %vm734_vm2, %v713_v19, %v725_v20  ;;  %v742_v41 = vsel %vm734_vm2, %v725_v20, %v713_v19 }
 0x18a   : > { %v756_v3 = vmul.f32 %v3915_v45, %v742_v41  ;;  %v757_v42 = vmul.f32 %v3917_v57, %v736_v48  ;;  %930 = vrot.lane.b32.xlu1 %v3699_v52, %s3409_s13  ;;  %932 = vrot.lane.b32.xlu2 %v3705_v2, %s3409_s13 }
 0x18c   : > { %v3950_v54 = vpop.permute.xlu1 %714  ;;  %v768_v38 = vpop.permute.xlu2 %767 }
 0x18d   : > { %7560 = vst [vmem:[#allocation48_spill] sm:$0xff] %v3950_v54  ;;  %v790_v16 = vmul.f32 %v768_v38, %v754_v7  ;;  %v791_v33 = vmul.f32 %v768_v38, %v755_v22 }
 0x18e   : > { %1030 = vrot.lane.b32.xlu0 %v3685_v32, %s3411_s16 }
 0x18f   : > { %v802_v63 = vadd.f32 %v790_v16, %v698_v35  ;;  %v803_v19 = vadd.f32 %v791_v33, %v699_v27 }
 0x190   : > { %v3954_v20 = vpop.permute.xlu0 %730 }
 0x191   : > { %7561 = vst [vmem:[#allocation49_spill] sm:$0xff] %v3954_v20 }
 0x192   : > { %936 = vrot.lane.b32.xlu1 %v3713_v47, %s3409_s13  ;;  %938 = vrot.lane.b32.xlu2 %v3717_v51, %s3409_s13 }
 0x194   : > { %v3960_v48 = vpop.permute.xlu1 %720  ;;  %v3962_v41 = vpop.permute.xlu2 %779 }
 0x195   : > { %7562 = vst [vmem:[#allocation50_spill] sm:$0xff] %v3960_v48 }
 0x196   : > { %7563 = vst [vmem:[#allocation51_spill] sm:$0xff] %v3962_v41  ;;  %1036 = vrot.lane.b32.xlu0 %v3705_v2, %s3411_s16 }
 0x198   : > { %v772_v38 = vpop.permute.xlu0 %771 }
 0x199   : > { %v792_v7 = vmul.f32 %v772_v38, %v756_v3  ;;  %v793_v22 = vmul.f32 %v772_v38, %v757_v42  ;;  %v3200_v3 = vld [vmem:[%s7166_s5 + $0x3] ss:$8 sm:$0x3] }
 0x19a   : > { %975 = vperm.xlu1 %3305, %v3521_v10   ;;  %979 = vperm.xlu2 %3306, %v3540_v13  }
 0x19b   : > { %v3968_v35 = vadd.f32 %v792_v7, %v3867_v55  ;;  %v3971_v27 = vadd.f32 %v793_v22, %v3869_v56  ;;  %v4002_v22 = vperm.slane %v3200_v3, 0 }
 0x19c   : > { %v3974_v33 = vpop.permute.xlu1 %726  ;;  %v3976_v16 = vpop.permute.xlu2 %787 }
 0x19d   : > { %7564 = vst [vmem:[#allocation52_spill] sm:$0xff] %v3974_v33 }
 0x19e   : > { %7565 = vst [vmem:[#allocation53_spill] sm:$0xff] %v3976_v16  ;;  %1042 = vrot.lane.b32.xlu0 %v3717_v51, %s3411_s16 }
 0x19f   : > { %7571 = vst [vmem:[#allocation59_spill] sm:$0xff] %v4002_v22 }
 0x1a0   : > { %v815_v41 = vpop.permute.xlu0 %814 }
 0x1a2   : > { %987 = vperm.xlu1 %3305, %v3548_v15   ;;  %991 = vperm.xlu2 %3306, %v3605_v34  }
 0x1a4   : > { %v3982_v42 = vpop.permute.xlu1 %732  ;;  %v3984_v55 = vpop.permute.xlu2 %818 }
 0x1a5   : > { %7566 = vst [vmem:[#allocation54_spill] sm:$0xff] %v3982_v42 }
 0x1a6   : > { %7567 = vst [vmem:[#allocation55_spill] sm:$0xff] %v3984_v55  ;;  %1083 = vperm.xlu0 %3309, %v3540_v13   ;;  %v7183_v55 = vmov 6  }
 0x1a8   : > { %v3987_v56 = vpop.permute.xlu0 %820 }
 0x1a9   : > { %7568 = vst [vmem:[#allocation56_spill] sm:$0xff] %v3987_v56  ;;  %v4004_v56 = vperm.slane %v3200_v3, 1 }
 0x1aa   : > { %995 = vperm.xlu1 %3305, %v3529_v11   ;;  %1022 = vrot.lane.b32.xlu2 %v3651_v43, %s3411_s16 }
 0x1ab   : > { %3308 = vset.pattern.permute.xlu2 %v3412_v37  ;;  %7572 = vst [vmem:[#allocation60_spill] sm:$0xff] %v4004_v56 }
 0x1ac   : > { %v3995_v38 = vpop.permute.xlu1 %775  ;;  %v3997_v7 = vpop.permute.xlu2 %824 }
 0x1ad   : > { %7569 = vst [vmem:[#allocation57_spill] sm:$0xff] %v3995_v38 }
 0x1ae   : > { %7570 = vst [vmem:[#allocation58_spill] sm:$0xff] %v3997_v7  ;;  %1126 = vrot.lane.b32.xlu0 %v3651_v43, %s3413_s19 }
 0x1af   : > { %3311 = vset.pattern.permute.xlu0 %v7183_v55 }
 0x1b0   : > { %v827_v16 = vpop.permute.xlu0 %826 }
 0x1b1   : > { %v839_v38 = vsel %vm838_vm3, %v815_v41, %v827_v16  ;;  %v845_v7 = vsel %vm838_vm3, %v827_v16, %v815_v41 }
 0x1b2   : > { %v858_v20 = vmul.f32 %v4002_v22, %v845_v7  ;;  %v859_v57 = vmul.f32 %v4004_v56, %v839_v38  ;;  %1026 = vrot.lane.b32.xlu1 %v3664_v0, %s3411_s16  ;;  %1028 = vrot.lane.b32.xlu2 %v3674_v39, %s3411_s16 }
 0x1b3   : > { %3310 = vset.pattern.permute.xlu1 %v3412_v37 }
 0x1b4   : > { %v4017_v3 = vpop.permute.xlu1 %783  ;;  %v4019_v55 = vpop.permute.xlu2 %830 }
 0x1b5   : > { %7573 = vst [vmem:[#allocation61_spill] sm:$0xff] %v4017_v3 }
 0x1b6   : > { %7574 = vst [vmem:[#allocation62_spill] sm:$0xff] %v4019_v55  ;;  %1132 = vrot.lane.b32.xlu0 %v3674_v39, %s3413_s19 }
 0x1b8   : > { %v4023_v33 = vpop.permute.xlu0 %832 }
 0x1b9   : > { %7575 = vst [vmem:[#allocation63_spill] sm:$0xff] %v4023_v33 }
 0x1ba   : > { %1032 = vrot.lane.b32.xlu1 %v3688_v25, %s3411_s16  ;;  %1034 = vrot.lane.b32.xlu2 %v3699_v52, %s3411_s16 }
 0x1bc   : > { %v817_v41 = vpop.permute.xlu1 %816  ;;  %v4029_v16 = vpop.permute.xlu2 %836 }
 0x1bd   : > { %7576 = vst [vmem:[#allocation64_spill] sm:$0xff] %v4029_v16 }
 0x1be   : > { %1138 = vrot.lane.b32.xlu0 %v3699_v52, %s3413_s19 }
 0x1c0   : > { %v872_v37 = vpop.permute.xlu0 %871 }
 0x1c1   : > { %v894_v38 = vmul.f32 %v872_v37, %v858_v20  ;;  %v895_v7 = vmul.f32 %v872_v37, %v859_v57 }
 0x1c2   : > { %1038 = vrot.lane.b32.xlu1 %v3707_v24, %s3411_s16  ;;  %1040 = vrot.lane.b32.xlu2 %v3713_v47, %s3411_s16 }
 0x1c3   : > { %v4035_v3 = vadd.f32 %v894_v38, %v802_v63  ;;  %v4037_v33 = vadd.f32 %v895_v7, %v803_v19 }
 0x1c4   : > { %v4041_v55 = vpop.permute.xlu1 %822  ;;  %v4043_v54 = vpop.permute.xlu2 %879 }
 0x1c5   : > { %7577 = vst [vmem:[#allocation65_spill] sm:$0xff] %v4041_v55 }
 0x1c6   : > { %7578 = vst [vmem:[#allocation66_spill] sm:$0xff] %v4043_v54  ;;  %1144 = vrot.lane.b32.xlu0 %v3713_v47, %s3413_s19 }
 0x1c8   : > { %v4047_v16 = vpop.permute.xlu0 %891 }
 0x1c9   : > { %7579 = vst [vmem:[#allocation67_spill] sm:$0xff] %v4047_v16 }
 0x1ca   : > { %1044 = vrot.lane.b32.xlu1 %v3719_v30, %s3411_s16  ;;  %1079 = vperm.xlu2 %3308, %v3521_v10  }
 0x1cc   : > { %v829_v63 = vpop.permute.xlu1 %828  ;;  %v4052_v57 = vpop.permute.xlu2 %887 }
 0x1cd   : > { %7580 = vst [vmem:[#allocation68_spill] sm:$0xff] %v4052_v57  ;;  %v840_v19 = vsel %vm838_vm3, %v817_v41, %v829_v63  ;;  %v846_v20 = vsel %vm838_vm3, %v829_v63, %v817_v41 }
 0x1ce   : > { %v860_v37 = vmul.f32 %v4002_v22, %v846_v20  ;;  %v861_v38 = vmul.f32 %v4004_v56, %v840_v19  ;;  %1183 = vperm.xlu0 %3311, %v3521_v10  }
 0x1d0   : > { %v4061_v7 = vpop.permute.xlu0 %922 }
 0x1d1   : > { %7581 = vst [vmem:[#allocation69_spill] sm:$0xff] %v4061_v7 }
 0x1d2   : > { %1087 = vperm.xlu1 %3310, %v3574_v23   ;;  %1091 = vperm.xlu2 %3308, %v3548_v15  }
 0x1d4   : > { %v4065_v16 = vpop.permute.xlu1 %834  ;;  %v921_v57 = vpop.permute.xlu2 %920 }
 0x1d5   : > { %7582 = vst [vmem:[#allocation70_spill] sm:$0xff] %v4065_v16  ;;  %v7197_v16 = vmov 7  }
 0x1d6   : > { %1203 = vperm.xlu0 %3311, %v3529_v11  }
 0x1d8   : > { %v4068_v55 = vpop.permute.xlu0 %928 }
 0x1d9   : > { %7583 = vst [vmem:[#allocation71_spill] sm:$0xff] %v4068_v55 }
 0x1da   : > { %1095 = vperm.xlu1 %3310, %v3605_v34   ;;  %1099 = vperm.xlu2 %3308, %v3529_v11   ;;  %v3201_v11 = vld [vmem:[%s7166_s5 + $0x4] ss:$8 sm:$0x3] }
 0x1dc   : > { %v876_v41 = vpop.permute.xlu1 %875  ;;  %v4072_v63 = vpop.permute.xlu2 %926 }
 0x1dd   : > { %7584 = vst [vmem:[#allocation72_spill] sm:$0xff] %v4072_v63  ;;  %v896_v10 = vmul.f32 %v876_v41, %v860_v37  ;;  %v897_v19 = vmul.f32 %v876_v41, %v861_v38  ;;  %v7586_v37 = vmov 6   ;;  %v4095_v38 = vperm.slane %v3201_v11, 1 }
 0x1de   : > { %1234 = vrot.lane.b32.xlu0 %v3664_v0, %s3415_s22 }
 0x1df   : > { %v908_v20 = vadd.f32 %v896_v10, %v3968_v35  ;;  %v909_v7 = vadd.f32 %v897_v19, %v3971_v27  ;;  %3316 = vset.pattern.permute.xlu0 %v7197_v16  ;;  %v4093_v27 = vperm.slane %v3201_v11, 0  ;;  %7589 = vst [vmem:[#allocation76_spill] sm:$0xff] %v4095_v38 }
 0x1e0   : > { %v4079_v55 = vpop.permute.xlu0 %934 }
 0x1e1   : > { %7585 = vst [vmem:[#allocation73_spill] sm:$0xff] %v4079_v55 }
 0x1e2   : > { %1128 = vrot.lane.b32.xlu1 %v3618_v46, %s3413_s19  ;;  %1130 = vrot.lane.b32.xlu2 %v3664_v0, %s3413_s19  ;;  %7588 = vst [vmem:[#allocation75_spill] sm:$0xff] %v4093_v27 }
 0x1e3   : > { %3312 = vset.pattern.permute.xlu1 %v7586_v37  ;;  %3313 = vset.pattern.permute.xlu2 %v7586_v37 }
 0x1e4   : > { %v4089_v35 = vpop.permute.xlu1 %883  ;;  %v933_v41 = vpop.permute.xlu2 %932 }
 0x1e5   : > { %7587 = vst [vmem:[#allocation74_spill] sm:$0xff] %v4089_v35  ;;  %v944_v10 = vsel %vm942_vm4, %v921_v57, %v933_v41  ;;  %v950_v19 = vsel %vm942_vm4, %v933_v41, %v921_v57 }
 0x1e6   : > { %1240 = vrot.lane.b32.xlu0 %v3688_v25, %s3415_s22  ;;  %v964_v16 = vmul.f32 %v4093_v27, %v950_v19  ;;  %v965_v37 = vmul.f32 %v4095_v38, %v944_v10 }
 0x1e8   : > { %v4105_v35 = vpop.permute.xlu0 %940 }
 0x1e9   : > { %7590 = vst [vmem:[#allocation77_spill] sm:$0xff] %v4105_v35 }
 0x1ea   : > { %1134 = vrot.lane.b32.xlu1 %v3685_v32, %s3413_s19  ;;  %1136 = vrot.lane.b32.xlu2 %v3688_v25, %s3413_s19 }
 0x1ec   : > { %v919_v11 = vpop.permute.xlu1 %918  ;;  %v4111_v63 = vpop.permute.xlu2 %938 }
 0x1ed   : > { %7591 = vst [vmem:[#allocation78_spill] sm:$0xff] %v4111_v63 }
 0x1ee   : > { %1246 = vrot.lane.b32.xlu0 %v3707_v24, %s3415_s22 }
 0x1f0   : > { %v4115_v57 = vpop.permute.xlu0 %983 }
 0x1f1   : > { %7592 = vst [vmem:[#allocation79_spill] sm:$0xff] %v4115_v57 }
 0x1f2   : > { %1140 = vrot.lane.b32.xlu1 %v3705_v2, %s3413_s19  ;;  %1142 = vrot.lane.b32.xlu2 %v3707_v24, %s3413_s19 }
 0x1f4   : > { %v4121_v41 = vpop.permute.xlu1 %924  ;;  %v980_v10 = vpop.permute.xlu2 %979 }
 0x1f5   : > { %7593 = vst [vmem:[#allocation80_spill] sm:$0xff] %v4121_v41  ;;  %v1000_v19 = vmul.f32 %v980_v10, %v964_v16  ;;  %v1001_v35 = vmul.f32 %v980_v10, %v965_v37 }
 0x1f6   : > { %1252 = vrot.lane.b32.xlu0 %v3719_v30, %s3415_s22 }
 0x1f7   : > { %v1012_v63 = vadd.f32 %v1000_v19, %v908_v20  ;;  %v1013_v55 = vadd.f32 %v1001_v35, %v909_v7  ;;  %v3202_v35 = vld [vmem:[%s7166_s5 + $0x5] ss:$8 sm:$0x3] }
 0x1f8   : > { %v1025_v54 = vpop.permute.xlu0 %1024 }
 0x1fa   : > { %1146 = vrot.lane.b32.xlu1 %v3717_v51, %s3413_s19  ;;  %1148 = vrot.lane.b32.xlu2 %v3719_v30, %s3413_s19  ;;  %s3438_s19 = smov 110  }
 0x1fc   : > { %v931_v57 = vpop.permute.xlu1 %930  ;;  %v4129_v56 = vpop.permute.xlu2 %991 }
 0x1fd   : > { %7594 = vst [vmem:[#allocation81_spill] sm:$0xff] %v4129_v56  ;;  %v943_v41 = vsel %vm942_vm4, %v919_v11, %v931_v57  ;;  %v949_v16 = vsel %vm942_vm4, %v931_v57, %v919_v11  ;;  %v4150_v11 = vperm.slane %v3202_v35, 0  ;;  %v4152_v57 = vperm.slane %v3202_v35, 1 }
 0x1fe   : > { %v962_v37 = vmul.f32 %v4093_v27, %v949_v16  ;;  %v963_v7 = vmul.f32 %v4095_v38, %v943_v41  ;;  %1295 = vperm.xlu0 %3316, %v3574_v23  }
 0x1ff   : > { %7597 = vst [vmem:[#allocation84_spill] sm:$0xff] %v4150_v11 }
 0x200   : > { %v4138_v20 = vpop.permute.xlu0 %1030  ;;  %7598 = vst [vmem:[#allocation85_spill] sm:$0xff] %v4152_v57 }
 0x201   : > { %7595 = vst [vmem:[#allocation82_spill] sm:$0xff] %v4138_v20 }
 0x202   : > { %1187 = vperm.xlu1 %3312, %v3540_v13   ;;  %1191 = vperm.xlu2 %3313, %v3574_v23   ;;  %v7214_v13 = vmov 8  }
 0x204   : > { %v4145_v10 = vpop.permute.xlu1 %936  ;;  %v1023_v19 = vpop.permute.xlu2 %1022 }
 0x205   : > { %7596 = vst [vmem:[#allocation83_spill] sm:$0xff] %v4145_v10 }
 0x206   : > { %1336 = vrot.lane.b32.xlu0 %v3618_v46, %s3417_s28 }
 0x207   : > { %3318 = vset.pattern.permute.xlu0 %v7214_v13 }
 0x208   : > { %v1037_v23 = vpop.permute.xlu0 %1036 }
 0x209   : > { %v1048_v41 = vsel %vm1046_vm5, %v1025_v54, %v1037_v23  ;;  %v1054_v16 = vsel %vm1046_vm5, %v1037_v23, %v1025_v54 }
 0x20a   : > { %v1068_v20 = vmul.f32 %v4150_v11, %v1054_v16  ;;  %v1069_v10 = vmul.f32 %v4152_v57, %v1048_v41  ;;  %1195 = vperm.xlu1 %3312, %v3548_v15   ;;  %1199 = vperm.xlu2 %3313, %v3605_v34   ;;  %v7601_v15 = vmov 7  }
 0x20c   : > { %v976_v35 = vpop.permute.xlu1 %975  ;;  %v4163_v56 = vpop.permute.xlu2 %1028 }
 0x20d   : > { %7599 = vst [vmem:[#allocation86_spill] sm:$0xff] %v4163_v56  ;;  %v998_v38 = vmul.f32 %v976_v35, %v962_v37  ;;  %v999_v13 = vmul.f32 %v976_v35, %v963_v7  ;;  %v7617_v56 = vmov 8  }
 0x20e   : > { %1342 = vrot.lane.b32.xlu0 %v3685_v32, %s3417_s28 }
 0x20f   : > { %v1010_v27 = vadd.f32 %v998_v38, %v4035_v3  ;;  %v1011_v54 = vadd.f32 %v999_v13, %v4037_v33 }
 0x210   : > { %v4169_v23 = vpop.permute.xlu0 %1042 }
 0x211   : > { %7600 = vst [vmem:[#allocation87_spill] sm:$0xff] %v4169_v23 }
 0x212   : > { %1230 = vrot.lane.b32.xlu1 %v3651_v43, %s3415_s22  ;;  %1232 = vrot.lane.b32.xlu2 %v3618_v46, %s3415_s22 }
 0x213   : > { %3314 = vset.pattern.permute.xlu1 %v7601_v15  ;;  %3315 = vset.pattern.permute.xlu2 %v7601_v15 }
 0x214   : > { %v4176_v34 = vpop.permute.xlu1 %987  ;;  %v1035_v37 = vpop.permute.xlu2 %1034 }
 0x215   : > { %7602 = vst [vmem:[#allocation88_spill] sm:$0xff] %v4176_v34  ;;  %v1047_v3 = vsel %vm1046_vm5, %v1023_v19, %v1035_v37  ;;  %v1053_v33 = vsel %vm1046_vm5, %v1035_v37, %v1023_v19  ;;  %v4276_v34 = vld [vmem:[%s7164_s3 + $0x28] sm:$0xff] }
 0x216   : > { %1348 = vrot.lane.b32.xlu0 %v3705_v2, %s3417_s28  ;;  %v1066_v38 = vmul.f32 %v4150_v11, %v1053_v33  ;;  %v1067_v7 = vmul.f32 %v4152_v57, %v1047_v3  ;;  %v4210_v33 = vld [vmem:[%s7164_s3 + $0x8] sm:$0xff]  ;;  %v4243_v11 = vld [vmem:[%s7164_s3] sm:$0xff] }
 0x218   : > { %v1084_v13 = vpop.permute.xlu0 %1083 }
 0x219   : > { %v1104_v41 = vmul.f32 %v1084_v13, %v1068_v20  ;;  %v1105_v16 = vmul.f32 %v1084_v13, %v1069_v10 }
 0x21a   : > { %1236 = vrot.lane.b32.xlu1 %v3674_v39, %s3415_s22  ;;  %1238 = vrot.lane.b32.xlu2 %v3685_v32, %s3415_s22 }
 0x21b   : > { %v4189_v35 = vadd.f32 %v1104_v41, %v1012_v63  ;;  %v4191_v15 = vadd.f32 %v1105_v16, %v1013_v55 }
 0x21c   : > { %v4195_v19 = vpop.permute.xlu1 %995  ;;  %v4197_v37 = vpop.permute.xlu2 %1040 }
 0x21d   : > { %7603 = vst [vmem:[#allocation89_spill] sm:$0xff] %v4195_v19 }
 0x21e   : > { %7604 = vst [vmem:[#allocation90_spill] sm:$0xff] %v4197_v37  ;;  %1354 = vrot.lane.b32.xlu0 %v3717_v51, %s3417_s28 }
 0x220   : > { %v1127_v3 = vpop.permute.xlu0 %1126 }
 0x222   : > { %1242 = vrot.lane.b32.xlu1 %v3699_v52, %s3415_s22  ;;  %1244 = vrot.lane.b32.xlu2 %v3705_v2, %s3415_s22 }
 0x224   : > { %v4205_v63 = vpop.permute.xlu1 %1026  ;;  %v1080_v55 = vpop.permute.xlu2 %1079 }
 0x225   : > { %7605 = vst [vmem:[#allocation91_spill] sm:$0xff] %v4205_v63  ;;  %v1102_v20 = vmul.f32 %v1080_v55, %v1066_v38  ;;  %v1103_v10 = vmul.f32 %v1080_v55, %v1067_v7  ;;  %v3203_v38 = vld [vmem:[%s7166_s5 + $0x6] ss:$8 sm:$0x3] }
 0x226   : > { %1395 = vperm.xlu0 %3318, %v4210_v33  }
 0x227   : > { %v1114_v13 = vadd.f32 %v1102_v20, %v1010_v27  ;;  %v1115_v41 = vadd.f32 %v1103_v10, %v1011_v54  ;;  %v4229_v27 = vperm.slane %v3203_v38, 0  ;;  %v4231_v54 = vperm.slane %v3203_v38, 1 }
 0x228   : > { %v4213_v16 = vpop.permute.xlu0 %1132  ;;  %v7225_v20 = vmov 9  }
 0x229   : > { %7606 = vst [vmem:[#allocation92_spill] sm:$0xff] %v4213_v16 }
 0x22a   : > { %1248 = vrot.lane.b32.xlu1 %v3713_v47, %s3415_s22  ;;  %1250 = vrot.lane.b32.xlu2 %v3717_v51, %s3415_s22  ;;  %7609 = vst [vmem:[#allocation95_spill] sm:$0xff] %v4229_v27  ;;  %s3084_s22 = sld [smem:[#allocation2]] }
 0x22b   : > { %7610 = vst [vmem:[#allocation96_spill] sm:$0xff] %v4231_v54 }
 0x22c   : > { %v4222_v7 = vpop.permute.xlu1 %1032  ;;  %v4224_v55 = vpop.permute.xlu2 %1091 }
 0x22d   : > { %7607 = vst [vmem:[#allocation93_spill] sm:$0xff] %v4222_v7 }
 0x22e   : > { %7608 = vst [vmem:[#allocation94_spill] sm:$0xff] %v4224_v55  ;;  %1438 = vrot.lane.b32.xlu0 %v3651_v43, %s3419_s9 }
 0x22f   : > { %3320 = vset.pattern.permute.xlu0 %v7225_v20 }
 0x230   : > { %v1139_v10 = vpop.permute.xlu0 %1138 }
 0x231   : > { %v1151_v16 = vsel %vm1150_vm6, %v1127_v3, %v1139_v10  ;;  %v1157_v55 = vsel %vm1150_vm6, %v1139_v10, %v1127_v3 }
 0x232   : > { %v1170_v57 = vmul.f32 %v4229_v27, %v1157_v55  ;;  %v1171_v63 = vmul.f32 %v4231_v54, %v1151_v16  ;;  %1287 = vperm.xlu1 %3314, %v4243_v11   ;;  %1291 = vperm.xlu2 %3315, %v4210_v33   ;;  %v4258_v16 = vld [vmem:[%s7164_s3 + $0x18] sm:$0xff]  ;;  %v4264_v55 = vld [vmem:[%s7164_s3 + $0x20] sm:$0xff] }
 0x234   : > { %v4247_v38 = vpop.permute.xlu1 %1038  ;;  %v4249_v20 = vpop.permute.xlu2 %1099 }
 0x235   : > { %7611 = vst [vmem:[#allocation97_spill] sm:$0xff] %v4247_v38 }
 0x236   : > { %7612 = vst [vmem:[#allocation98_spill] sm:$0xff] %v4249_v20  ;;  %1444 = vrot.lane.b32.xlu0 %v3674_v39, %s3419_s9 }
 0x238   : > { %v4253_v3 = vpop.permute.xlu0 %1144 }
 0x239   : > { %7613 = vst [vmem:[#allocation99_spill] sm:$0xff] %v4253_v3 }
 0x23a   : > { %1299 = vperm.xlu1 %3314, %v4258_v16   ;;  %1303 = vperm.xlu2 %3315, %v4264_v55  }
 0x23c   : > { %v4267_v10 = vpop.permute.xlu1 %1044  ;;  %v4269_v20 = vpop.permute.xlu2 %1130 }
 0x23d   : > { %7614 = vst [vmem:[#allocation100_spill] sm:$0xff] %v4267_v10 }
 0x23e   : > { %7615 = vst [vmem:[#allocation101_spill] sm:$0xff] %v4269_v20  ;;  %1450 = vrot.lane.b32.xlu0 %v3699_v52, %s3419_s9 }
 0x240   : > { %v1184_v3 = vpop.permute.xlu0 %1183 }
 0x241   : > { %v1206_v38 = vmul.f32 %v1184_v3, %v1170_v57  ;;  %v1207_v19 = vmul.f32 %v1184_v3, %v1171_v63 }
 0x242   : > { %1307 = vperm.xlu1 %3314, %v4276_v34   ;;  %1334 = vrot.lane.b32.xlu2 %v3651_v43, %s3417_s28 }
 0x243   : > { %v4279_v23 = vadd.f32 %v1206_v38, %v1114_v13  ;;  %v4281_v37 = vadd.f32 %v1207_v19, %v1115_v41  ;;  %3317 = vset.pattern.permute.xlu2 %v7617_v56 }
 0x244   : > { %v4285_v20 = vpop.permute.xlu1 %1087  ;;  %v4288_v57 = vpop.permute.xlu2 %1136 }
 0x245   : > { %7616 = vst [vmem:[#allocation102_spill] sm:$0xff] %v4285_v20  ;;  %v4346_v20 = vld [vmem:[%s7164_s3 + $0x10] sm:$0xff] }
 0x246   : > { %7618 = vst [vmem:[#allocation103_spill] sm:$0xff] %v4288_v57  ;;  %1456 = vrot.lane.b32.xlu0 %v3713_v47, %s3419_s9 }
 0x248   : > { %v4292_v63 = vpop.permute.xlu0 %1203 }
 0x249   : > { %7619 = vst [vmem:[#allocation104_spill] sm:$0xff] %v4292_v63 }
 0x24a   : > { %1338 = vrot.lane.b32.xlu1 %v3664_v0, %s3417_s28  ;;  %1340 = vrot.lane.b32.xlu2 %v3674_v39, %s3417_s28 }
 0x24b   : > { %3319 = vset.pattern.permute.xlu1 %v7617_v56 }
 0x24c   : > { %v4299_v19 = vpop.permute.xlu1 %1095  ;;  %v4301_v13 = vpop.permute.xlu2 %1142 }
 0x24d   : > { %7620 = vst [vmem:[#allocation105_spill] sm:$0xff] %v4299_v19 }
 0x24e   : > { %7621 = vst [vmem:[#allocation106_spill] sm:$0xff] %v4301_v13  ;;  %1495 = vperm.xlu0 %3320, %v4243_v11   ;;  %v7245_v13 = vmov 10  }
 0x250   : > { %v4304_v41 = vpop.permute.xlu0 %1234 }
 0x251   : > { %7622 = vst [vmem:[#allocation107_spill] sm:$0xff] %v4304_v41 }
 0x252   : > { %1344 = vrot.lane.b32.xlu1 %v3688_v25, %s3417_s28  ;;  %1346 = vrot.lane.b32.xlu2 %v3699_v52, %s3417_s28 }
 0x254   : > { %v1129_v38 = vpop.permute.xlu1 %1128  ;;  %v4310_v3 = vpop.permute.xlu2 %1148 }
 0x255   : > { %7623 = vst [vmem:[#allocation108_spill] sm:$0xff] %v4310_v3 }
 0x256   : > { %1515 = vperm.xlu0 %3320, %v4276_v34  }
 0x258   : > { %v4313_v56 = vpop.permute.xlu0 %1240 }
 0x259   : > { %7624 = vst [vmem:[#allocation109_spill] sm:$0xff] %v4313_v56 }
 0x25a   : > { %1350 = vrot.lane.b32.xlu1 %v3707_v24, %s3417_s28  ;;  %1352 = vrot.lane.b32.xlu2 %v3713_v47, %s3417_s28 }
 0x25c   : > { %v4319_v63 = vpop.permute.xlu1 %1134  ;;  %v4321_v41 = vpop.permute.xlu2 %1191 }
 0x25d   : > { %7625 = vst [vmem:[#allocation110_spill] sm:$0xff] %v4319_v63 }
 0x25e   : > { %7626 = vst [vmem:[#allocation111_spill] sm:$0xff] %v4321_v41  ;;  %1546 = vrot.lane.b32.xlu0 %v3664_v0, %s3421_s18 }
 0x25f   : > { %3325 = vset.pattern.permute.xlu0 %v7245_v13 }
 0x260   : > { %v4326_v19 = vpop.permute.xlu0 %1246 }
 0x261   : > { %7627 = vst [vmem:[#allocation112_spill] sm:$0xff] %v4326_v19 }
 0x262   : > { %1356 = vrot.lane.b32.xlu1 %v3719_v30, %s3417_s28  ;;  %1391 = vperm.xlu2 %3317, %v4243_v11   ;;  %s3428_s28 = smov 126  }
 0x264   : > { %v1141_v56 = vpop.permute.xlu1 %1140  ;;  %v4331_v57 = vpop.permute.xlu2 %1199 }
 0x265   : > { %7628 = vst [vmem:[#allocation113_spill] sm:$0xff] %v4331_v57  ;;  %v1152_v41 = vsel %vm1150_vm6, %v1129_v38, %v1141_v56  ;;  %v1158_v63 = vsel %vm1150_vm6, %v1141_v56, %v1129_v38 }
 0x266   : > { %v1172_v3 = vmul.f32 %v4229_v27, %v1158_v63  ;;  %v1173_v13 = vmul.f32 %v4231_v54, %v1152_v41  ;;  %1552 = vrot.lane.b32.xlu0 %v3688_v25, %s3421_s18 }
 0x268   : > { %v4341_v19 = vpop.permute.xlu0 %1252 }
 0x269   : > { %7629 = vst [vmem:[#allocation114_spill] sm:$0xff] %v4341_v19 }
 0x26a   : > { %1399 = vperm.xlu1 %3319, %v4346_v20   ;;  %1403 = vperm.xlu2 %3317, %v4258_v16  }
 0x26c   : > { %v4350_v57 = vpop.permute.xlu1 %1146  ;;  %v1233_v38 = vpop.permute.xlu2 %1232 }
 0x26d   : > { %7630 = vst [vmem:[#allocation115_spill] sm:$0xff] %v4350_v57 }
 0x26e   : > { %1558 = vrot.lane.b32.xlu0 %v3707_v24, %s3421_s18 }
 0x270   : > { %v4354_v63 = vpop.permute.xlu0 %1295 }
 0x271   : > { %7631 = vst [vmem:[#allocation116_spill] sm:$0xff] %v4354_v63  ;;  %v3204_v63 = vld [vmem:[%s7166_s5 + $0x7] ss:$8 sm:$0x3] }
 0x272   : > { %1407 = vperm.xlu1 %3319, %v4264_v55   ;;  %1411 = vperm.xlu2 %3317, %v4276_v34  }
 0x274   : > { %v1188_v41 = vpop.permute.xlu1 %1187  ;;  %v4358_v56 = vpop.permute.xlu2 %1238 }
 0x275   : > { %7632 = vst [vmem:[#allocation117_spill] sm:$0xff] %v4358_v56  ;;  %v1208_v19 = vmul.f32 %v1188_v41, %v1172_v3  ;;  %v1209_v54 = vmul.f32 %v1188_v41, %v1173_v13  ;;  %v7633_v13 = vmov 9  }
 0x276   : > { %1564 = vrot.lane.b32.xlu0 %v3719_v30, %s3421_s18 }
 0x277   : > { %v1220_v57 = vadd.f32 %v1208_v19, %v4189_v35  ;;  %v1221_v27 = vadd.f32 %v1209_v54, %v4191_v15  ;;  %v4378_v35 = vperm.slane %v3204_v63, 0  ;;  %v4380_v15 = vperm.slane %v3204_v63, 1 }
 0x278   : > { %v4364_v10 = vpop.permute.xlu0 %1336 }
 0x279   : > { %7635 = vst [vmem:[#allocation119_spill] sm:$0xff] %v4378_v35 }
 0x27a   : > { %1440 = vrot.lane.b32.xlu1 %v3618_v46, %s3419_s9  ;;  %1442 = vrot.lane.b32.xlu2 %v3664_v0, %s3419_s9  ;;  %7636 = vst [vmem:[#allocation120_spill] sm:$0xff] %v4380_v15 }
 0x27b   : > { %3321 = vset.pattern.permute.xlu1 %v7633_v13  ;;  %3322 = vset.pattern.permute.xlu2 %v7633_v13 }
 0x27c   : > { %v4374_v3 = vpop.permute.xlu1 %1195  ;;  %v1245_v54 = vpop.permute.xlu2 %1244 }
 0x27d   : > { %7634 = vst [vmem:[#allocation118_spill] sm:$0xff] %v4374_v3  ;;  %v1256_v19 = vsel %vm1254_vm7, %v1233_v38, %v1245_v54  ;;  %v1262_v41 = vsel %vm1254_vm7, %v1245_v54, %v1233_v38  ;;  %v7267_v38 = vmov 11  }
 0x27e   : > { %1607 = vperm.xlu0 %3325, %v4346_v20   ;;  %v1276_v56 = vmul.f32 %v4378_v35, %v1262_v41  ;;  %v1277_v3 = vmul.f32 %v4380_v15, %v1256_v19 }
 0x280   : > { %v4389_v13 = vpop.permute.xlu0 %1342 }
 0x281   : > { %7637 = vst [vmem:[#allocation121_spill] sm:$0xff] %v4389_v13 }
 0x282   : > { %1446 = vrot.lane.b32.xlu1 %v3685_v32, %s3419_s9  ;;  %1448 = vrot.lane.b32.xlu2 %v3688_v25, %s3419_s9 }
 0x284   : > { %v1231_v63 = vpop.permute.xlu1 %1230  ;;  %v4395_v7 = vpop.permute.xlu2 %1250 }
 0x285   : > { %7638 = vst [vmem:[#allocation122_spill] sm:$0xff] %v4395_v7 }
 0x286   : > { %1648 = vrot.lane.b32.xlu0 %v3618_v46, %s3423_s26 }
 0x287   : > { %3327 = vset.pattern.permute.xlu0 %v7267_v38 }
 0x288   : > { %v4400_v54 = vpop.permute.xlu0 %1348 }
 0x28a   : > { %1452 = vrot.lane.b32.xlu1 %v3705_v2, %s3419_s9  ;;  %1454 = vrot.lane.b32.xlu2 %v3707_v24, %s3419_s9 }
 0x28c   : > { %v4406_v19 = vpop.permute.xlu1 %1236  ;;  %v1292_v41 = vpop.permute.xlu2 %1291 }
 0x28d   : > { %7639 = vst [vmem:[#allocation123_spill] sm:$0xff] %v4406_v19  ;;  %v1312_v13 = vmul.f32 %v1292_v41, %v1276_v56  ;;  %v1313_v7 = vmul.f32 %v1292_v41, %v1277_v3 }
 0x28e   : > { %1654 = vrot.lane.b32.xlu0 %v3685_v32, %s3423_s26 }
 0x28f   : > { %v4410_v22 = vadd.f32 %v1312_v13, %v1220_v57  ;;  %v4412_v45 = vadd.f32 %v1313_v7, %v1221_v27 }
 0x290   : > { %v4414_v38 = vpop.permute.xlu0 %1354 }
 0x291   : > { %7640 = vst [vmem:[#allocation124_spill] sm:$0xff] %v4414_v38 }
 0x292   : > { %1458 = vrot.lane.b32.xlu1 %v3717_v51, %s3419_s9  ;;  %1460 = vrot.lane.b32.xlu2 %v3719_v30, %s3419_s9  ;;  %s3445_s9 = smov 95  }
 0x294   : > { %v1243_v42 = vpop.permute.xlu1 %1242  ;;  %v4420_v19 = vpop.permute.xlu2 %1303 }
 0x295   : > { %7641 = vst [vmem:[#allocation125_spill] sm:$0xff] %v4420_v19  ;;  %v1255_v56 = vsel %vm1254_vm7, %v1231_v63, %v1243_v42  ;;  %v1261_v57 = vsel %vm1254_vm7, %v1243_v42, %v1231_v63 }
 0x296   : > { %v1274_v7 = vmul.f32 %v4378_v35, %v1261_v57  ;;  %v1275_v27 = vmul.f32 %v4380_v15, %v1255_v56  ;;  %1660 = vrot.lane.b32.xlu0 %v3705_v2, %s3423_s26  ;;  %v7645_v35 = vmov 10  }
 0x298   : > { %v4430_v3 = vpop.permute.xlu0 %1395 }
 0x29a   : > { %1499 = vperm.xlu1 %3321, %v4210_v33   ;;  %1503 = vperm.xlu2 %3322, %v4346_v20  }
 0x29c   : > { %v4434_v13 = vpop.permute.xlu1 %1248  ;;  %v4436_v41 = vpop.permute.xlu2 %1334 }
 0x29d   : > { %7642 = vst [vmem:[#allocation126_spill] sm:$0xff] %v4434_v13 }
 0x29e   : > { %1666 = vrot.lane.b32.xlu0 %v3717_v51, %s3423_s26 }
 0x2a0   : > { %v4440_v42 = vpop.permute.xlu0 %1438 }
 0x2a2   : > { %1507 = vperm.xlu1 %3321, %v4258_v16   ;;  %1511 = vperm.xlu2 %3322, %v4264_v55  }
 0x2a4   : > { %v1288_v63 = vpop.permute.xlu1 %1287  ;;  %v4444_v56 = vpop.permute.xlu2 %1340 }
 0x2a5   : > { %7643 = vst [vmem:[#allocation127_spill] sm:$0xff] %v4444_v56  ;;  %v1310_v57 = vmul.f32 %v1288_v63, %v1274_v7  ;;  %v1311_v19 = vmul.f32 %v1288_v63, %v1275_v27 }
 0x2a6   : > { %1707 = vperm.xlu0 %3327, %v4210_v33  }
 0x2a7   : > { %v4448_v38 = vadd.f32 %v1310_v57, %v4279_v23  ;;  %v4451_v13 = vadd.f32 %v1311_v19, %v4281_v37  ;;  %v7278_v23 = vmov 12  }
 0x2a8   : > { %v4453_v15 = vpop.permute.xlu0 %1444 }
 0x2a9   : > { %7644 = vst [vmem:[#allocation128_spill] sm:$0xff] %v4453_v15 }
 0x2aa   : > { %1542 = vrot.lane.b32.xlu1 %v3651_v43, %s3421_s18  ;;  %1544 = vrot.lane.b32.xlu2 %v3618_v46, %s3421_s18 }
 0x2ab   : > { %3323 = vset.pattern.permute.xlu1 %v7645_v35  ;;  %3324 = vset.pattern.permute.xlu2 %v7645_v35 }
 0x2ac   : > { %v4460_v7 = vpop.permute.xlu1 %1299  ;;  %v4463_v27 = vpop.permute.xlu2 %1346 }
 0x2ad   : > { %7646 = vst [vmem:[#allocation129_spill] sm:$0xff] %v4460_v7 }
 0x2ae   : > { %3329 = vset.pattern.permute.xlu0 %v7278_v23 }
 0x2af   : > { %1770 = vperm.xlu0 %3329, %v4243_v11  }
 0x2b0   : > { %v4467_v37 = vpop.permute.xlu0 %1450 }
 0x2b1   : > { %v1469_v44 = vsel %vm1462_vm8, %v4467_v37, %v4440_v42 }
 0x2b2   : > { %1548 = vrot.lane.b32.xlu1 %v3674_v39, %s3421_s18  ;;  %1550 = vrot.lane.b32.xlu2 %v3685_v32, %s3421_s18 }
 0x2b4   : > { %v4473_v19 = vpop.permute.xlu1 %1307  ;;  %v4475_v63 = vpop.permute.xlu2 %1352 }
 0x2b5   : > { %7647 = vst [vmem:[#allocation130_spill] sm:$0xff] %v4473_v19 }
 0x2b6   : > { %7648 = vst [vmem:[#allocation131_spill] sm:$0xff] %v4475_v63  ;;  %v7285_v63 = vmov 13  }
 0x2b7   : > { %1790 = vperm.xlu0 %3329, %v4276_v34  }
 0x2b8   : > { %v4478_v35 = vpop.permute.xlu0 %1456 }
 0x2b9   : > { %7649 = vst [vmem:[#allocation132_spill] sm:$0xff] %v4478_v35 }
 0x2ba   : > { %1554 = vrot.lane.b32.xlu1 %v3699_v52, %s3421_s18  ;;  %1556 = vrot.lane.b32.xlu2 %v3705_v2, %s3421_s18 }
 0x2bc   : > { %v4484_v57 = vpop.permute.xlu1 %1338  ;;  %v4486_v23 = vpop.permute.xlu2 %1391 }
 0x2bd   : > { %7650 = vst [vmem:[#allocation133_spill] sm:$0xff] %v4484_v57 }
 0x2bf   : > { %1821 = vrot.lane.b32.xlu0 %v3664_v0, %s3426_s27 }
 0x2c0   : > { %v4490_v15 = vpop.permute.xlu0 %1495  ;;  %3334 = vset.pattern.permute.xlu0 %v7285_v63 }
 0x2c2   : > { %1560 = vrot.lane.b32.xlu1 %v3713_v47, %s3421_s18  ;;  %1562 = vrot.lane.b32.xlu2 %v3717_v51, %s3421_s18  ;;  %s3436_s18 = smov 111  }
 0x2c4   : > { %v4497_v35 = vpop.permute.xlu1 %1344  ;;  %v4499_v56 = vpop.permute.xlu2 %1403 }
 0x2c5   : > { %7651 = vst [vmem:[#allocation134_spill] sm:$0xff] %v4497_v35 }
 0x2c6   : > { %7652 = vst [vmem:[#allocation135_spill] sm:$0xff] %v4499_v56 }
 0x2c7   : > { %1827 = vrot.lane.b32.xlu0 %v3688_v25, %s3426_s27 }
 0x2c8   : > { %v4503_v7 = vpop.permute.xlu0 %1515 }
 0x2c9   : > { %7653 = vst [vmem:[#allocation136_spill] sm:$0xff] %v4503_v7 }
 0x2ca   : > { %1599 = vperm.xlu1 %3323, %v4243_v11   ;;  %1603 = vperm.xlu2 %3324, %v4210_v33  }
 0x2cc   : > { %v4507_v63 = vpop.permute.xlu1 %1350  ;;  %v4509_v19 = vpop.permute.xlu2 %1411 }
 0x2cd   : > { %7654 = vst [vmem:[#allocation137_spill] sm:$0xff] %v4507_v63 }
 0x2ce   : > { %7655 = vst [vmem:[#allocation138_spill] sm:$0xff] %v4509_v19 }
 0x2cf   : > { %1833 = vrot.lane.b32.xlu0 %v3707_v24, %s3426_s27 }
 0x2d0   : > { %v4513_v57 = vpop.permute.xlu0 %1546 }
 0x2d1   : > { %7656 = vst [vmem:[#allocation139_spill] sm:$0xff] %v4513_v57  ;;  %v7661_v57 = vmov 11  }
 0x2d2   : > { %1611 = vperm.xlu1 %3323, %v4258_v16   ;;  %1615 = vperm.xlu2 %3324, %v4264_v55  }
 0x2d4   : > { %v4517_v56 = vpop.permute.xlu1 %1356  ;;  %v4519_v7 = vpop.permute.xlu2 %1442 }
 0x2d5   : > { %7657 = vst [vmem:[#allocation140_spill] sm:$0xff] %v4517_v56 }
 0x2d6   : > { %7658 = vst [vmem:[#allocation141_spill] sm:$0xff] %v4519_v7 }
 0x2d7   : > { %1839 = vrot.lane.b32.xlu0 %v3719_v30, %s3426_s27 }
 0x2d8   : > { %v4523_v35 = vpop.permute.xlu0 %1552 }
 0x2d9   : > { %7659 = vst [vmem:[#allocation142_spill] sm:$0xff] %v4523_v35 }
 0x2da   : > { %1619 = vperm.xlu1 %3323, %v4276_v34   ;;  %1646 = vrot.lane.b32.xlu2 %v3651_v43, %s3423_s26 }
 0x2db   : > { %3326 = vset.pattern.permute.xlu2 %v7661_v57 }
 0x2dc   : > { %v4528_v19 = vpop.permute.xlu1 %1399  ;;  %v4531_v63 = vpop.permute.xlu2 %1448 }
 0x2dd   : > { %7660 = vst [vmem:[#allocation143_spill] sm:$0xff] %v4528_v19 }
 0x2de   : > { %7662 = vst [vmem:[#allocation144_spill] sm:$0xff] %v4531_v63  ;;  %v7302_v63 = vmov 14  }
 0x2df   : > { %1882 = vperm.xlu0 %3334, %v4346_v20  }
 0x2e0   : > { %v4534_v56 = vpop.permute.xlu0 %1558 }
 0x2e1   : > { %7663 = vst [vmem:[#allocation145_spill] sm:$0xff] %v4534_v56 }
 0x2e2   : > { %1650 = vrot.lane.b32.xlu1 %v3664_v0, %s3423_s26  ;;  %1652 = vrot.lane.b32.xlu2 %v3674_v39, %s3423_s26 }
 0x2e3   : > { %3328 = vset.pattern.permute.xlu1 %v7661_v57 }
 0x2e4   : > { %v4541_v35 = vpop.permute.xlu1 %1407  ;;  %v4543_v7 = vpop.permute.xlu2 %1454 }
 0x2e5   : > { %7664 = vst [vmem:[#allocation146_spill] sm:$0xff] %v4541_v35 }
 0x2e6   : > { %7665 = vst [vmem:[#allocation147_spill] sm:$0xff] %v4543_v7 }
 0x2e7   : > { %1923 = vrot.lane.b32.xlu0 %v3618_v46, %s3428_s28 }
 0x2e8   : > { %v4547_v19 = vpop.permute.xlu0 %1564  ;;  %3336 = vset.pattern.permute.xlu0 %v7302_v63 }
 0x2e9   : > { %7666 = vst [vmem:[#allocation148_spill] sm:$0xff] %v4547_v19 }
 0x2ea   : > { %1656 = vrot.lane.b32.xlu1 %v3688_v25, %s3423_s26  ;;  %1658 = vrot.lane.b32.xlu2 %v3699_v52, %s3423_s26 }
 0x2ec   : > { %v4554_v57 = vpop.permute.xlu1 %1440  ;;  %v4556_v35 = vpop.permute.xlu2 %1460 }
 0x2ed   : > { %7667 = vst [vmem:[#allocation149_spill] sm:$0xff] %v4556_v35 }
 0x2ef   : > { %1929 = vrot.lane.b32.xlu0 %v3685_v32, %s3428_s28 }
 0x2f0   : > { %v4560_v56 = vpop.permute.xlu0 %1607 }
 0x2f1   : > { %7668 = vst [vmem:[#allocation150_spill] sm:$0xff] %v4560_v56 }
 0x2f2   : > { %1662 = vrot.lane.b32.xlu1 %v3707_v24, %s3423_s26  ;;  %1664 = vrot.lane.b32.xlu2 %v3713_v47, %s3423_s26 }
 0x2f4   : > { %v4566_v63 = vpop.permute.xlu1 %1446  ;;  %v4568_v19 = vpop.permute.xlu2 %1503 }
 0x2f5   : > { %7669 = vst [vmem:[#allocation151_spill] sm:$0xff] %v4566_v63 }
 0x2f6   : > { %7670 = vst [vmem:[#allocation152_spill] sm:$0xff] %v4568_v19 }
 0x2f7   : > { %1935 = vrot.lane.b32.xlu0 %v3705_v2, %s3428_s28 }
 0x2f8   : > { %v4572_v7 = vpop.permute.xlu0 %1648 }
 0x2fa   : > { %1668 = vrot.lane.b32.xlu1 %v3719_v30, %s3423_s26  ;;  %1703 = vperm.xlu2 %3326, %v4243_v11  }
 0x2fc   : > { %v4577_v56 = vpop.permute.xlu1 %1452  ;;  %v4579_v35 = vpop.permute.xlu2 %1511 }
 0x2fd   : > { %7671 = vst [vmem:[#allocation153_spill] sm:$0xff] %v4579_v35 }
 0x2ff   : > { %1941 = vrot.lane.b32.xlu0 %v3717_v51, %s3428_s28 }
 0x300   : > { %v4583_v63 = vpop.permute.xlu0 %1654 }
 0x301   : > { %7672 = vst [vmem:[#allocation154_spill] sm:$0xff] %v4583_v63 }
 0x302   : > { %1711 = vperm.xlu1 %3328, %v4346_v20   ;;  %1715 = vperm.xlu2 %3326, %v4258_v16  }
 0x304   : > { %v4587_v19 = vpop.permute.xlu1 %1458  ;;  %v4589_v48 = vpop.permute.xlu2 %1544 }
 0x305   : > { %7673 = vst [vmem:[#allocation155_spill] sm:$0xff] %v4587_v19  ;;  %v7320_v19 = vmov 15  }
 0x307   : > { %1982 = vperm.xlu0 %3336, %v4210_v33  }
 0x308   : > { %v4592_v14 = vpop.permute.xlu0 %1660 }
 0x30a   : > { %1719 = vperm.xlu1 %3328, %v4264_v55   ;;  %1723 = vperm.xlu2 %3326, %v4276_v34  }
 0x30c   : > { %v4596_v35 = vpop.permute.xlu1 %1499  ;;  %v4598_v6 = vpop.permute.xlu2 %1550 }
 0x30d   : > { %7674 = vst [vmem:[#allocation156_spill] sm:$0xff] %v4598_v6 }
 0x30f   : > { %2025 = vrot.lane.b32.xlu0 %v3651_v43, %s3430_s29 }
 0x310   : > { %v4602_v63 = vpop.permute.xlu0 %1666  ;;  %3338 = vset.pattern.permute.xlu0 %v7320_v19 }
 0x311   : > { %7675 = vst [vmem:[#allocation157_spill] sm:$0xff] %v4602_v63 }
 0x312   : > { %3330 = vset.pattern.permute.xlu1 %v7676_v21  ;;  %3331 = vset.pattern.permute.xlu2 %v7676_v21 }
 0x313   : > { %1774 = vperm.xlu1 %3330, %v4210_v33   ;;  %1778 = vperm.xlu2 %3331, %v4346_v20  }
 0x314   : > { %v4609_v5 = vpop.permute.xlu1 %1507  ;;  %v4611_v6 = vpop.permute.xlu2 %1556 }
 0x315   : > { %7677 = vst [vmem:[#allocation158_spill] sm:$0xff] %v4609_v5 }
 0x317   : > { %2031 = vrot.lane.b32.xlu0 %v3674_v39, %s3430_s29 }
 0x318   : > { %v4615_v36 = vpop.permute.xlu0 %1707 }
 0x31b   : > { %1782 = vperm.xlu1 %3330, %v4258_v16   ;;  %1786 = vperm.xlu2 %3331, %v4264_v55  }
 0x31c   : > { %v4619_v19 = vpop.permute.xlu1 %1542  ;;  %v4621_v21 = vpop.permute.xlu2 %1562 }
 0x31d   : > { %7678 = vst [vmem:[#allocation159_spill] sm:$0xff] %v4621_v21 }
 0x31f   : > { %2037 = vrot.lane.b32.xlu0 %v3699_v52, %s3430_s29 }
 0x321   : > { %v4625_v63 = vpop.permute.xlu0 %1770 }
 0x323   : > { %1817 = vrot.lane.b32.xlu1 %v3651_v43, %s3426_s27  ;;  %1819 = vrot.lane.b32.xlu2 %v3618_v46, %s3426_s27 }
 0x324   : > { %v4631_v5 = vpop.permute.xlu1 %1548  ;;  %3332 = vset.pattern.permute.xlu1 %v7680_v9  ;;  %v4634_v59 = vpop.permute.xlu2 %1603  ;;  %3333 = vset.pattern.permute.xlu2 %v7680_v9 }
 0x325   : > { %7679 = vst [vmem:[#allocation160_spill] sm:$0xff] %v4631_v5 }
 0x327   : > { %2043 = vrot.lane.b32.xlu0 %v3713_v47, %s3430_s29 }
 0x329   : > { %v4639_v21 = vpop.permute.xlu0 %1790 }
 0x32a   : > { %7681 = vst [vmem:[#allocation161_spill] sm:$0xff] %v4639_v21 }
 0x32b   : > { %1823 = vrot.lane.b32.xlu1 %v3674_v39, %s3426_s27  ;;  %1825 = vrot.lane.b32.xlu2 %v3685_v32, %s3426_s27 }
 0x32c   : > { %v1555_v49 = vpop.permute.xlu1 %1554  ;;  %v4645_v29 = vpop.permute.xlu2 %1615 }
 0x32d   : > { %7682 = vst [vmem:[#allocation162_spill] sm:$0xff] %v4645_v29 }
 0x32f   : > { %2082 = vperm.xlu0 %3338, %v4243_v11  }
 0x331   : > { %v4648_v5 = vpop.permute.xlu0 %1821 }
 0x332   : > { %7683 = vst [vmem:[#allocation163_spill] sm:$0xff] %v4648_v5 }
 0x333   : > { %1829 = vrot.lane.b32.xlu1 %v3699_v52, %s3426_s27  ;;  %1831 = vrot.lane.b32.xlu2 %v3705_v2, %s3426_s27 }
 0x334   : > { %v4654_v9 = vpop.permute.xlu1 %1560  ;;  %v1647_v21 = vpop.permute.xlu2 %1646 }
 0x335   : > { %7684 = vst [vmem:[#allocation164_spill] sm:$0xff] %v4654_v9 }
 0x337   : > { %2102 = vperm.xlu0 %3338, %v4276_v34  }
 0x339   : > { %v4657_v61 = vpop.permute.xlu0 %1827 }
 0x33a   : > { %7685 = vst [vmem:[#allocation165_spill] sm:$0xff] %v4657_v61 }
 0x33b   : > { %1835 = vrot.lane.b32.xlu1 %v3713_v47, %s3426_s27  ;;  %1837 = vrot.lane.b32.xlu2 %v3717_v51, %s3426_s27  ;;  %s254_s27 = scalar_lea.vmem %s7167_s6, %s3192_s21 }
 0x33c   : > { %v1600_v29 = vpop.permute.xlu1 %1599  ;;  %v4663_v5 = vpop.permute.xlu2 %1652 }
 0x33d   : > { %7686 = vst [vmem:[#allocation166_spill] sm:$0xff] %v4663_v5 }
 0x33f   : > { %2133 = vrot.lane.b32.xlu0 %v3664_v0, %s3432_s30 }
 0x340   : > { %3343 = vset.pattern.permute.xlu0 %v7342_v12  ;;  %v1359_v12 = vsel %vm1358_vm9, %v4436_v41, %v4463_v27 }
 0x341   : > { %v4668_v9 = vpop.permute.xlu0 %1833  ;;  %v1379_v50 = vmul.f32 %v4696_v4, %v1359_v12 }
 0x342   : > { %7687 = vst [vmem:[#allocation167_spill] sm:$0xff] %v4668_v9  ;;  %v4692_v9 = vperm.slane %v3206_v58, 0 }
 0x343   : > { %1874 = vperm.xlu1 %3332, %v4243_v11   ;;  %1878 = vperm.xlu2 %3333, %v4210_v33   ;;  %v1415_v58 = vmul.f32 %v4486_v23, %v1379_v50  ;;  %v3208_v50 = vld [vmem:[%s7166_s5 + $0x13] ss:$8 sm:$0x3] }
 0x344   : > { %v4672_v61 = vpop.permute.xlu1 %1611  ;;  %v1659_v5 = vpop.permute.xlu2 %1658  ;;  %7689 = vst [vmem:[#allocation169_spill] sm:$0xff] %v4692_v9  ;;  %v4759_v8 = vperm.slane %v3208_v50, 1 }
 0x345   : > { %7688 = vst [vmem:[#allocation168_spill] sm:$0xff] %v4672_v61  ;;  %v1365_v61 = vsel %vm1358_vm9, %v4463_v27, %v4436_v41  ;;  %v1463_v41 = vsel %vm1462_vm8, %v4440_v42, %v4467_v37  ;;  %v1482_v27 = vmul.f32 %v4692_v9, %v1469_v44  ;;  %v1567_v42 = vsel %vm1566_vm10, %v4619_v19, %v1555_v49 }
 0x346   : > { %v1378_v18 = vmul.f32 %v4694_v17, %v1365_v61  ;;  %v1573_v37 = vsel %vm1566_vm10, %v1555_v49, %v4619_v19  ;;  %v1483_v44 = vmul.f32 %v4704_v40, %v1463_v41  ;;  %v3209_v49 = vld [vmem:[%s7166_s5 + $0x14] ss:$8 sm:$0x3]  ;;  %v1587_v41 = vmul.f32 %v4734_v26, %v1567_v42  ;;  %7700 = vst [vmem:[#allocation180_spill] sm:$0xff] %v4759_v8 }
 0x347   : > { %2139 = vrot.lane.b32.xlu0 %v3688_v25, %s3432_s30  ;;  %v1586_v19 = vmul.f32 %v4732_v53, %v1573_v37  ;;  %v4761_v1 = vperm.slane %v3209_v49, 0  ;;  %v4763_v42 = vperm.slane %v3209_v49, 1  ;;  %v7704_v49 = vmov 14  }
 0x348   : > { %v1414_v12 = vmul.f32 %v4486_v23, %v1378_v18  ;;  %v1518_v18 = vmul.f32 %v4490_v15, %v1482_v27  ;;  %v1519_v23 = vmul.f32 %v4490_v15, %v1483_v44  ;;  %v1427_v27 = vadd.f32 %v1415_v58, %v4451_v13 }
 0x349   : > { %v4702_v62 = vpop.permute.xlu0 %1839  ;;  %v1677_v15 = vsel %vm7400_vm11, %v1659_v5, %v1647_v21  ;;  %v1622_v31 = vmul.f32 %v1600_v29, %v1586_v19  ;;  %v1623_v37 = vmul.f32 %v1600_v29, %v1587_v41  ;;  %7701 = vst [vmem:[#allocation181_spill] sm:$0xff] %v4761_v1  ;;  %v1758_v29 = vmul.f32 %v4763_v42, %v3699_v52 }
 0x34a   : > { %7692 = vst [vmem:[#allocation172_spill] sm:$0xff] %v4702_v62  ;;  %v1426_v60 = vadd.f32 %v1414_v12, %v4448_v38  ;;  %v1531_v13 = vadd.f32 %v1519_v23, %v1427_v27  ;;  %v1757_v58 = vmul.f32 %v4761_v1, %v3651_v43 }
 0x34b   : > { %1886 = vperm.xlu1 %3332, %v4258_v16   ;;  %1890 = vperm.xlu2 %3333, %v4264_v55   ;;  %7702 = vst [vmem:[#allocation182_spill] sm:$0xff] %v4763_v42 }
 0x34c   : > { %v4719_v61 = vpop.permute.xlu1 %1619  ;;  %v4729_v62 = vpop.permute.xlu2 %1664  ;;  %v1530_v38 = vadd.f32 %v1518_v18, %v1426_v60  ;;  %v1635_v23 = vadd.f32 %v1623_v37, %v1531_v13  ;;  %v1794_v60 = vmul.f32 %v4625_v63, %v1758_v29 }
 0x34d   : > { %7694 = vst [vmem:[#allocation174_spill] sm:$0xff] %v4719_v61  ;;  %v4757_v61 = vperm.slane %v3208_v50, 0 }
 0x34e   : > { %7695 = vst [vmem:[#allocation175_spill] sm:$0xff] %v4729_v62  ;;  %v1671_v62 = vsel %vm7400_vm11, %v1647_v21, %v1659_v5  ;;  %v1634_v18 = vadd.f32 %v1622_v31, %v1530_v38 }
 0x34f   : > { %2145 = vrot.lane.b32.xlu0 %v3707_v24, %s3432_s30  ;;  %7699 = vst [vmem:[#allocation179_spill] sm:$0xff] %v4757_v61  ;;  %v1690_v12 = vmul.f32 %v4757_v61, %v1677_v15  ;;  %v1691_v5 = vmul.f32 %v4759_v8, %v1671_v62  ;;  %v1793_v62 = vmul.f32 %v4625_v63, %v1757_v58 }
 0x351   : > { %v4755_v44 = vpop.permute.xlu0 %1882 }
 0x352   : > { %7698 = vst [vmem:[#allocation178_spill] sm:$0xff] %v4755_v44 }
 0x353   : > { %1894 = vperm.xlu1 %3332, %v4276_v34   ;;  %1921 = vrot.lane.b32.xlu2 %v3651_v43, %s3428_s28 }
 0x354   : > { %v4770_v21 = vpop.permute.xlu1 %1650  ;;  %v1704_v50 = vpop.permute.xlu2 %1703  ;;  %3335 = vset.pattern.permute.xlu2 %v7704_v49 }
 0x355   : > { %7703 = vst [vmem:[#allocation183_spill] sm:$0xff] %v4770_v21  ;;  %v1726_v19 = vmul.f32 %v1704_v50, %v1690_v12  ;;  %v1727_v41 = vmul.f32 %v1704_v50, %v1691_v5  ;;  %v7367_v12 = vmov 17  }
 0x357   : > { %2151 = vrot.lane.b32.xlu0 %v3719_v30, %s3432_s30  ;;  %v1738_v27 = vadd.f32 %v1726_v19, %v1634_v18  ;;  %v1739_v15 = vadd.f32 %v1727_v41, %v1635_v23  ;;  %v1360_v18 = vsel %vm1358_vm9, %v4364_v10, %v4400_v54  ;;  %v1366_v23 = vsel %vm1358_vm9, %v4400_v54, %v4364_v10 }
 0x358   : > { %v1464_v41 = vsel %vm1462_vm8, %v4554_v57, %v4577_v56  ;;  %v1568_v10 = vsel %vm1566_vm10, %v4589_v48, %v4611_v6  ;;  %v1574_v54 = vsel %vm1566_vm10, %v4611_v6, %v4589_v48 }
 0x359   : > { %v4781_v44 = vpop.permute.xlu0 %1923  ;;  %v4783_v21 = vadd.f32 %v1793_v62, %v1738_v27  ;;  %v4785_v43 = vadd.f32 %v1794_v60, %v1739_v15  ;;  %v1470_v62 = vsel %vm1462_vm8, %v4577_v56, %v4554_v57  ;;  %v1380_v60 = vmul.f32 %v4694_v17, %v1366_v23 }
 0x35a   : > { %v1381_v27 = vmul.f32 %v4696_v4, %v1360_v18  ;;  %v1484_v23 = vmul.f32 %v4692_v9, %v1470_v62  ;;  %v1485_v18 = vmul.f32 %v4704_v40, %v1464_v41  ;;  %v1589_v6 = vmul.f32 %v4734_v26, %v1568_v10  ;;  %v7780_v26 = vld [vmem:[#allocation33_spill] sm:$0xff] }
 0x35b   : > { %1925 = vrot.lane.b32.xlu1 %v3664_v0, %s3428_s28  ;;  %1927 = vrot.lane.b32.xlu2 %v3674_v39, %s3428_s28  ;;  %v1416_v56 = vmul.f32 %v4430_v3, %v1380_v60  ;;  %v1678_v10 = vsel %vm7400_vm11, %v4592_v14, %v4572_v7  ;;  %v5272_v4 = vmul.f32 %v4761_v1, %v3664_v0 }
 0x35c   : > { %v4791_v31 = vpop.permute.xlu1 %1656  ;;  %3337 = vset.pattern.permute.xlu1 %v7704_v49  ;;  %v4794_v37 = vpop.permute.xlu2 %1715  ;;  %v1417_v57 = vmul.f32 %v4430_v3, %v1381_v27  ;;  %v1625_v60 = vmul.f32 %v4634_v59, %v1589_v6 }
 0x35d   : > { %7705 = vst [vmem:[#allocation184_spill] sm:$0xff] %v4791_v31  ;;  %v1428_v3 = vadd.f32 %v1416_v56, %v4410_v22 }
 0x35e   : > { %7706 = vst [vmem:[#allocation185_spill] sm:$0xff] %v4794_v37  ;;  %v1429_v62 = vadd.f32 %v1417_v57, %v4412_v45 }
 0x35f   : > { %2194 = vperm.xlu0 %3343, %v4346_v20  }
 0x361   : > { %v4797_v63 = vpop.permute.xlu0 %1929 }
 0x362   : > { %7707 = vst [vmem:[#allocation186_spill] sm:$0xff] %v4797_v63  ;;  %v1588_v63 = vmul.f32 %v4732_v53, %v1574_v54 }
 0x363   : > { %1931 = vrot.lane.b32.xlu1 %v3688_v25, %s3428_s28  ;;  %1933 = vrot.lane.b32.xlu2 %v3699_v52, %s3428_s28 }
 0x364   : > { %v4803_v38 = vpop.permute.xlu1 %1662  ;;  %v4805_v13 = vpop.permute.xlu2 %1723  ;;  %v1624_v41 = vmul.f32 %v4634_v59, %v1588_v63  ;;  %v1692_v59 = vmul.f32 %v4757_v61, %v1678_v10  ;;  %v7718_v10 = vmov 15  }
 0x365   : > { %7708 = vst [vmem:[#allocation187_spill] sm:$0xff] %v4803_v38 }
 0x366   : > { %7709 = vst [vmem:[#allocation188_spill] sm:$0xff] %v4805_v13 }
 0x367   : > { %2235 = vrot.lane.b32.xlu0 %v3618_v46, %s3434_s17 }
 0x368   : > { %3345 = vset.pattern.permute.xlu0 %v7367_v12  ;;  %v1520_v12 = vmul.f32 %v4596_v35, %v1484_v23  ;;  %v1728_v23 = vmul.f32 %v4615_v36, %v1692_v59  ;;  %v7720_v59 = vld [vmem:[#allocation5_spill] sm:$0xff] }
 0x369   : > { %v4810_v5 = vpop.permute.xlu0 %1935 }
 0x36a   : > { %v1532_v45 = vadd.f32 %v1520_v12, %v1428_v3 }
 0x36b   : > { %1937 = vrot.lane.b32.xlu1 %v3707_v24, %s3428_s28  ;;  %1939 = vrot.lane.b32.xlu2 %v3713_v47, %s3428_s28 }
 0x36c   : > { %v4816_v29 = vpop.permute.xlu1 %1668  ;;  %v1636_v56 = vadd.f32 %v1624_v41, %v1532_v45 }
 0x36d   : > { %7710 = vst [vmem:[#allocation189_spill] sm:$0xff] %v4816_v29  ;;  %v4818_v58 = vpop.permute.xlu2 %1778  ;;  %v7778_v29 = vld [vmem:[#allocation31_spill] sm:$0xff] }
 0x36e   : > { %7711 = vst [vmem:[#allocation190_spill] sm:$0xff] %v4818_v58  ;;  %v1740_v6 = vadd.f32 %v1728_v23, %v1636_v56 }
 0x36f   : > { %2241 = vrot.lane.b32.xlu0 %v3685_v32, %s3434_s17 }
 0x371   : > { %v4822_v50 = vpop.permute.xlu0 %1941 }
 0x372   : > { %7712 = vst [vmem:[#allocation191_spill] sm:$0xff] %v4822_v50 }
 0x373   : > { %1943 = vrot.lane.b32.xlu1 %v3719_v30, %s3428_s28  ;;  %1978 = vperm.xlu2 %3335, %v4243_v11  }
 0x374   : > { %v4827_v49 = vpop.permute.xlu1 %1711 }
 0x375   : > { %7713 = vst [vmem:[#allocation192_spill] sm:$0xff] %v4827_v49  ;;  %v4837_v19 = vpop.permute.xlu2 %1786 }
 0x376   : > { %7714 = vst [vmem:[#allocation193_spill] sm:$0xff] %v4837_v19  ;;  %v1521_v19 = vmul.f32 %v4596_v35, %v1485_v18  ;;  %v1672_v35 = vsel %vm7400_vm11, %v4572_v7, %v4592_v14  ;;  %v1759_v14 = vmul.f32 %v4761_v1, %v3618_v46  ;;  %v1760_v7 = vmul.f32 %v4763_v42, %v3705_v2 }
 0x377   : > { %2247 = vrot.lane.b32.xlu0 %v3705_v2, %s3434_s17  ;;  %v1693_v54 = vmul.f32 %v4759_v8, %v1672_v35  ;;  %vm7416_vm11 = vcmp.lt.s32.totalorder %v3785_v28, 112 }
 0x378   : > { %v1533_v22 = vadd.f32 %v1521_v19, %v1429_v62 }
 0x379   : > { %v4859_v15 = vpop.permute.xlu0 %1982  ;;  %v1729_v18 = vmul.f32 %v4615_v36, %v1693_v54  ;;  %v7371_v54 = vmov 18  }
 0x37a   : > { %v1637_v57 = vadd.f32 %v1625_v60, %v1533_v22 }
 0x37b   : > { %1986 = vperm.xlu1 %3337, %v4346_v20   ;;  %1990 = vperm.xlu2 %3335, %v4258_v16  }
 0x37c   : > { %v4871_v48 = vpop.permute.xlu1 %1719  ;;  %v1741_v3 = vadd.f32 %v1729_v18, %v1637_v57 }
 0x37d   : > { %7715 = vst [vmem:[#allocation194_spill] sm:$0xff] %v4871_v48  ;;  %v4877_v27 = vpop.permute.xlu2 %1819 }
 0x37f   : > { %2253 = vrot.lane.b32.xlu0 %v3717_v51, %s3434_s17 }
 0x381   : > { %v4889_v63 = vpop.permute.xlu0 %2025 }
 0x383   : > { %1994 = vperm.xlu1 %3337, %v4264_v55   ;;  %1998 = vperm.xlu2 %3335, %v4276_v34  }
 0x385   : > { %v1775_v12 = vpop.permute.xlu1 %1774  ;;  %v4901_v19 = vpop.permute.xlu2 %1825 }
 0x386   : > { %7716 = vst [vmem:[#allocation195_spill] sm:$0xff] %v4901_v19  ;;  %v1795_v62 = vmul.f32 %v1775_v12, %v1759_v14  ;;  %v1796_v41 = vmul.f32 %v1775_v12, %v1760_v7 }
 0x387   : > { %2294 = vperm.xlu0 %3345, %v4210_v33  }
 0x388   : > { %v4904_v60 = vadd.f32 %v1795_v62, %v1740_v6  ;;  %v4906_v36 = vadd.f32 %v1796_v41, %v1741_v3 }
 0x389   : > { %v4908_v35 = vpop.permute.xlu0 %2031 }
 0x38a   : > { %7717 = vst [vmem:[#allocation196_spill] sm:$0xff] %v4908_v35 }
 0x38b   : > { %2027 = vrot.lane.b32.xlu1 %v3618_v46, %s3430_s29  ;;  %2029 = vrot.lane.b32.xlu2 %v3664_v0, %s3430_s29 }
 0x38c   : > { %3339 = vset.pattern.permute.xlu1 %v7718_v10  ;;  %3340 = vset.pattern.permute.xlu2 %v7718_v10 }
 0x38d   : > { %v4915_v45 = vpop.permute.xlu1 %1782  ;;  %v4918_v22 = vpop.permute.xlu2 %1831 }
 0x38e   : > { %7719 = vst [vmem:[#allocation197_spill] sm:$0xff] %v4915_v45 }
 0x38f   : > { %2337 = vrot.lane.b32.xlu0 %v7720_v59, %s3436_s18 }
 0x390   : > { %3347 = vset.pattern.permute.xlu0 %v7371_v54 }
 0x391   : > { %v4923_v56 = vpop.permute.xlu0 %2037 }
 0x393   : > { %2033 = vrot.lane.b32.xlu1 %v3685_v32, %s3430_s29  ;;  %2035 = vrot.lane.b32.xlu2 %v3688_v25, %s3430_s29 }
 0x395   : > { %v1818_v57 = vpop.permute.xlu1 %1817  ;;  %v4929_v23 = vpop.permute.xlu2 %1837 }
 0x396   : > { %7721 = vst [vmem:[#allocation198_spill] sm:$0xff] %v4929_v23 }
 0x397   : > { %2343 = vrot.lane.b32.xlu0 %v3674_v39, %s3436_s18 }
 0x399   : > { %v4933_v18 = vpop.permute.xlu0 %2043 }
 0x39a   : > { %7722 = vst [vmem:[#allocation199_spill] sm:$0xff] %v4933_v18 }
 0x39b   : > { %2039 = vrot.lane.b32.xlu1 %v3705_v2, %s3430_s29  ;;  %2041 = vrot.lane.b32.xlu2 %v3707_v24, %s3430_s29 }
 0x39d   : > { %v4939_v14 = vpop.permute.xlu1 %1823  ;;  %v4941_v7 = vpop.permute.xlu2 %1878 }
 0x39e   : > { %7723 = vst [vmem:[#allocation200_spill] sm:$0xff] %v4939_v14 }
 0x39f   : > { %2349 = vrot.lane.b32.xlu0 %v3699_v52, %s3436_s18 }
 0x3a1   : > { %v4945_v12 = vpop.permute.xlu0 %2082 }
 0x3a3   : > { %2045 = vrot.lane.b32.xlu1 %v3717_v51, %s3430_s29  ;;  %2047 = vrot.lane.b32.xlu2 %v3719_v30, %s3430_s29 }
 0x3a5   : > { %v1830_v6 = vpop.permute.xlu1 %1829  ;;  %v4951_v3 = vpop.permute.xlu2 %1890 }
 0x3a6   : > { %7724 = vst [vmem:[#allocation201_spill] sm:$0xff] %v4951_v3  ;;  %v1848_v45 = vsel %vm1841_vm13, %v1830_v6, %v1818_v57 }
 0x3a7   : > { %2355 = vrot.lane.b32.xlu0 %v3713_v47, %s3436_s18 }
 0x3a9   : > { %v4955_v62 = vpop.permute.xlu0 %2102 }
 0x3aa   : > { %7725 = vst [vmem:[#allocation202_spill] sm:$0xff] %v4955_v62 }
 0x3ab   : > { %2086 = vperm.xlu1 %3339, %v4210_v33   ;;  %2090 = vperm.xlu2 %3340, %v4346_v20   ;;  %v7728_v33 = vmov 16  }
 0x3ad   : > { %v4959_v41 = vpop.permute.xlu1 %1835  ;;  %v1922_v10 = vpop.permute.xlu2 %1921 }
 0x3ae   : > { %7726 = vst [vmem:[#allocation203_spill] sm:$0xff] %v4959_v41 }
 0x3af   : > { %2394 = vperm.xlu0 %3347, %v4243_v11  }
 0x3b1   : > { %v2134_v54 = vpop.permute.xlu0 %2133 }
 0x3b3   : > { %2094 = vperm.xlu1 %3339, %v4258_v16   ;;  %2098 = vperm.xlu2 %3340, %v4264_v55  }
 0x3b5   : > { %v1875_v35 = vpop.permute.xlu1 %1874  ;;  %v4964_v18 = vpop.permute.xlu2 %1927 }
 0x3b6   : > { %7727 = vst [vmem:[#allocation204_spill] sm:$0xff] %v4964_v18 }
 0x3b7   : > { %2414 = vperm.xlu0 %3347, %v4276_v34   ;;  %v7378_v34 = vmov 19  }
 0x3b9   : > { %v2140_v14 = vpop.permute.xlu0 %2139 }
 0x3bb   : > { %2129 = vrot.lane.b32.xlu1 %v7720_v59, %s3432_s30  ;;  %2131 = vrot.lane.b32.xlu2 %v3618_v46, %s3432_s30 }
 0x3bc   : > { %3341 = vset.pattern.permute.xlu1 %v7728_v33  ;;  %3342 = vset.pattern.permute.xlu2 %v7728_v33  ;;  %v3210_v33 = vld [vmem:[%s7166_s5 + $0x15] ss:$8 sm:$0x3] }
 0x3bd   : > { %v4972_v11 = vpop.permute.xlu1 %1886  ;;  %v1934_v16 = vpop.permute.xlu2 %1933  ;;  %v5005_v50 = vperm.slane %v3210_v33, 0  ;;  %v5007_v19 = vperm.slane %v3210_v33, 1 }
 0x3be   : > { %7729 = vst [vmem:[#allocation205_spill] sm:$0xff] %v4972_v11 }
 0x3bf   : > { %2445 = vrot.lane.b32.xlu0 %v3664_v0, %s3438_s19  ;;  %7732 = vst [vmem:[#allocation208_spill] sm:$0xff] %v5005_v50  ;;  %v1862_v33 = vmul.f32 %v5007_v19, %v1848_v45  ;;  %v2050_v45 = vsel %vm2049_vm15, %v4889_v63, %v4923_v56 }
 0x3c0   : > { %3352 = vset.pattern.permute.xlu0 %v7378_v34  ;;  %v3211_v34 = vld [vmem:[%s7166_s5 + $0x16] ss:$8 sm:$0x3]  ;;  %7733 = vst [vmem:[#allocation209_spill] sm:$0xff] %v5007_v19 }
 0x3c1   : > { %v2146_v55 = vpop.permute.xlu0 %2145  ;;  %v5012_v23 = vperm.slane %v3211_v34, 0  ;;  %v5014_v37 = vperm.slane %v3211_v34, 1  ;;  %v1952_v34 = vsel %vm1945_vm14, %v1934_v16, %v1922_v10 }
 0x3c2   : > { %v2156_v18 = vsel %vm2153_vm12, %v2134_v54, %v2146_v55  ;;  %v2162_v41 = vsel %vm2153_vm12, %v2146_v55, %v2134_v54  ;;  %v3212_v54 = vld [vmem:[%s7166_s5 + $0x17] ss:$8 sm:$0x3]  ;;  %v1842_v55 = vsel %vm1841_vm13, %v1818_v57, %v1830_v6 }
 0x3c3   : > { %2135 = vrot.lane.b32.xlu1 %v3674_v39, %s3432_s30  ;;  %2137 = vrot.lane.b32.xlu2 %v3685_v32, %s3432_s30  ;;  %v5017_v48 = vperm.slane %v3212_v54, 0  ;;  %v5019_v57 = vperm.slane %v3212_v54, 1  ;;  %v1861_v6 = vmul.f32 %v5005_v50, %v1842_v55  ;;  %v2056_v55 = vsel %vm2049_vm15, %v4923_v56, %v4889_v63 }
 0x3c5   : > { %v4994_v11 = vpop.permute.xlu1 %1894  ;;  %v5003_v3 = vpop.permute.xlu2 %1939  ;;  %v1897_v49 = vmul.f32 %v1875_v35, %v1861_v6  ;;  %v2069_v63 = vmul.f32 %v5017_v48, %v2050_v45 }
 0x3c6   : > { %7730 = vst [vmem:[#allocation206_spill] sm:$0xff] %v4994_v11  ;;  %v1946_v11 = vsel %vm1945_vm14, %v1922_v10, %v1934_v16  ;;  %v1898_v10 = vmul.f32 %v1875_v35, %v1862_v33  ;;  %v2070_v35 = vmul.f32 %v5019_v57, %v2056_v55 }
 0x3c7   : > { %7731 = vst [vmem:[#allocation207_spill] sm:$0xff] %v5003_v3  ;;  %2451 = vrot.lane.b32.xlu0 %v3688_v25, %s3438_s19  ;;  %v3213_v3 = vld [vmem:[%s7166_s5 + $0x20] ss:$8 sm:$0x3]  ;;  %v1909_v6 = vadd.f32 %v1897_v49, %v4783_v21 }
 0x3c8   : > { %v5048_v16 = vperm.slane %v3213_v3, 0  ;;  %v1910_v33 = vadd.f32 %v1898_v10, %v4785_v43  ;;  %v2106_v45 = vmul.f32 %v4945_v12, %v2070_v35 }
 0x3c9   : > { %v2152_v62 = vpop.permute.xlu0 %2151 }
 0x3ca   : > { %v5032_v58 = vsel %vm2153_vm12, %v2140_v14, %v2152_v62  ;;  %v5036_v54 = vsel %vm2153_vm12, %v2152_v62, %v2140_v14  ;;  %7736 = vst [vmem:[#allocation212_spill] sm:$0xff] %v5048_v16  ;;  %v1965_v14 = vmul.f32 %v5012_v23, %v1946_v11  ;;  %v1966_v62 = vmul.f32 %v5014_v37, %v1952_v34 }
 0x3cb   : > { %7734 = vst [vmem:[#allocation210_spill] sm:$0xff] %v5032_v58  ;;  %2141 = vrot.lane.b32.xlu1 %v3699_v52, %s3432_s30  ;;  %v5050_v58 = vperm.slane %v3213_v3, 1  ;;  %2143 = vrot.lane.b32.xlu2 %v3705_v2, %s3432_s30  ;;  %v2177_v11 = vmul.f32 %v5048_v16, %v2156_v18  ;;  %v7820_v16 = vld [vmem:[#allocation53_spill] sm:$0xff] }
 0x3cc   : > { %7735 = vst [vmem:[#allocation211_spill] sm:$0xff] %v5036_v54 }
 0x3cd   : > { %7737 = vst [vmem:[#allocation213_spill] sm:$0xff] %v5050_v58  ;;  %v5056_v54 = vpop.permute.xlu1 %1925  ;;  %v1979_v56 = vpop.permute.xlu2 %1978  ;;  %v2178_v34 = vmul.f32 %v5050_v58, %v2162_v41 }
 0x3ce   : > { %7738 = vst [vmem:[#allocation214_spill] sm:$0xff] %v5056_v54  ;;  %v2001_v3 = vmul.f32 %v1979_v56, %v1965_v14  ;;  %v2002_v13 = vmul.f32 %v1979_v56, %v1966_v62  ;;  %v2105_v54 = vmul.f32 %v4945_v12, %v2069_v63  ;;  %v5106_v14 = vld [vmem:[%s7164_s3 + $0x18] sm:$0xff]  ;;  %v5112_v62 = vld [vmem:[%s7164_s3 + $0x20] sm:$0xff] }
 0x3cf   : > { %2457 = vrot.lane.b32.xlu0 %v3707_v24, %s3438_s19  ;;  %7748 = vst [vmem:[#allocation224_spill] sm:$0xff] %v5106_v14 }
 0x3d0   : > { %v2013_v8 = vadd.f32 %v2001_v3, %v1909_v6  ;;  %v2014_v55 = vadd.f32 %v2002_v13, %v1910_v33  ;;  %7749 = vst [vmem:[#allocation225_spill] sm:$0xff] %v5112_v62  ;;  %v5130_v3 = vld [vmem:[%s7164_s3 + $0x28] sm:$0xff] }
 0x3d1   : > { %v2195_v61 = vpop.permute.xlu0 %2194  ;;  %7752 = vst [vmem:[#allocation228_spill] sm:$0xff] %v5130_v3 }
 0x3d2   : > { %v5068_v38 = vmul.f32 %v2195_v61, %v2177_v11  ;;  %v5070_v21 = vmul.f32 %v2195_v61, %v2178_v34  ;;  %v5074_v43 = vadd.f32 %v2105_v54, %v2013_v8  ;;  %v5076_v49 = vadd.f32 %v2106_v45, %v2014_v55  ;;  %v5089_v61 = vld [vmem:[%s7164_s3] sm:$0xff]  ;;  %v5095_v8 = vld [vmem:[%s7164_s3 + $0x8] sm:$0xff] }
 0x3d3   : > { %2147 = vrot.lane.b32.xlu1 %v3713_v47, %s3432_s30  ;;  %2149 = vrot.lane.b32.xlu2 %v3717_v51, %s3432_s30  ;;  %7745 = vst [vmem:[#allocation221_spill] sm:$0xff] %v5095_v8  ;;  %v7754_v34 = vmov 17   ;;  %v3214_v55 = vld [vmem:[%s7166_s5 + $0x21] ss:$8 sm:$0x3] }
 0x3d4   : > { %7739 = vst [vmem:[#allocation215_spill] sm:$0xff] %v5068_v38 }
 0x3d5   : > { %7740 = vst [vmem:[#allocation216_spill] sm:$0xff] %v5070_v21  ;;  %v5080_v18 = vpop.permute.xlu1 %1931  ;;  %v5082_v12 = vpop.permute.xlu2 %1990  ;;  %v5157_v21 = vperm.slane %v3214_v55, 1 }
 0x3d6   : > { %7741 = vst [vmem:[#allocation217_spill] sm:$0xff] %v5074_v43 }
 0x3d7   : > { %7742 = vst [vmem:[#allocation218_spill] sm:$0xff] %v5076_v49  ;;  %2463 = vrot.lane.b32.xlu0 %v3719_v30, %s3438_s19  ;;  %v7774_v49 = vld [vmem:[#allocation26_spill] sm:$0xff] }
 0x3d8   : > { %7743 = vst [vmem:[#allocation219_spill] sm:$0xff] %v5080_v18 }
 0x3d9   : > { %7744 = vst [vmem:[#allocation220_spill] sm:$0xff] %v5082_v12  ;;  %v2236_v13 = vpop.permute.xlu0 %2235  ;;  %v5155_v12 = vperm.slane %v3214_v55, 0 }
 0x3da   : > { %7759 = vst [vmem:[#allocation234_spill] sm:$0xff] %v5157_v21 }
 0x3db   : > { %2186 = vperm.xlu1 %3341, %v5089_v61   ;;  %2190 = vperm.xlu2 %3342, %v5095_v8   ;;  %7758 = vst [vmem:[#allocation233_spill] sm:$0xff] %v5155_v12 }
 0x3dc   : > { %7784 = vst [vmem:[#allocation26_spill] sm:$0xff] %v5272_v4  ;;  %v7787_v4 = vld [vmem:[#allocation32_spill] sm:$0xff] }
 0x3dd   : > { %v5098_v41 = vpop.permute.xlu1 %1937  ;;  %v5100_v54 = vpop.permute.xlu2 %1998 }
 0x3de   : > { %7746 = vst [vmem:[#allocation222_spill] sm:$0xff] %v5098_v41 }
 0x3df   : > { %7747 = vst [vmem:[#allocation223_spill] sm:$0xff] %v5100_v54  ;;  %2506 = vperm.xlu0 %3352, %v4346_v20   ;;  %v7401_v20 = vmov 20   ;;  %v7770_v54 = vld [vmem:[#allocation22_spill] sm:$0xff] }
 0x3e1   : > { %v2242_v10 = vpop.permute.xlu0 %2241 }
 0x3e3   : > { %2198 = vperm.xlu1 %3341, %v5106_v14   ;;  %2202 = vperm.xlu2 %3342, %v5112_v62  }
 0x3e5   : > { %v5115_v63 = vpop.permute.xlu1 %1943  ;;  %v5117_v35 = vpop.permute.xlu2 %2029 }
 0x3e6   : > { %7750 = vst [vmem:[#allocation226_spill] sm:$0xff] %v5115_v63  ;;  %v5220_v63 = vmul.f32 %v4761_v1, %v3674_v39 }
 0x3e7   : > { %7751 = vst [vmem:[#allocation227_spill] sm:$0xff] %v5117_v35  ;;  %2547 = vrot.lane.b32.xlu0 %v3618_v46, %s3440_s15  ;;  %v7768_v35 = vld [vmem:[#allocation18_spill] sm:$0xff] }
 0x3e8   : > { %3354 = vset.pattern.permute.xlu0 %v7401_v20  ;;  %7772 = vst [vmem:[#allocation18_spill] sm:$0xff] %v5220_v63  ;;  %v7776_v63 = vld [vmem:[#allocation23_spill] sm:$0xff] }
 0x3e9   : > { %v2248_v56 = vpop.permute.xlu0 %2247 }
 0x3ea   : > { %v2259_v6 = vsel %vm7416_vm11, %v2236_v13, %v2248_v56  ;;  %v2265_v33 = vsel %vm7416_vm11, %v2248_v56, %v2236_v13 }
 0x3eb   : > { %2206 = vperm.xlu1 %3341, %v5130_v3   ;;  %2233 = vrot.lane.b32.xlu2 %v7720_v59, %s3434_s17 }
 0x3ec   : > { %3344 = vset.pattern.permute.xlu2 %v7754_v34 }
 0x3ed   : > { %v5135_v11 = vpop.permute.xlu1 %1986  ;;  %v5138_v45 = vpop.permute.xlu2 %2035 }
 0x3ee   : > { %7753 = vst [vmem:[#allocation229_spill] sm:$0xff] %v5135_v11 }
 0x3ef   : > { %7755 = vst [vmem:[#allocation230_spill] sm:$0xff] %v5138_v45  ;;  %2553 = vrot.lane.b32.xlu0 %v3685_v32, %s3440_s15 }
 0x3f1   : > { %v2254_v13 = vpop.permute.xlu0 %2253 }
 0x3f2   : > { %v5147_v56 = vsel %vm7416_vm11, %v2242_v10, %v2254_v13  ;;  %v5151_v20 = vsel %vm7416_vm11, %v2254_v13, %v2242_v10  ;;  %v2279_v10 = vmul.f32 %v5155_v12, %v2259_v6  ;;  %v2280_v13 = vmul.f32 %v5157_v21, %v2265_v33  ;;  %v7777_v12 = vld [vmem:[#allocation28_spill] sm:$0xff] }
 0x3f3   : > { %7756 = vst [vmem:[#allocation231_spill] sm:$0xff] %v5147_v56  ;;  %2237 = vrot.lane.b32.xlu1 %v3664_v0, %s3434_s17  ;;  %2239 = vrot.lane.b32.xlu2 %v3674_v39, %s3434_s17  ;;  %vm2361_vm11 = vcmp.lt.s32.totalorder %v3785_v28, 111  ;;  %v525_v31 = vsel %vm515_vm0, %v7777_v12, %v7776_v63 }
 0x3f4   : > { %7757 = vst [vmem:[#allocation232_spill] sm:$0xff] %v5151_v20  ;;  %3346 = vset.pattern.permute.xlu1 %v7754_v34 }
 0x3f5   : > { %v5162_v38 = vpop.permute.xlu1 %1994  ;;  %v5164_v11 = vpop.permute.xlu2 %2041 }
 0x3f6   : > { %7760 = vst [vmem:[#allocation235_spill] sm:$0xff] %v5162_v38 }
 0x3f7   : > { %7761 = vst [vmem:[#allocation236_spill] sm:$0xff] %v5164_v11  ;;  %2559 = vrot.lane.b32.xlu0 %v3705_v2, %s3440_s15 }
 0x3f9   : > { %v2295_v20 = vpop.permute.xlu0 %2294 }
 0x3fa   : > { %v5170_v56 = vmul.f32 %v2295_v20, %v2279_v10  ;;  %v5172_v55 = vmul.f32 %v2295_v20, %v2280_v13  ;;  %v7767_v13 = vld [vmem:[#allocation21_spill] sm:$0xff] }
 0x3fb   : > { %2243 = vrot.lane.b32.xlu1 %v3688_v25, %s3434_s17  ;;  %2245 = vrot.lane.b32.xlu2 %v3699_v52, %s3434_s17  ;;  %v518_v11 = vsel %vm515_vm0, %v7768_v35, %v7767_v13 }
 0x3fc   : > { %7762 = vst [vmem:[#allocation237_spill] sm:$0xff] %v5170_v56  ;;  %v539_v43 = vmul.f32 %v7774_v49, %v518_v11 }
 0x3fd   : > { %7763 = vst [vmem:[#allocation238_spill] sm:$0xff] %v5172_v55  ;;  %v5178_v34 = vpop.permute.xlu1 %2027  ;;  %v5180_v38 = vpop.permute.xlu2 %2047  ;;  %v7794_v55 = vld [vmem:[#allocation37_spill] sm:$0xff] }
 0x3fe   : > { %7764 = vst [vmem:[#allocation239_spill] sm:$0xff] %v5180_v38 }
 0x3ff   : > { %2565 = vrot.lane.b32.xlu0 %v3717_v51, %s3440_s15 }
 0x401   : > { %v2338_v6 = vpop.permute.xlu0 %2337 }
 0x403   : > { %2249 = vrot.lane.b32.xlu1 %v3707_v24, %s3434_s17  ;;  %2251 = vrot.lane.b32.xlu2 %v3713_v47, %s3434_s17 }
 0x405   : > { %v5188_v20 = vpop.permute.xlu1 %2033  ;;  %v5190_v33 = vpop.permute.xlu2 %2090 }
 0x406   : > { %7765 = vst [vmem:[#allocation240_spill] sm:$0xff] %v5188_v20  ;;  %v524_v20 = vsel %vm515_vm0, %v7767_v13, %v7768_v35  ;;  %v7773_v35 = vld [vmem:[#allocation25_spill] sm:$0xff] }
 0x407   : > { %7766 = vst [vmem:[#allocation241_spill] sm:$0xff] %v5190_v33  ;;  %2606 = vperm.xlu0 %3354, %v5095_v8   ;;  %v7769_v33 = vld [vmem:[#allocation19_spill] sm:$0xff]  ;;  %v538_v13 = vmul.f32 %v7773_v35, %v524_v20  ;;  %v7779_v20 = vld [vmem:[#allocation24_spill] sm:$0xff] }
 0x408   : > { %v527_v41 = vsel %vm515_vm0, %v7770_v54, %v7769_v33  ;;  %v521_v38 = vsel %vm515_vm0, %v7769_v33, %v7770_v54  ;;  %v5230_v54 = vmul.f32 %v4763_v42, %v3713_v47  ;;  %v7426_v33 = vmov 21   ;;  %v7793_v8 = vld [vmem:[#allocation4_spill] sm:$0xff] }
 0x409   : > { %v5193_v10 = vpop.permute.xlu0 %2343  ;;  %v544_v21 = vmul.f32 %v7773_v35, %v527_v41  ;;  %v520_v11 = vsel %vm515_vm0, %v7779_v20, %v7778_v29  ;;  %v526_v41 = vsel %vm515_vm0, %v7778_v29, %v7779_v20  ;;  %v5264_v29 = vmul.f32 %v4761_v1, %v3688_v25 }
 0x40a   : > { %7775 = vst [vmem:[#allocation19_spill] sm:$0xff] %v5230_v54  ;;  %v5268_v20 = vmul.f32 %v4763_v42, %v3719_v30  ;;  %v542_v1 = vmul.f32 %v7773_v35, %v526_v41 }
 0x40b   : > { %2255 = vrot.lane.b32.xlu1 %v3719_v30, %s3434_s17  ;;  %2290 = vperm.xlu2 %3344, %v5089_v61   ;;  %s3442_s17 = smov 97   ;;  %7782 = vst [vmem:[#allocation22_spill] sm:$0xff] %v5264_v29  ;;  %v7789_v29 = vld [vmem:[#allocation29_spill] sm:$0xff]  ;;  %v5307_v30 = vmul.f32 %v7793_v8, %v544_v21 }
 0x40c   : > { %7783 = vst [vmem:[#allocation25_spill] sm:$0xff] %v5268_v20  ;;  %v7788_v20 = vld [vmem:[#allocation36_spill] sm:$0xff]  ;;  %v7796_v21 = vld [vmem:[#allocation17_spill] sm:$0xff] }
 0x40d   : > { %v5210_v45 = vpop.permute.xlu1 %2039  ;;  %v5216_v18 = vpop.permute.xlu2 %2098 }
 0x40e   : > { %7771 = vst [vmem:[#allocation21_spill] sm:$0xff] %v5216_v18  ;;  %v545_v18 = vmul.f32 %v7774_v49, %v521_v38 }
 0x40f   : > { %2649 = vrot.lane.b32.xlu0 %v7720_v59, %s3442_s17  ;;  %v7790_v59 = vld [vmem:[#allocation30_spill] sm:$0xff] }
 0x410   : > { %3356 = vset.pattern.permute.xlu0 %v7426_v33  ;;  %v7781_v33 = vld [vmem:[#allocation27_spill] sm:$0xff] }
 0x411   : > { %v2350_v54 = vpop.permute.xlu0 %2349  ;;  %v635_v38 = vsel %vm630_vm1, %v7781_v33, %v7780_v26  ;;  %v641_v53 = vsel %vm630_vm1, %v7780_v26, %v7781_v33  ;;  %v5276_v26 = vmul.f32 %v4763_v42, %v3707_v24  ;;  %v540_v33 = vmul.f32 %v7773_v35, %v525_v31 }
 0x412   : > { %v5256_v40 = vsel %vm2361_vm11, %v2338_v6, %v2350_v54  ;;  %v5260_v9 = vsel %vm2361_vm11, %v2350_v54, %v2338_v6  ;;  %v5281_v6 = vld [vmem:[%s7164_s3 + $0x10] sm:$0xff]  ;;  %v519_v54 = vsel %vm515_vm0, %v7776_v63, %v7777_v12  ;;  %v639_v42 = vsel %vm630_vm1, %v7788_v20, %v7787_v4 }
 0x413   : > { %7785 = vst [vmem:[#allocation23_spill] sm:$0xff] %v5276_v26  ;;  %2298 = vperm.xlu1 %3346, %v5281_v6   ;;  %2302 = vperm.xlu2 %3344, %v5106_v14   ;;  %v543_v26 = vmul.f32 %v7774_v49, %v520_v11  ;;  %v658_v17 = vmul.f32 %v7789_v29, %v641_v53  ;;  %v7792_v63 = vld [vmem:[#allocation16_spill] sm:$0xff]  ;;  %vm2465_vm0 = vcmp.lt.s32.totalorder %v3785_v28, 110 }
 0x414   : > { %7786 = vst [vmem:[#allocation28_spill] sm:$0xff] %v5281_v6  ;;  %v659_v6 = vmul.f32 %v7790_v59, %v635_v38  ;;  %v633_v31 = vsel %vm630_vm1, %v7787_v4, %v7788_v20  ;;  %v586_v35 = vmul.f32 %v7792_v63, %v538_v13  ;;  %v587_v41 = vmul.f32 %v7792_v63, %v539_v43  ;;  %v7795_v43 = vld [vmem:[#allocation20_spill] sm:$0xff] }
 0x415   : > { %v5302_v12 = vpop.permute.xlu1 %2045  ;;  %v5310_v11 = vmul.f32 %v7793_v8, %v545_v18  ;;  %v5312_v53 = vpop.permute.xlu2 %2131  ;;  %v541_v38 = vmul.f32 %v7774_v49, %v519_v54  ;;  %v654_v14 = vmul.f32 %v7789_v29, %v639_v42  ;;  %v694_v4 = vmul.f32 %v7794_v55, %v658_v17  ;;  %v7797_v8 = vld [vmem:[#allocation34_spill] sm:$0xff] }
 0x416   : > { %7791 = vst [vmem:[#allocation31_spill] sm:$0xff] %v5302_v12  ;;  %v695_v20 = vmul.f32 %v7794_v55, %v659_v6  ;;  %v588_v13 = vmul.f32 %v7795_v43, %v540_v33  ;;  %v590_v63 = vmul.f32 %v7796_v21, %v542_v1  ;;  %v655_v18 = vmul.f32 %v7790_v59, %v633_v31  ;;  %v7798_v12 = vld [vmem:[#allocation38_spill] sm:$0xff]  ;;  %v7799_v55 = vld [vmem:[#allocation35_spill] sm:$0xff]  ;;  %v7801_v1 = vld [vmem:[#allocation40_spill] sm:$0xff] }
 0x417   : > { %2655 = vrot.lane.b32.xlu0 %v3674_v39, %s3442_s17  ;;  %v642_v49 = vsel %vm630_vm1, %v7798_v12, %v7797_v8  ;;  %v591_v42 = vmul.f32 %v7796_v21, %v543_v26  ;;  %v636_v17 = vsel %vm630_vm1, %v7797_v8, %v7798_v12  ;;  %v7800_v6 = vld [vmem:[#allocation39_spill] sm:$0xff]  ;;  %v690_v33 = vmul.f32 %v7801_v1, %v654_v14 }
 0x418   : > { %v640_v54 = vsel %vm630_vm1, %v7800_v6, %v7799_v55  ;;  %v3215_v31 = vld [vmem:[%s7166_s5 + $0x22] ss:$8 sm:$0x3]  ;;  %v634_v26 = vsel %vm630_vm1, %v7799_v55, %v7800_v6  ;;  %v691_v21 = vmul.f32 %v7801_v1, %v655_v18  ;;  %v589_v8 = vmul.f32 %v7795_v43, %v541_v38 }
 0x419   : > { %v2356_v39 = vpop.permute.xlu0 %2355  ;;  %v5356_v56 = vadd.f32 %v694_v4, %v590_v63  ;;  %v5358_v51 = vadd.f32 %v695_v20, %v591_v42  ;;  %v660_v55 = vmul.f32 %v7789_v29, %v642_v49  ;;  %v656_v18 = vmul.f32 %v7789_v29, %v640_v54  ;;  %v7804_v6 = vld [vmem:[#allocation50_spill] sm:$0xff]  ;;  %v7808_v63 = vld [vmem:[#allocation44_spill] sm:$0xff]  ;;  %v7809_v42 = vld [vmem:[#allocation47_spill] sm:$0xff] }
 0x41a   : > { %v5348_v12 = vsel %vm2361_vm11, %v5193_v10, %v2356_v39  ;;  %v5353_v14 = vsel %vm2361_vm11, %v2356_v39, %v5193_v10  ;;  %v7805_v1 = vld [vmem:[#allocation54_spill] sm:$0xff]  ;;  %v5367_v58 = vperm.slane %v3215_v31, 0  ;;  %v5369_v39 = vperm.slane %v3215_v31, 1  ;;  %v7810_v54 = vld [vmem:[#allocation41_spill] sm:$0xff] }
 0x41b   : > { %7802 = vst [vmem:[#allocation24_spill] sm:$0xff] %v5348_v12  ;;  %2306 = vperm.xlu1 %3346, %v5112_v62   ;;  %v746_v12 = vsel %vm734_vm2, %v7805_v1, %v7804_v6  ;;  %2310 = vperm.xlu2 %3344, %v5130_v3   ;;  %v661_v10 = vmul.f32 %v7790_v59, %v636_v17  ;;  %v7816_v62 = vld [vmem:[#allocation43_spill] sm:$0xff]  ;;  %vm7951_vm1 = vcmp.lt.s32.totalorder %v3785_v28, 112 }
 0x41c   : > { %7803 = vst [vmem:[#allocation33_spill] sm:$0xff] %v5353_v14  ;;  %v657_v38 = vmul.f32 %v7790_v59, %v634_v26  ;;  %v702_v4 = vadd.f32 %v690_v33, %v586_v35  ;;  %v740_v29 = vsel %vm734_vm2, %v7804_v6, %v7805_v1  ;;  %v703_v43 = vadd.f32 %v691_v21, %v587_v41  ;;  %v7812_v33 = vld [vmem:[#allocation46_spill] sm:$0xff]  ;;  %v7814_v6 = vld [vmem:[#allocation48_spill] sm:$0xff] }
 0x41d   : > { %7806 = vst [vmem:[#allocation27_spill] sm:$0xff] %v5367_v58  ;;  %v5378_v20 = vpop.permute.xlu1 %2086  ;;  %v692_v49 = vmul.f32 %v7808_v63, %v656_v18  ;;  %v738_v31 = vsel %vm734_vm2, %v7810_v54, %v7809_v42  ;;  %v744_v59 = vsel %vm734_vm2, %v7809_v42, %v7810_v54  ;;  %v5389_v35 = vpop.permute.xlu2 %2137  ;;  %v696_v26 = vmul.f32 %v7812_v33, %v660_v55  ;;  %v7813_v21 = vld [vmem:[#allocation42_spill] sm:$0xff]  ;;  %v7815_v1 = vld [vmem:[#allocation52_spill] sm:$0xff] }
 0x41e   : > { %7807 = vst [vmem:[#allocation32_spill] sm:$0xff] %v5369_v39  ;;  %v693_v17 = vmul.f32 %v7808_v63, %v657_v38  ;;  %v697_v41 = vmul.f32 %v7812_v33, %v661_v10  ;;  %v764_v18 = vmul.f32 %v7813_v21, %v746_v12  ;;  %v743_v14 = vsel %vm734_vm2, %v7815_v1, %v7814_v6  ;;  %v7817_v38 = vld [vmem:[#allocation45_spill] sm:$0xff] }
 0x41f   : > { %7811 = vst [vmem:[#allocation36_spill] sm:$0xff] %v5389_v35  ;;  %2661 = vrot.lane.b32.xlu0 %v3699_v52, %s3442_s17  ;;  %v765_v42 = vmul.f32 %v7816_v62, %v740_v29  ;;  %v2381_v54 = vmul.f32 %v5367_v58, %v5256_v40  ;;  %v2382_v55 = vmul.f32 %v5369_v39, %v5260_v9  ;;  %v7818_v63 = vld [vmem:[#allocation49_spill] sm:$0xff] }
 0x420   : > { %v760_v10 = vmul.f32 %v7813_v21, %v744_v59  ;;  %v761_v12 = vmul.f32 %v7816_v62, %v738_v31  ;;  %v745_v33 = vsel %vm734_vm2, %v7818_v63, %v7817_v38  ;;  %v737_v29 = vsel %vm734_vm2, %v7814_v6, %v7815_v1  ;;  %v7819_v59 = vld [vmem:[#allocation51_spill] sm:$0xff] }
 0x421   : > { %v2395_v35 = vpop.permute.xlu0 %2394  ;;  %v704_v52 = vadd.f32 %v692_v49, %v588_v13  ;;  %v739_v40 = vsel %vm734_vm2, %v7817_v38, %v7818_v63  ;;  %v758_v3 = vmul.f32 %v7813_v21, %v743_v14  ;;  %v800_v24 = vmul.f32 %v7820_v16, %v764_v18  ;;  %v7822_v18 = vld [vmem:[#allocation57_spill] sm:$0xff]  ;;  %vm7952_vm2 = vmmov %vm7951_vm1 }
 0x422   : > { %v5420_v9 = vmul.f32 %v2395_v35, %v2381_v54  ;;  %v5422_v31 = vmul.f32 %v2395_v35, %v2382_v55  ;;  %v796_v39 = vmul.f32 %v7819_v59, %v760_v10  ;;  %v797_v58 = vmul.f32 %v7819_v59, %v761_v12  ;;  %v7825_v12 = vld [vmem:[#allocation62_spill] sm:$0xff] }
 0x423   : > { %2339 = vrot.lane.b32.xlu1 %v3618_v46, %s3436_s18  ;;  %v762_v13 = vmul.f32 %v7813_v21, %v745_v33  ;;  %v759_v49 = vmul.f32 %v7816_v62, %v737_v29  ;;  %v801_v6 = vmul.f32 %v7820_v16, %v765_v42  ;;  %2341 = vrot.lane.b32.xlu2 %v3664_v0, %s3436_s18  ;;  %v7821_v35 = vmov 18   ;;  %v7824_v42 = vld [vmem:[#allocation55_spill] sm:$0xff] }
 0x424   : > { %3348 = vset.pattern.permute.xlu1 %v7821_v35  ;;  %v705_v1 = vadd.f32 %v693_v17, %v589_v8  ;;  %v708_v54 = vadd.f32 %v696_v26, %v5307_v30  ;;  %v709_v14 = vadd.f32 %v697_v41, %v5310_v11  ;;  %v794_v55 = vmul.f32 %v7822_v18, %v758_v3  ;;  %v7826_v8 = vld [vmem:[#allocation61_spill] sm:$0xff]  ;;  %v7827_v33 = vld [vmem:[#allocation59_spill] sm:$0xff] }
 0x425   : > { %v5439_v10 = vpop.permute.xlu1 %2094  ;;  %3349 = vset.pattern.permute.xlu2 %v7821_v35  ;;  %v763_v21 = vmul.f32 %v7816_v62, %v739_v40  ;;  %v795_v16 = vmul.f32 %v7822_v18, %v759_v49  ;;  %v847_v38 = vsel %vm838_vm3, %v7825_v12, %v7824_v42  ;;  %v798_v17 = vmul.f32 %v7826_v8, %v762_v13  ;;  %v2144_v30 = vpop.permute.xlu2 %2143  ;;  %v7829_v40 = vld [vmem:[#allocation63_spill] sm:$0xff]  ;;  %v7830_v13 = vld [vmem:[#allocation58_spill] sm:$0xff]  ;;  %v7831_v49 = vld [vmem:[#allocation64_spill] sm:$0xff] }
 0x426   : > { %7823 = vst [vmem:[#allocation29_spill] sm:$0xff] %v5439_v10  ;;  %v5449_v26 = vadd.f32 %v796_v39, %v704_v52  ;;  %v5451_v11 = vadd.f32 %v797_v58, %v705_v1  ;;  %v841_v3 = vsel %vm838_vm3, %v7824_v42, %v7825_v12  ;;  %v812_v62 = vadd.f32 %v800_v24, %v708_v54  ;;  %v7828_v24 = vld [vmem:[#allocation56_spill] sm:$0xff]  ;;  %v7834_v18 = vld [vmem:[#allocation66_spill] sm:$0xff]  ;;  %v7835_v12 = vld [vmem:[#allocation65_spill] sm:$0xff] }
 0x427   : > { %2667 = vrot.lane.b32.xlu0 %v3713_v47, %s3442_s17  ;;  %v799_v41 = vmul.f32 %v7826_v8, %v763_v21  ;;  %v813_v63 = vadd.f32 %v801_v6, %v709_v14  ;;  %v1843_v52 = vsel %vm1841_vm13, %v4877_v27, %v4918_v22  ;;  %v1849_v58 = vsel %vm1841_vm13, %v4918_v22, %v4877_v27  ;;  %v7833_v54 = vld [vmem:[#allocation60_spill] sm:$0xff] }
 0x428   : > { %v806_v39 = vadd.f32 %v794_v55, %v702_v4  ;;  %v862_v29 = vmul.f32 %v7827_v33, %v847_v38  ;;  %v848_v59 = vsel %vm838_vm3, %v7829_v40, %v7828_v24  ;;  %v850_v6 = vsel %vm838_vm3, %v7831_v49, %v7830_v13  ;;  %v7836_v38 = vld [vmem:[#allocation70_spill] sm:$0xff] }
 0x429   : > { %v5477_v35 = vpop.permute.xlu0 %2414  ;;  %v807_v1 = vadd.f32 %v795_v16, %v703_v43  ;;  %v863_v14 = vmul.f32 %v7833_v54, %v841_v3  ;;  %v5481_v27 = vadd.f32 %v798_v17, %v5356_v56  ;;  %v842_v22 = vsel %vm838_vm3, %v7828_v24, %v7829_v40 }
 0x42a   : > { %7832 = vst [vmem:[#allocation30_spill] sm:$0xff] %v5477_v35  ;;  %v844_v4 = vsel %vm838_vm3, %v7830_v13, %v7831_v49  ;;  %v898_v55 = vmul.f32 %v7834_v18, %v862_v29  ;;  %v1863_v21 = vmul.f32 %v5005_v50, %v1843_v52  ;;  %v1864_v43 = vmul.f32 %v5007_v19, %v1849_v58 }
 0x42b   : > { %2345 = vrot.lane.b32.xlu1 %v3685_v32, %s3436_s18  ;;  %v5497_v56 = vadd.f32 %v799_v41, %v5358_v51  ;;  %v864_v16 = vmul.f32 %v7827_v33, %v848_v59  ;;  %v868_v42 = vmul.f32 %v7827_v33, %v850_v6  ;;  %v849_v8 = vsel %vm838_vm3, %v7836_v38, %v7835_v12  ;;  %v7838_v59 = vld [vmem:[#allocation67_spill] sm:$0xff] }
 0x42c   : > { %2347 = vrot.lane.b32.xlu2 %v3688_v25, %s3436_s18  ;;  %v1947_v17 = vsel %vm1945_vm14, %v4781_v44, %v4810_v5  ;;  %v1953_v51 = vsel %vm1945_vm14, %v4810_v5, %v4781_v44  ;;  %v1899_v3 = vmul.f32 %v4941_v7, %v1863_v21  ;;  %v1900_v41 = vmul.f32 %v4941_v7, %v1864_v43  ;;  %v7839_v21 = vld [vmem:[#allocation69_spill] sm:$0xff] }
 0x42d   : > { %v5517_v52 = vpop.permute.xlu1 %2129  ;;  %v865_v58 = vmul.f32 %v7833_v54, %v842_v22  ;;  %v869_v29 = vmul.f32 %v7833_v54, %v844_v4  ;;  %v2051_v24 = vsel %vm2049_vm15, %v5178_v34, %v5210_v45  ;;  %v2057_v44 = vsel %vm2049_vm15, %v5210_v45, %v5178_v34  ;;  %v5529_v5 = vpop.permute.xlu2 %2149  ;;  %v7840_v43 = vld [vmem:[#allocation73_spill] sm:$0xff] }
 0x42e   : > { %7837 = vst [vmem:[#allocation16_spill] sm:$0xff] %v5529_v5  ;;  %v899_v7 = vmul.f32 %v7834_v18, %v863_v14  ;;  %v5532_v40 = vadd.f32 %v898_v55, %v806_v39  ;;  %v904_v13 = vmul.f32 %v7838_v59, %v868_v42  ;;  %v843_v49 = vsel %vm838_vm3, %v7835_v12, %v7836_v38 }
 0x42f   : > { %2706 = vperm.xlu0 %3356, %v5089_v61   ;;  %v905_v6 = vmul.f32 %v7838_v59, %v869_v29  ;;  %v866_v22 = vmul.f32 %v7827_v33, %v849_v8  ;;  %v1967_v45 = vmul.f32 %v5012_v23, %v1947_v17  ;;  %v1968_v34 = vmul.f32 %v5014_v37, %v1953_v51  ;;  %v7843_v29 = vld [vmem:[#allocation213_spill] sm:$0xff] }
 0x430   : > { %v1911_v39 = vadd.f32 %v1899_v3, %v4904_v60  ;;  %v1912_v14 = vadd.f32 %v1900_v41, %v4906_v36  ;;  %v2071_v4 = vmul.f32 %v5017_v48, %v2051_v24  ;;  %v2072_v18 = vmul.f32 %v5019_v57, %v2057_v44  ;;  %v7842_v41 = vld [vmem:[#allocation212_spill] sm:$0xff] }
 0x431   : > { %v5548_v55 = vpop.permute.xlu0 %2445  ;;  %v867_v61 = vmul.f32 %v7833_v54, %v843_v49  ;;  %v951_v33 = vsel %vm942_vm4, %v7840_v43, %v7839_v21  ;;  %v2155_v42 = vsel %vm2153_vm12, %v5312_v53, %v2144_v30  ;;  %v2161_v60 = vsel %vm2153_vm12, %v2144_v30, %v5312_v53  ;;  %v7841_v30 = vld [vmem:[#allocation12_spill] sm:$0xff]  ;;  %v7848_v49 = vld [vmem:[#allocation78_spill] sm:$0xff] }
 0x432   : > { %v2003_v36 = vmul.f32 %v4859_v15, %v1967_v45  ;;  %v2004_v12 = vmul.f32 %v4859_v15, %v1968_v34  ;;  %v2107_v38 = vmul.f32 %v5378_v20, %v2071_v4  ;;  %v2108_v54 = vmul.f32 %v5378_v20, %v2072_v18  ;;  %v7849_v18 = vld [vmem:[#allocation228_spill] sm:$0xff] }
 0x433   : > { %2351 = vrot.lane.b32.xlu1 %v3705_v2, %s3436_s18  ;;  %v911_v8 = vadd.f32 %v899_v7, %v807_v1  ;;  %v5567_v17 = vadd.f32 %v904_v13, %v812_v62  ;;  %v5569_v51 = vadd.f32 %v905_v6, %v813_v63  ;;  %v945_v53 = vsel %vm942_vm4, %v7839_v21, %v7840_v43  ;;  %v7845_v62 = vld [vmem:[#allocation68_spill] sm:$0xff]  ;;  %v7846_v7 = vld [vmem:[#allocation75_spill] sm:$0xff] }
 0x434   : > { %2353 = vrot.lane.b32.xlu2 %v7841_v30, %s3436_s18  ;;  %v2015_v15 = vadd.f32 %v2003_v36, %v1911_v39  ;;  %v2016_v3 = vadd.f32 %v2004_v12, %v1912_v14  ;;  %v2175_v20 = vmul.f32 %v7842_v41, %v2155_v42  ;;  %v2176_v24 = vmul.f32 %v7843_v29, %v2161_v60  ;;  %v7847_v13 = vld [vmem:[#allocation72_spill] sm:$0xff]  ;;  %v7851_v42 = vld [vmem:[#allocation74_spill] sm:$0xff]  ;;  %v7852_v36 = vld [vmem:[#allocation79_spill] sm:$0xff] }
 0x435   : > { %v5579_v44 = vpop.permute.xlu1 %2135  ;;  %v902_v1 = vmul.f32 %v7845_v62, %v866_v22  ;;  %v903_v63 = vmul.f32 %v7845_v62, %v867_v61  ;;  %v966_v59 = vmul.f32 %v7846_v7, %v951_v33  ;;  %v953_v6 = vsel %vm942_vm4, %v7848_v49, %v7847_v13  ;;  %v2191_v45 = vpop.permute.xlu2 %2190  ;;  %v7850_v21 = vld [vmem:[#allocation76_spill] sm:$0xff]  ;;  %v7855_v62 = vld [vmem:[#allocation81_spill] sm:$0xff] }
 0x436   : > { %7844 = vst [vmem:[#allocation4_spill] sm:$0xff] %v5579_v44  ;;  %v2119_v34 = vadd.f32 %v2107_v38, %v2015_v15  ;;  %v2120_v39 = vadd.f32 %v2108_v54, %v2016_v3  ;;  %v2211_v14 = vmul.f32 %v2191_v45, %v2175_v20  ;;  %v2212_v4 = vmul.f32 %v2191_v45, %v2176_v24  ;;  %v7853_v3 = vld [vmem:[#allocation77_spill] sm:$0xff]  ;;  %v7854_v20 = vld [vmem:[#allocation71_spill] sm:$0xff]  ;;  %v7858_v45 = vld [vmem:[#allocation14_spill] sm:$0xff] }
 0x437   : > { %2726 = vperm.xlu0 %3356, %v7849_v18   ;;  %v967_v43 = vmul.f32 %v7850_v21, %v945_v53  ;;  %v900_v22 = vmul.f32 %v7851_v42, %v864_v16  ;;  %v901_v61 = vmul.f32 %v7851_v42, %v865_v58  ;;  %v947_v33 = vsel %vm942_vm4, %v7847_v13, %v7848_v49  ;;  %v7856_v13 = vld [vmem:[#allocation80_spill] sm:$0xff]  ;;  %v7857_v49 = vld [vmem:[#allocation83_spill] sm:$0xff] }
 0x438   : > { %v970_v60 = vmul.f32 %v7846_v7, %v953_v6  ;;  %v1002_v12 = vmul.f32 %v7852_v36, %v966_v59  ;;  %v2223_v38 = vadd.f32 %v2211_v14, %v2119_v34  ;;  %v2224_v54 = vadd.f32 %v2212_v4, %v2120_v39  ;;  %v7859_v34 = vld [vmem:[#allocation237_spill] sm:$0xff]  ;;  %v7861_v14 = vld [vmem:[#allocation238_spill] sm:$0xff]  ;;  %v7863_v42 = vld [vmem:[#allocation15_spill] sm:$0xff] }
 0x439   : > { %v5598_v15 = vpop.permute.xlu0 %2451  ;;  %v948_v16 = vsel %vm942_vm4, %v7854_v20, %v7853_v3  ;;  %v954_v58 = vsel %vm942_vm4, %v7853_v3, %v7854_v20  ;;  %v1003_v53 = vmul.f32 %v7852_v36, %v967_v43  ;;  %v914_v24 = vadd.f32 %v902_v1, %v5481_v27  ;;  %v7865_v3 = vld [vmem:[#allocation100_spill] sm:$0xff] }
 0x43a   : > { %v1006_v59 = vmul.f32 %v7855_v62, %v970_v60  ;;  %v952_v6 = vsel %vm942_vm4, %v7857_v49, %v7856_v13  ;;  %v5618_v39 = vadd.f32 %v7859_v34, %v2223_v38  ;;  %v5621_v4 = vadd.f32 %v7861_v14, %v2224_v54  ;;  %v7864_v54 = vld [vmem:[#allocation93_spill] sm:$0xff]  ;;  %v7873_v14 = vld [vmem:[#allocation84_spill] sm:$0xff] }
 0x43b   : > { %2357 = vrot.lane.b32.xlu1 %v7858_v45, %s3436_s18  ;;  %v912_v18 = vadd.f32 %v900_v22, %v5449_v26  ;;  %v971_v27 = vmul.f32 %v7850_v21, %v947_v33  ;;  %v915_v1 = vadd.f32 %v903_v63, %v5497_v56  ;;  %v946_v43 = vsel %vm942_vm4, %v7856_v13, %v7857_v49  ;;  %v7896_v44 = vld [vmem:[#allocation224_spill] sm:$0xff] }
 0x43c   : > { %7860 = vst [vmem:[#allocation37_spill] sm:$0xff] %v5618_v39  ;;  %2359 = vrot.lane.b32.xlu2 %v7863_v42, %s3436_s18  ;;  %v913_v60 = vadd.f32 %v901_v61, %v5451_v11  ;;  %v972_v36 = vmul.f32 %v7846_v7, %v954_v58  ;;  %v973_v38 = vmul.f32 %v7850_v21, %v948_v16  ;;  %v7868_v16 = vld [vmem:[#allocation90_spill] sm:$0xff]  ;;  %s3444_s18 = smov 96   ;;  %vm7958_vm3 = vcmp.lt.s32.totalorder %v3785_v28, 1 }
 0x43d   : > { %7862 = vst [vmem:[#allocation20_spill] sm:$0xff] %v5621_v4  ;;  %v5636_v26 = vadd.f32 %v1002_v12, %v5532_v40  ;;  %v5638_v22 = vpop.permute.xlu1 %2141  ;;  %v5640_v56 = vadd.f32 %v1003_v53, %v911_v8  ;;  %v1007_v63 = vmul.f32 %v7855_v62, %v971_v27  ;;  %v968_v33 = vmul.f32 %v7846_v7, %v952_v6  ;;  %v5648_v61 = vpop.permute.xlu2 %2202  ;;  %v7867_v12 = vld [vmem:[#allocation86_spill] sm:$0xff]  ;;  %v7869_v7 = vld [vmem:[#allocation87_spill] sm:$0xff]  ;;  %v7872_v6 = vld [vmem:[#allocation89_spill] sm:$0xff] }
 0x43e   : > { %v1058_v11 = vsel %vm1046_vm5, %v7865_v3, %v7864_v54  ;;  %7866 = vst [vmem:[#allocation17_spill] sm:$0xff] %v5648_v61  ;;  %v5650_v20 = vadd.f32 %v1006_v59, %v914_v24  ;;  %v969_v40 = vmul.f32 %v7850_v21, %v946_v43  ;;  %v1056_v8 = vsel %vm1046_vm5, %v7868_v16, %v7867_v12  ;;  %v7870_v58 = vld [vmem:[#allocation82_spill] sm:$0xff]  ;;  %v7871_v24 = vld [vmem:[#allocation88_spill] sm:$0xff]  ;;  %v7899_v61 = vld [vmem:[#allocation225_spill] sm:$0xff] }
 0x43f   : > { %2757 = vrot.lane.b32.xlu0 %v3664_v0, %s3444_s18  ;;  %v1051_v53 = vsel %vm1046_vm5, %v7870_v58, %v7869_v7  ;;  %v1057_v21 = vsel %vm1046_vm5, %v7869_v7, %v7870_v58  ;;  %v1004_v62 = vmul.f32 %v7871_v24, %v968_v33  ;;  %v1052_v59 = vsel %vm1046_vm5, %v7864_v54, %v7865_v3  ;;  %v7874_v33 = vld [vmem:[#allocation91_spill] sm:$0xff]  ;;  %v7875_v58 = vld [vmem:[#allocation97_spill] sm:$0xff]  ;;  %vm7959_vm4 = vmmov %vm7958_vm3 }
 0x440   : > { %v1005_v13 = vmul.f32 %v7871_v24, %v969_v40  ;;  %v1050_v49 = vsel %vm1046_vm5, %v7867_v12, %v7868_v16  ;;  %v1008_v34 = vmul.f32 %v7872_v6, %v972_v36  ;;  %v1076_v27 = vmul.f32 %v7873_v14, %v1058_v11  ;;  %v7876_v12 = vld [vmem:[#allocation85_spill] sm:$0xff] }
 0x441   : > { %v2458_v43 = vpop.permute.xlu0 %2457  ;;  %v1072_v7 = vmul.f32 %v7873_v14, %v1056_v8  ;;  %v1055_v4 = vsel %vm1046_vm5, %v7875_v58, %v7874_v33  ;;  %v5695_v36 = vadd.f32 %v1007_v63, %v915_v1  ;;  %v1009_v11 = vmul.f32 %v7872_v6, %v973_v38  ;;  %v7877_v8 = vld [vmem:[#allocation221_spill] sm:$0xff]  ;;  %v7879_v1 = vld [vmem:[#allocation28_spill] sm:$0xff] }
 0x442   : > { %v5688_v54 = vsel %vm2465_vm0, %v5548_v55, %v2458_v43  ;;  %v5693_v3 = vsel %vm2465_vm0, %v2458_v43, %v5548_v55  ;;  %v1049_v40 = vsel %vm1046_vm5, %v7874_v33, %v7875_v58  ;;  %v1077_v16 = vmul.f32 %v7876_v12, %v1052_v59  ;;  %v7878_v55 = vld [vmem:[#allocation94_spill] sm:$0xff] }
 0x443   : > { %2398 = vperm.xlu1 %3348, %v7877_v8   ;;  %v1074_v24 = vmul.f32 %v7873_v14, %v1057_v21  ;;  %v1075_v39 = vmul.f32 %v7876_v12, %v1051_v53  ;;  %v1016_v10 = vadd.f32 %v1004_v62, %v912_v18  ;;  %v1108_v43 = vmul.f32 %v7878_v55, %v1072_v7  ;;  %v7880_v33 = vld [vmem:[#allocation98_spill] sm:$0xff]  ;;  %v7882_v53 = vld [vmem:[#allocation99_spill] sm:$0xff]  ;;  %v7883_v18 = vld [vmem:[#allocation92_spill] sm:$0xff] }
 0x444   : > { %2402 = vperm.xlu2 %3349, %v7879_v1   ;;  %v5708_v63 = vadd.f32 %v1005_v13, %v913_v60  ;;  %v1073_v38 = vmul.f32 %v7876_v12, %v1050_v49  ;;  %v1070_v6 = vmul.f32 %v7873_v14, %v1055_v4  ;;  %v1112_v58 = vmul.f32 %v7880_v33, %v1076_v27 }
 0x445   : > { %v5713_v59 = vpop.permute.xlu1 %2147  ;;  %v1020_v8 = vadd.f32 %v1008_v34, %v5567_v17  ;;  %v1071_v21 = vmul.f32 %v7876_v12, %v1049_v40  ;;  %v1154_v62 = vsel %vm1150_vm6, %v7883_v18, %v7882_v53  ;;  %v1160_v60 = vsel %vm1150_vm6, %v7882_v53, %v7883_v18  ;;  %v5725_v13 = vpop.permute.xlu2 %2233  ;;  %v7885_v34 = vld [vmem:[#allocation102_spill] sm:$0xff]  ;;  %v7887_v40 = vld [vmem:[#allocation108_spill] sm:$0xff]  ;;  %v7888_v12 = vld [vmem:[#allocation103_spill] sm:$0xff] }
 0x446   : > { %7881 = vst [vmem:[#allocation34_spill] sm:$0xff] %v5713_v59  ;;  %v1021_v4 = vadd.f32 %v1009_v11, %v5569_v51  ;;  %v5729_v49 = vmul.f32 %v7878_v55, %v1073_v38  ;;  %v1113_v17 = vmul.f32 %v7880_v33, %v1077_v16  ;;  %v1106_v14 = vmul.f32 %v7885_v34, %v1070_v6  ;;  %v7889_v11 = vld [vmem:[#allocation95_spill] sm:$0xff]  ;;  %v7890_v55 = vld [vmem:[#allocation96_spill] sm:$0xff]  ;;  %v7892_v53 = vld [vmem:[#allocation106_spill] sm:$0xff] }
 0x447   : > { %2763 = vrot.lane.b32.xlu0 %v3688_v25, %s3444_s18  ;;  %v5735_v27 = vadd.f32 %v1108_v43, %v1016_v10  ;;  %v1107_v7 = vmul.f32 %v7885_v34, %v1071_v21  ;;  %v1156_v1 = vsel %vm1150_vm6, %v7888_v12, %v7887_v40  ;;  %v1162_v51 = vsel %vm1150_vm6, %v7887_v40, %v7888_v12  ;;  %v7891_v43 = vld [vmem:[#allocation105_spill] sm:$0xff]  ;;  %v3216_v33 = vld [vmem:[%s7166_s5 + $0x23] ss:$8 sm:$0x3] }
 0x448   : > { %7884 = vst [vmem:[#allocation38_spill] sm:$0xff] %v5729_v49  ;;  %v5747_v16 = vmul.f32 %v7889_v11, %v1160_v60  ;;  %v5750_v38 = vmul.f32 %v7890_v55, %v1154_v62  ;;  %v1124_v10 = vadd.f32 %v1112_v58, %v1020_v8  ;;  %v1110_v6 = vmul.f32 %v7891_v43, %v1074_v24  ;;  %v7893_v18 = vld [vmem:[#allocation101_spill] sm:$0xff]  ;;  %v7946_v49 = vld [vmem:[#allocation148_spill] sm:$0xff] }
 0x449   : > { %7886 = vst [vmem:[#allocation35_spill] sm:$0xff] %v5735_v27  ;;  %v2464_v21 = vpop.permute.xlu0 %2463  ;;  %v1153_v34 = vsel %vm1150_vm6, %v7893_v18, %v7892_v53  ;;  %v1159_v60 = vsel %vm1150_vm6, %v7892_v53, %v7893_v18  ;;  %v1125_v8 = vadd.f32 %v1113_v17, %v1021_v4  ;;  %v1118_v62 = vadd.f32 %v1106_v14, %v5636_v26  ;;  %v7900_v4 = vld [vmem:[#allocation112_spill] sm:$0xff]  ;;  %v7901_v17 = vld [vmem:[#allocation107_spill] sm:$0xff] }
 0x44a   : > { %v5767_v58 = vsel %vm2465_vm0, %v5598_v15, %v2464_v21  ;;  %v5772_v24 = vsel %vm2465_vm0, %v2464_v21, %v5598_v15  ;;  %v1180_v40 = vmul.f32 %v7889_v11, %v1162_v51  ;;  %v1181_v12 = vmul.f32 %v7890_v55, %v1156_v1 }
 0x44b   : > { %7894 = vst [vmem:[#allocation39_spill] sm:$0xff] %v5767_v58  ;;  %2406 = vperm.xlu1 %3348, %v7896_v44   ;;  %v1119_v53 = vadd.f32 %v1107_v7, %v5640_v56  ;;  %v1111_v18 = vmul.f32 %v7891_v43, %v1075_v39  ;;  %v5780_v59 = vperm.slane %v3216_v33, 0  ;;  %v5782_v58 = vperm.slane %v3216_v33, 1  ;;  %v7904_v7 = vld [vmem:[#allocation110_spill] sm:$0xff]  ;;  %v7905_v33 = vld [vmem:[#allocation104_spill] sm:$0xff] }
 0x44c   : > { %7895 = vst [vmem:[#allocation40_spill] sm:$0xff] %v5772_v24  ;;  %2410 = vperm.xlu2 %3349, %v7899_v61   ;;  %v1174_v15 = vmul.f32 %v7889_v11, %v1159_v60  ;;  %v1175_v26 = vmul.f32 %v7890_v55, %v1153_v34  ;;  %v1257_v14 = vsel %vm1254_vm7, %v7901_v17, %v7900_v4  ;;  %v7903_v61 = vld [vmem:[#allocation115_spill] sm:$0xff]  ;;  %v7908_v24 = vld [vmem:[#allocation120_spill] sm:$0xff]  ;;  %vm2569_vm5 = vcmp.lt.s32.totalorder %v3785_v28, 98 }
 0x44d   : > { %7897 = vst [vmem:[#allocation50_spill] sm:$0xff] %v5780_v59  ;;  %v1263_v44 = vsel %vm1254_vm7, %v7900_v4, %v7901_v17  ;;  %v5795_v39 = vpop.permute.xlu1 %2186  ;;  %v5798_v56 = vadd.f32 %v1110_v6, %v5650_v20  ;;  %v1155_v1 = vsel %vm1150_vm6, %v7904_v7, %v7903_v61  ;;  %v1161_v51 = vsel %vm1150_vm6, %v7903_v61, %v7904_v7  ;;  %v5808_v43 = vpop.permute.xlu2 %2239  ;;  %v7906_v60 = vld [vmem:[#allocation111_spill] sm:$0xff]  ;;  %vm7969_vm6 = vmmov %vm7958_vm3 }
 0x44e   : > { %7898 = vst [vmem:[#allocation54_spill] sm:$0xff] %v5782_v58  ;;  %v1216_v21 = vmul.f32 %v7905_v33, %v1180_v40  ;;  %v1217_v34 = vmul.f32 %v7905_v33, %v1181_v12  ;;  %v1210_v4 = vmul.f32 %v7906_v60, %v1174_v15  ;;  %v1211_v20 = vmul.f32 %v7906_v60, %v1175_v26  ;;  %v7907_v6 = vld [vmem:[#allocation119_spill] sm:$0xff]  ;;  %v7909_v12 = vld [vmem:[#allocation114_spill] sm:$0xff]  ;;  %v7910_v15 = vld [vmem:[#allocation109_spill] sm:$0xff] }
 0x44f   : > { %7902 = vst [vmem:[#allocation44_spill] sm:$0xff] %v5798_v56  ;;  %2865 = vrot.lane.b32.xlu0 %v3685_v32, %s3445_s9  ;;  %v1278_v17 = vmul.f32 %v7907_v6, %v1263_v44  ;;  %v1279_v5 = vmul.f32 %v7908_v24, %v1257_v14  ;;  %v2489_v61 = vmul.f32 %v5780_v59, %v5688_v54  ;;  %v7473_v7 = vmov 23   ;;  %v7911_v60 = vld [vmem:[#allocation116_spill] sm:$0xff] }
 0x450   : > { %v2490_v40 = vmul.f32 %v5782_v58, %v5693_v3  ;;  %3361 = vset.pattern.permute.xlu0 %v7473_v7  ;;  %v1260_v26 = vsel %vm1254_vm7, %v7910_v15, %v7909_v12  ;;  %v1266_v44 = vsel %vm1254_vm7, %v7909_v12, %v7910_v15  ;;  %v1178_v14 = vmul.f32 %v7889_v11, %v1161_v51  ;;  %v7915_v12 = vld [vmem:[#allocation5_spill] sm:$0xff] }
 0x451   : > { %v1179_v54 = vmul.f32 %v7890_v55, %v1155_v1  ;;  %v2507_v33 = vpop.permute.xlu0 %2506  ;;  %v1314_v3 = vmul.f32 %v7911_v60, %v1278_v17  ;;  %v1315_v58 = vmul.f32 %v7911_v60, %v1279_v5  ;;  %v5840_v35 = vadd.f32 %v1111_v18, %v5695_v36  ;;  %v7916_v55 = vld [vmem:[#allocation133_spill] sm:$0xff]  ;;  %v7918_v5 = vld [vmem:[#allocation134_spill] sm:$0xff]  ;;  %v7919_v17 = vld [vmem:[#allocation140_spill] sm:$0xff] }
 0x452   : > { %v5835_v7 = vmul.f32 %v2507_v33, %v2489_v61  ;;  %v5837_v59 = vmul.f32 %v2507_v33, %v2490_v40  ;;  %v1222_v0 = vadd.f32 %v1210_v4, %v1118_v62  ;;  %v1228_v27 = vadd.f32 %v1216_v21, %v1124_v10  ;;  %v7917_v1 = vld [vmem:[#allocation137_spill] sm:$0xff]  ;;  %v7926_v33 = vld [vmem:[#allocation147_spill] sm:$0xff] }
 0x453   : > { %7914 = vst [vmem:[#allocation46_spill] sm:$0xff] %v5840_v35  ;;  %v1229_v56 = vadd.f32 %v1217_v34, %v1125_v8  ;;  %2441 = vrot.lane.b32.xlu1 %v7915_v12, %s3438_s19  ;;  %v1223_v11 = vadd.f32 %v1211_v20, %v1119_v53  ;;  %v1367_v51 = vsel %vm1358_vm9, %v7917_v1, %v7916_v55  ;;  %v7920_v36 = vmov 19   ;;  %v7921_v62 = vld [vmem:[#allocation113_spill] sm:$0xff] }
 0x454   : > { %7912 = vst [vmem:[#allocation47_spill] sm:$0xff] %v5835_v7  ;;  %v1370_v61 = vsel %vm1358_vm9, %v7919_v17, %v7918_v5  ;;  %2443 = vrot.lane.b32.xlu2 %v3618_v46, %s3438_s19  ;;  %3350 = vset.pattern.permute.xlu1 %v7920_v36  ;;  %v1284_v10 = vmul.f32 %v7907_v6, %v1266_v44  ;;  %v7927_v60 = vld [vmem:[#allocation141_spill] sm:$0xff] }
 0x455   : > { %7913 = vst [vmem:[#allocation41_spill] sm:$0xff] %v5837_v59  ;;  %v1285_v8 = vmul.f32 %v7908_v24, %v1260_v26  ;;  %v5858_v53 = vmul.f32 %v7921_v62, %v1178_v14  ;;  %v1361_v18 = vsel %vm1358_vm9, %v7916_v55, %v7917_v1  ;;  %v5864_v21 = vpop.permute.xlu1 %2198  ;;  %3351 = vset.pattern.permute.xlu2 %v7920_v36  ;;  %v2246_v15 = vpop.permute.xlu2 %2245  ;;  %v7925_v26 = vld [vmem:[#allocation170_spill] sm:$0xff]  ;;  %v7931_v1 = vld [vmem:[#allocation171_spill] sm:$0xff]  ;;  %v7939_v7 = vld [vmem:[#allocation117_spill] sm:$0xff] }
 0x456   : > { %7923 = vst [vmem:[#allocation48_spill] sm:$0xff] %v5864_v21  ;;  %v5868_v34 = vmul.f32 %v7921_v62, %v1179_v54  ;;  %v1326_v4 = vadd.f32 %v1314_v3, %v1222_v0  ;;  %v1327_v20 = vadd.f32 %v1315_v58, %v1223_v11  ;;  %v1364_v40 = vsel %vm1358_vm9, %v7918_v5, %v7919_v17  ;;  %v7928_v58 = vld [vmem:[#allocation118_spill] sm:$0xff]  ;;  %v7932_v5 = vld [vmem:[#allocation144_spill] sm:$0xff]  ;;  %v7933_v17 = vld [vmem:[#allocation149_spill] sm:$0xff] }
 0x457   : > { %7922 = vst [vmem:[#allocation42_spill] sm:$0xff] %v5858_v53  ;;  %v1382_v44 = vmul.f32 %v7925_v26, %v1367_v51  ;;  %v1388_v14 = vmul.f32 %v7925_v26, %v1370_v61  ;;  %v1465_v55 = vsel %vm1462_vm8, %v7927_v60, %v7926_v33  ;;  %v1471_v0 = vsel %vm1462_vm8, %v7926_v33, %v7927_v60  ;;  %v7930_v3 = vld [vmem:[#allocation130_spill] sm:$0xff]  ;;  %v7934_v33 = vld [vmem:[#allocation143_spill] sm:$0xff]  ;;  %v7936_v21 = vld [vmem:[#allocation169_spill] sm:$0xff] }
 0x458   : > { %7924 = vst [vmem:[#allocation52_spill] sm:$0xff] %v5868_v34  ;;  %2879 = vrot.lane.b32.xlu0 %v7863_v42, %s3445_s9  ;;  %v5888_v54 = vmul.f32 %v7928_v58, %v5747_v16  ;;  %v1320_v11 = vmul.f32 %v7930_v3, %v1284_v10  ;;  %v1383_v51 = vmul.f32 %v7931_v1, %v1361_v18  ;;  %v7940_v42 = vld [vmem:[#allocation138_spill] sm:$0xff] }
 0x459   : > { %v1474_v61 = vsel %vm1462_vm8, %v7933_v17, %v7932_v5  ;;  %v1321_v36 = vmul.f32 %v7930_v3, %v1285_v8  ;;  %v1389_v62 = vmul.f32 %v7931_v1, %v1364_v40  ;;  %v1418_v60 = vmul.f32 %v7934_v33, %v1382_v44  ;;  %v5903_v46 = vpop.permute.xlu0 %2547  ;;  %v7937_v8 = vld [vmem:[#allocation173_spill] sm:$0xff]  ;;  %v7938_v40 = vld [vmem:[#allocation122_spill] sm:$0xff]  ;;  %v7942_v1 = vld [vmem:[#allocation139_spill] sm:$0xff] }
 0x45a   : > { %7929 = vst [vmem:[#allocation43_spill] sm:$0xff] %v5888_v54  ;;  %v1468_v16 = vsel %vm1462_vm8, %v7932_v5, %v7933_v17  ;;  %v5907_v10 = vmul.f32 %v7928_v58, %v5750_v38  ;;  %v1419_v18 = vmul.f32 %v7934_v33, %v1383_v51  ;;  %v1486_v59 = vmul.f32 %v7936_v21, %v1471_v0  ;;  %v7941_v17 = vld [vmem:[#allocation145_spill] sm:$0xff]  ;;  %v7943_v51 = vld [vmem:[#allocation7_spill] sm:$0xff]  ;;  %v7944_v33 = vld [vmem:[#allocation152_spill] sm:$0xff] }
 0x45b   : > { %v1487_v3 = vmul.f32 %v7937_v8, %v1465_v55  ;;  %v5916_v44 = vsel %vm1254_vm7, %v7939_v7, %v7938_v40  ;;  %v1424_v5 = vmul.f32 %v7940_v42, %v1388_v14  ;;  %v1569_v38 = vsel %vm1566_vm10, %v7942_v1, %v7941_v17  ;;  %2447 = vrot.lane.b32.xlu1 %v7943_v51, %s3438_s19  ;;  %v7945_v53 = vld [vmem:[#allocation142_spill] sm:$0xff] }
 0x45c   : > { %7935 = vst [vmem:[#allocation45_spill] sm:$0xff] %v5907_v10  ;;  %v1492_v58 = vmul.f32 %v7936_v21, %v1474_v61  ;;  %v1575_v55 = vsel %vm1566_vm10, %v7941_v17, %v7942_v1  ;;  %v1493_v0 = vmul.f32 %v7937_v8, %v1468_v16  ;;  %v1522_v26 = vmul.f32 %v7944_v33, %v1486_v59 }
 0x45d   : > { %v1523_v14 = vmul.f32 %v7944_v33, %v1487_v3  ;;  %2449 = vrot.lane.b32.xlu2 %v3685_v32, %s3438_s19  ;;  %v1332_v10 = vadd.f32 %v1320_v11, %v1228_v27  ;;  %v1333_v54 = vadd.f32 %v1321_v36, %v1229_v56  ;;  %v1425_v61 = vmul.f32 %v7940_v42, %v1389_v62  ;;  %v5936_v34 = vpop.permute.xlu1 %2206  ;;  %v2252_v42 = vpop.permute.xlu2 %2251  ;;  %v7949_v62 = vld [vmem:[#allocation136_spill] sm:$0xff] }
 0x45e   : > { %v1430_v21 = vadd.f32 %v1418_v60, %v1326_v4  ;;  %v1431_v35 = vadd.f32 %v1419_v18, %v1327_v20  ;;  %v1578_v1 = vsel %vm1566_vm10, %v7946_v49, %v7945_v53  ;;  %v2154_v59 = vsel %vm2153_vm12, %v5517_v52, %v5638_v22  ;;  %v7947_v4 = vld [vmem:[#allocation176_spill] sm:$0xff]  ;;  %v7948_v20 = vld [vmem:[#allocation177_spill] sm:$0xff] }
 0x45f   : > { %v2160_v27 = vsel %vm2153_vm12, %v5638_v22, %v5517_v52  ;;  %v1436_v56 = vadd.f32 %v1424_v5, %v1332_v10  ;;  %v1590_v11 = vmul.f32 %v7947_v4, %v1575_v55  ;;  %v1591_v36 = vmul.f32 %v7948_v20, %v1569_v38 }
 0x460   : > { %v1528_v60 = vmul.f32 %v7949_v62, %v1492_v58  ;;  %2769 = vrot.lane.b32.xlu0 %v7841_v30, %s3444_s18  ;;  %v1572_v16 = vsel %vm1566_vm10, %v7945_v53, %v7946_v49  ;;  %v1529_v18 = vmul.f32 %v7949_v62, %v1493_v0  ;;  %v1534_v3 = vadd.f32 %v1522_v26, %v1430_v21  ;;  %v7950_v58 = vld [vmem:[#allocation150_spill] sm:$0xff] }
 0x461   : > { %v1535_v52 = vadd.f32 %v1523_v14, %v1431_v35  ;;  %v1437_v22 = vadd.f32 %v1425_v61, %v1333_v54  ;;  %v1596_v10 = vmul.f32 %v7947_v4, %v1578_v1  ;;  %v2173_v5 = vmul.f32 %v7842_v41, %v2154_v59  ;;  %v5963_v38 = vpop.permute.xlu0 %2553  ;;  %v7953_v0 = vld [vmem:[#allocation10_spill] sm:$0xff]  ;;  %v7955_v61 = vld [vmem:[#allocation161_spill] sm:$0xff] }
 0x462   : > { %v2174_v17 = vmul.f32 %v7843_v29, %v2160_v27  ;;  %v1626_v55 = vmul.f32 %v7950_v58, %v1590_v11  ;;  %v1627_v33 = vmul.f32 %v7950_v58, %v1591_v36  ;;  %v2258_v49 = vsel %vm7951_vm1, %v5725_v13, %v2246_v15  ;;  %v7954_v14 = vld [vmem:[#allocation22_spill] sm:$0xff]  ;;  %v7960_v36 = vld [vmem:[#allocation233_spill] sm:$0xff]  ;;  %vm7970_vm1 = vmmov %vm7958_vm3 }
 0x463   : > { %v2264_v35 = vsel %vm7952_vm2, %v2246_v15, %v5725_v13  ;;  %v1597_v53 = vmul.f32 %v7948_v20, %v1572_v16  ;;  %v1540_v21 = vadd.f32 %v1528_v60, %v1436_v56  ;;  %v2209_v26 = vmul.f32 %v5795_v39, %v2173_v5  ;;  %2453 = vrot.lane.b32.xlu1 %v7953_v0, %s3438_s19  ;;  %v7956_v13 = vld [vmem:[#allocation189_spill] sm:$0xff]  ;;  %v7957_v15 = vld [vmem:[#allocation184_spill] sm:$0xff]  ;;  %v7961_v60 = vld [vmem:[#allocation234_spill] sm:$0xff] }
 0x464   : > { %v2210_v54 = vmul.f32 %v5795_v39, %v2174_v17  ;;  %v5980_v1 = vmul.f32 %v7955_v61, %v7954_v14  ;;  %v1541_v59 = vadd.f32 %v1529_v18, %v1437_v22  ;;  %v5982_v27 = vadd.f32 %v1626_v55, %v1534_v3  ;;  %v7962_v3 = vld [vmem:[#allocation25_spill] sm:$0xff]  ;;  %v7963_v22 = vld [vmem:[#allocation167_spill] sm:$0xff] }
 0x465   : > { %v5984_v11 = vadd.f32 %v1627_v33, %v1535_v52  ;;  %2455 = vrot.lane.b32.xlu2 %v3705_v2, %s3438_s19  ;;  %v1676_v39 = vsel %vm7958_vm3, %v7957_v15, %v7956_v13  ;;  %v1682_v56 = vsel %vm7959_vm4, %v7956_v13, %v7957_v15  ;;  %v2277_v62 = vmul.f32 %v7960_v36, %v2258_v49  ;;  %v5998_v18 = vpop.permute.xlu1 %2237  ;;  %v7964_v5 = vld [vmem:[#allocation163_spill] sm:$0xff]  ;;  %v2291_v55 = vpop.permute.xlu2 %2290  ;;  %v7965_v33 = vld [vmem:[#allocation217_spill] sm:$0xff]  ;;  %vm7974_vm3 = vmmov %vm7952_vm2 }
 0x466   : > { %v2278_v16 = vmul.f32 %v7961_v60, %v2264_v35  ;;  %v6002_v52 = vmul.f32 %v7955_v61, %v7962_v3  ;;  %v1844_v17 = vsel %vm1841_vm13, %v7964_v5, %v7963_v22  ;;  %v1850_v58 = vsel %vm1841_vm13, %v7963_v22, %v7964_v5  ;;  %v7966_v35 = vld [vmem:[#allocation218_spill] sm:$0xff]  ;;  %v7967_v15 = vld [vmem:[#allocation187_spill] sm:$0xff]  ;;  %vm8008_vm4 = vmmov %vm7952_vm2 }
 0x467   : > { %v2221_v49 = vadd.f32 %v2209_v26, %v7965_v33  ;;  %v2222_v14 = vadd.f32 %v2210_v54, %v7966_v35  ;;  %v2313_v13 = vmul.f32 %v2291_v55, %v2277_v62  ;;  %v7968_v3 = vld [vmem:[#allocation183_spill] sm:$0xff]  ;;  %v7972_v33 = vld [vmem:[#allocation180_spill] sm:$0xff]  ;;  %v7973_v62 = vld [vmem:[#allocation174_spill] sm:$0xff]  ;;  %v2261_v32 = vsel %vm7952_vm2, %v5808_v43, %v2252_v42 }
 0x468   : > { %v2314_v61 = vmul.f32 %v2291_v55, %v2278_v16  ;;  %2971 = vrot.lane.b32.xlu0 %v3688_v25, %s3447_s10  ;;  %v1673_v30 = vsel %vm7969_vm6, %v7968_v3, %v7967_v15  ;;  %v1679_v22 = vsel %vm7970_vm1, %v7967_v15, %v7968_v3  ;;  %v7971_v5 = vld [vmem:[#allocation179_spill] sm:$0xff]  ;;  %v1701_v54 = vmul.f32 %v7972_v33, %v1676_v39  ;;  %vm8009_vm6 = vmmov %vm7952_vm2 }
 0x469   : > { %v1700_v26 = vmul.f32 %v7971_v5, %v1682_v56  ;;  %v1632_v16 = vmul.f32 %v7973_v62, %v1596_v10  ;;  %v1633_v55 = vmul.f32 %v7973_v62, %v1597_v53  ;;  %v2325_v35 = vadd.f32 %v2313_v13, %v2221_v49  ;;  %v2560_v0 = vpop.permute.xlu0 %2559  ;;  %vm8012_vm1 = vmmov %vm7952_vm2 }
 0x46a   : > { %v2326_v2 = vadd.f32 %v2314_v61, %v2222_v14  ;;  %v2267_v25 = vsel %vm7974_vm3, %v2252_v42, %v5808_v43  ;;  %v6038_v56 = vsel %vm2569_vm5, %v5903_v46, %v2560_v0  ;;  %v6043_v10 = vsel %vm2569_vm5, %v2560_v0, %v5903_v46  ;;  %v7977_v42 = vld [vmem:[#allocation172_spill] sm:$0xff]  ;;  %v7978_v14 = vld [vmem:[#allocation165_spill] sm:$0xff]  ;;  %vm8013_vm2 = vmmov %vm8012_vm1 }
 0x46b   : > { %v1694_v53 = vmul.f32 %v7971_v5, %v1679_v22  ;;  %v1695_v39 = vmul.f32 %v7972_v33, %v1673_v30  ;;  %2459 = vrot.lane.b32.xlu1 %v3713_v47, %s3438_s19  ;;  %v6050_v49 = vadd.f32 %v5420_v9, %v2325_v35  ;;  %v1847_v13 = vsel %vm1841_vm13, %v7978_v14, %v7977_v42  ;;  %v7979_v30 = vld [vmem:[#allocation188_spill] sm:$0xff] }
 0x46c   : > { %v6053_v43 = vadd.f32 %v5422_v31, %v2326_v2  ;;  %v1853_v46 = vsel %vm1841_vm13, %v7977_v42, %v7978_v14  ;;  %v1736_v0 = vmul.f32 %v7979_v30, %v1700_v26  ;;  %v1737_v61 = vmul.f32 %v7979_v30, %v1701_v54  ;;  %v7980_v9 = vld [vmem:[#allocation192_spill] sm:$0xff] }
 0x46d   : > { %7975 = vst [vmem:[#allocation49_spill] sm:$0xff] %v6050_v49  ;;  %2461 = vrot.lane.b32.xlu2 %v7858_v45, %s3438_s19  ;;  %v1730_v2 = vmul.f32 %v7980_v9, %v1694_v53  ;;  %v1731_v31 = vmul.f32 %v7980_v9, %v1695_v39  ;;  %v2283_v15 = vmul.f32 %v7960_v36, %v2261_v32  ;;  %v6071_v22 = vpop.permute.xlu1 %2243  ;;  %v2303_v54 = vpop.permute.xlu2 %2302  ;;  %v6084_v32 = vld [vmem:[%s7164_s3 + $0x20] sm:$0xff]  ;;  %v7987_v9 = vld [vmem:[#allocation23_spill] sm:$0xff] }
 0x46e   : > { %7976 = vst [vmem:[#allocation51_spill] sm:$0xff] %v6053_v43  ;;  %v2284_v3 = vmul.f32 %v7961_v60, %v2267_v25  ;;  %v1865_v62 = vmul.f32 %v5005_v50, %v1844_v17  ;;  %v1866_v35 = vmul.f32 %v5007_v19, %v1850_v58  ;;  %v1644_v26 = vadd.f32 %v1632_v16, %v1540_v21  ;;  %v7983_v21 = vld [vmem:[#allocation226_spill] sm:$0xff] }
 0x46f   : > { %v1645_v42 = vadd.f32 %v1633_v55, %v1541_v59  ;;  %v1871_v14 = vmul.f32 %v5005_v50, %v1847_v13  ;;  %v1872_v30 = vmul.f32 %v5007_v19, %v1853_v46  ;;  %v6077_v53 = vmul.f32 %v2303_v54, %v2283_v15  ;;  %v7984_v59 = vld [vmem:[#allocation219_spill] sm:$0xff]  ;;  %v7985_v55 = vld [vmem:[#allocation26_spill] sm:$0xff] }
 0x470   : > { %v6079_v39 = vmul.f32 %v2303_v54, %v2284_v3  ;;  %2930 = vperm.xlu0 %3361, %v6084_v32   ;;  %v1748_v25 = vadd.f32 %v1736_v0, %v1644_v26  ;;  %v1951_v58 = vsel %vm1945_vm14, %v7984_v59, %v7983_v21  ;;  %v1957_v16 = vsel %vm1945_vm14, %v7983_v21, %v7984_v59  ;;  %v7986_v13 = vld [vmem:[#allocation190_spill] sm:$0xff] }
 0x471   : > { %7981 = vst [vmem:[#allocation53_spill] sm:$0xff] %v6077_v53  ;;  %v1749_v17 = vadd.f32 %v1737_v61, %v1645_v42  ;;  %v1797_v46 = vmul.f32 %v7986_v13, %v7985_v55  ;;  %v1798_v15 = vmul.f32 %v7986_v13, %v7987_v9  ;;  %v1742_v3 = vadd.f32 %v1730_v2, %v5982_v27  ;;  %v3217_v61 = vld [vmem:[%s7166_s5 + $0x24] ss:$8 sm:$0x3]  ;;  %v2566_v26 = vpop.permute.xlu0 %2565 }
 0x472   : > { %7982 = vst [vmem:[#allocation57_spill] sm:$0xff] %v6079_v39  ;;  %v1743_v0 = vadd.f32 %v1731_v31, %v5984_v11  ;;  %v7988_v42 = vld [vmem:[#allocation239_spill] sm:$0xff]  ;;  %v7989_v54 = vld [vmem:[#allocation230_spill] sm:$0xff]  ;;  %v6115_v27 = vsel %vm2569_vm5, %v5963_v38, %v2566_v26  ;;  %v6120_v11 = vsel %vm2569_vm5, %v2566_v26, %v5963_v38  ;;  %v1975_v13 = vmul.f32 %v5012_v23, %v1951_v58 }
 0x473   : > { %v2055_v21 = vsel %vm2049_vm15, %v7989_v54, %v7988_v42  ;;  %v2061_v59 = vsel %vm2049_vm15, %v7988_v42, %v7989_v54  ;;  %7990 = vst [vmem:[#allocation55_spill] sm:$0xff] %v6115_v27  ;;  %v7992_v2 = vld [vmem:[#allocation206_spill] sm:$0xff]  ;;  %v1976_v9 = vmul.f32 %v5014_v37, %v1957_v16  ;;  %v1815_v54 = vadd.f32 %v5980_v1, %v1748_v25 }
 0x474   : > { %7991 = vst [vmem:[#allocation62_spill] sm:$0xff] %v6120_v11  ;;  %v1907_v31 = vmul.f32 %v7992_v2, %v1871_v14  ;;  %v1908_v55 = vmul.f32 %v7992_v2, %v1872_v30  ;;  %v6129_v42 = vld [vmem:[%s7164_s3] sm:$0xff]  ;;  %v1816_v38 = vadd.f32 %v6002_v52, %v1749_v17  ;;  %v6134_v26 = vperm.slane %v3217_v61, 0  ;;  %v6141_v30 = vld [vmem:[%s7164_s3 + $0x8] sm:$0xff] }
 0x475   : > { %7993 = vst [vmem:[#allocation61_spill] sm:$0xff] %v6129_v42  ;;  %2498 = vperm.xlu1 %3350, %v6129_v42   ;;  %v6136_v14 = vperm.slane %v3217_v61, 1  ;;  %2502 = vperm.xlu2 %3351, %v6141_v30   ;;  %v7997_v58 = vld [vmem:[#allocation222_spill] sm:$0xff]  ;;  %v2079_v52 = vmul.f32 %v5017_v48, %v2055_v21  ;;  %v2080_v25 = vmul.f32 %v5019_v57, %v2061_v59  ;;  %v2250_v17 = vpop.permute.xlu1 %2249  ;;  %v8000_v42 = vld [vmem:[#allocation223_spill] sm:$0xff] }
 0x476   : > { %7994 = vst [vmem:[#allocation59_spill] sm:$0xff] %v6134_v26  ;;  %v7998_v16 = vld [vmem:[#allocation214_spill] sm:$0xff]  ;;  %v1809_v43 = vadd.f32 %v1797_v46, %v1742_v3  ;;  %v1810_v49 = vadd.f32 %v1798_v15, %v1743_v0  ;;  %v1919_v39 = vadd.f32 %v1907_v31, %v1815_v54  ;;  %v1920_v53 = vadd.f32 %v1908_v55, %v1816_v38  ;;  %v8001_v46 = vld [vmem:[#allocation236_spill] sm:$0xff]  ;;  %v8002_v15 = vld [vmem:[#allocation227_spill] sm:$0xff] }
 0x477   : > { %7995 = vst [vmem:[#allocation56_spill] sm:$0xff] %v6136_v14  ;;  %v1948_v2 = vsel %vm1945_vm14, %v7998_v16, %v7997_v58  ;;  %v1954_v1 = vsel %vm1945_vm14, %v7997_v58, %v7998_v16  ;;  %v7999_v61 = vld [vmem:[#allocation178_spill] sm:$0xff]  ;;  %v2011_v19 = vmul.f32 %v8000_v42, %v1975_v13  ;;  %v2012_v50 = vmul.f32 %v8000_v42, %v1976_v9  ;;  %v8005_v54 = vld [vmem:[#allocation211_spill] sm:$0xff] }
 0x478   : > { %7996 = vst [vmem:[#allocation63_spill] sm:$0xff] %v6141_v30  ;;  %v1901_v11 = vmul.f32 %v7999_v61, %v1865_v62  ;;  %v1902_v27 = vmul.f32 %v7999_v61, %v1866_v35  ;;  %v2311_v30 = vpop.permute.xlu2 %2310  ;;  %2875 = vrot.lane.b32.xlu0 %v3713_v47, %s3445_s9  ;;  %v1969_v21 = vmul.f32 %v5012_v23, %v1948_v2  ;;  %v8003_v31 = vld [vmem:[#allocation202_spill] sm:$0xff] }
 0x479   : > { %v1970_v59 = vmul.f32 %v5014_v37, %v1954_v1  ;;  %v2591_v62 = vmul.f32 %v6134_v26, %v6038_v56  ;;  %v2592_v35 = vmul.f32 %v6136_v14, %v6043_v10  ;;  %v2052_v3 = vsel %vm2049_vm15, %v8002_v15, %v8001_v46  ;;  %v2607_v9 = vpop.permute.xlu0 %2606  ;;  %v8004_v42 = vld [vmem:[#allocation210_spill] sm:$0xff]  ;;  %v8006_v1 = vld [vmem:[#allocation229_spill] sm:$0xff] }
 0x47a   : > { %v2058_v0 = vsel %vm2049_vm15, %v8001_v46, %v8002_v15  ;;  %v2115_v55 = vmul.f32 %v8003_v31, %v2079_v52  ;;  %v2116_v13 = vmul.f32 %v8003_v31, %v2080_v25  ;;  %v2183_v56 = vmul.f32 %v7842_v41, %v8004_v42  ;;  %v6189_v52 = vld [vmem:[%s7164_s3 + $0x18] sm:$0xff]  ;;  %v3218_v26 = vld [vmem:[%s7166_s5 + $0x25] ss:$8 sm:$0x3] }
 0x47b   : > { %v2184_v10 = vmul.f32 %v7843_v29, %v8005_v54  ;;  %v6180_v38 = vmul.f32 %v2607_v9, %v2591_v62  ;;  %v6182_v58 = vmul.f32 %v2607_v9, %v2592_v35  ;;  %v2023_v16 = vadd.f32 %v2011_v19, %v1919_v39  ;;  %v8007_v15 = vld [vmem:[#allocation241_spill] sm:$0xff] }
 0x47c   : > { %v2024_v2 = vadd.f32 %v2012_v50, %v1920_v53  ;;  %v2005_v61 = vmul.f32 %v8006_v1, %v1969_v21  ;;  %v2006_v46 = vmul.f32 %v8006_v1, %v1970_v59  ;;  %v2073_v25 = vmul.f32 %v5017_v48, %v2052_v3 }
 0x47d   : > { %2510 = vperm.xlu1 %3350, %v6189_v52   ;;  %v2074_v62 = vmul.f32 %v5019_v57, %v2058_v0  ;;  %v2219_v35 = vmul.f32 %v5936_v34, %v2183_v56  ;;  %v2220_v19 = vmul.f32 %v5936_v34, %v2184_v10  ;;  %2514 = vperm.xlu2 %3351, %v6084_v32   ;;  %v2256_v59 = vpop.permute.xlu1 %2255 }
 0x47e   : > { %v1913_v50 = vadd.f32 %v1901_v11, %v1809_v43  ;;  %v1914_v53 = vadd.f32 %v1902_v27, %v1810_v49  ;;  %v2127_v39 = vadd.f32 %v2115_v55, %v2023_v16  ;;  %v2128_v21 = vadd.f32 %v2116_v13, %v2024_v2  ;;  %v8010_v43 = vld [vmem:[#allocation123_spill] sm:$0xff]  ;;  %v8011_v27 = vld [vmem:[#allocation126_spill] sm:$0xff] }
 0x47f   : > { %v2109_v31 = vmul.f32 %v8007_v15, %v2073_v25  ;;  %v2110_v9 = vmul.f32 %v8007_v15, %v2074_v62  ;;  %v2263_v3 = vsel %vm8008_vm4, %v6071_v22, %v2256_v59  ;;  %v2269_v34 = vsel %vm8009_vm6, %v2256_v59, %v6071_v22 }
 0x480   : > { %v6199_v42 = vpop.permute.xlu2 %2341  ;;  %v1265_v49 = vsel %vm1254_vm7, %v7938_v40, %v7939_v7  ;;  %v1264_v11 = vsel %vm1254_vm7, %v8011_v27, %v8010_v43  ;;  %v2287_v0 = vmul.f32 %v7960_v36, %v2263_v3  ;;  %v2288_v55 = vmul.f32 %v7961_v60, %v2269_v34  ;;  %2967 = vrot.lane.b32.xlu0 %v7943_v51, %s3447_s10 }
 0x481   : > { %v2017_v13 = vadd.f32 %v2005_v61, %v1913_v50  ;;  %v2018_v56 = vadd.f32 %v2006_v46, %v1914_v53  ;;  %v2231_v22 = vadd.f32 %v2219_v35, %v2127_v39  ;;  %v2232_v54 = vadd.f32 %v2220_v19, %v2128_v21  ;;  %v6225_v2 = vpop.permute.xlu0 %2649  ;;  %v8015_v50 = vld [vmem:[#allocation121_spill] sm:$0xff] }
 0x482   : > { %v2260_v7 = vsel %vm8012_vm1, %v5998_v18, %v2250_v17  ;;  %v2266_v40 = vsel %vm8013_vm2, %v2250_v17, %v5998_v18  ;;  %v2323_v10 = vmul.f32 %v2311_v30, %v2287_v0  ;;  %v2324_v16 = vmul.f32 %v2311_v30, %v2288_v55  ;;  %v6242_v30 = vld [vmem:[%s7164_s3 + $0x28] sm:$0xff]  ;;  %v8014_v17 = vld [vmem:[#allocation124_spill] sm:$0xff]  ;;  %v8016_v21 = vld [vmem:[#allocation125_spill] sm:$0xff] }
 0x483   : > { %v1282_v1 = vmul.f32 %v7907_v6, %v1265_v49  ;;  %v1258_v61 = vsel %vm1254_vm7, %v8010_v43, %v8011_v27  ;;  %v2121_v46 = vadd.f32 %v2109_v31, %v2017_v13  ;;  %v2122_v25 = vadd.f32 %v2110_v9, %v2018_v56  ;;  %v8017_v9 = vld [vmem:[#allocation129_spill] sm:$0xff]  ;;  %v8019_v27 = vld [vmem:[#allocation215_spill] sm:$0xff]  ;;  %v8020_v0 = vld [vmem:[#allocation216_spill] sm:$0xff] }
 0x484   : > { %v1283_v62 = vmul.f32 %v7908_v24, %v5916_v44  ;;  %v1280_v35 = vmul.f32 %v7907_v6, %v1264_v11  ;;  %v6235_v19 = vadd.f32 %v2323_v10, %v2231_v22  ;;  %v6237_v18 = vadd.f32 %v2324_v16, %v2232_v54  ;;  %v8021_v22 = vld [vmem:[#allocation38_spill] sm:$0xff]  ;;  %v8025_v16 = vld [vmem:[#allocation52_spill] sm:$0xff] }
 0x485   : > { %2518 = vperm.xlu1 %3350, %v6242_v30   ;;  %v1363_v53 = vsel %vm1358_vm9, %v8015_v50, %v8014_v17  ;;  %v1369_v6 = vsel %vm1358_vm9, %v8014_v17, %v8015_v50  ;;  %v2281_v44 = vmul.f32 %v7960_v36, %v2260_v7  ;;  %v2282_v39 = vmul.f32 %v7961_v60, %v2266_v40  ;;  %v2299_v34 = vpop.permute.xlu1 %2298  ;;  %v8022_v7 = vld [vmem:[#allocation44_spill] sm:$0xff]  ;;  %v8023_v40 = vld [vmem:[#allocation42_spill] sm:$0xff]  ;;  %v8028_v17 = vld [vmem:[#allocation127_spill] sm:$0xff] }
 0x486   : > { %2545 = vrot.lane.b32.xlu2 %v7915_v12, %s3440_s15  ;;  %v1318_v59 = vmul.f32 %v8016_v21, %v1282_v1  ;;  %v1319_v15 = vmul.f32 %v8016_v21, %v1283_v62  ;;  %v1281_v31 = vmul.f32 %v7908_v24, %v1258_v61  ;;  %v1316_v3 = vmul.f32 %v8017_v9, %v1280_v35  ;;  %v8024_v24 = vld [vmem:[#allocation46_spill] sm:$0xff]  ;;  %v6276_v62 = vld [vmem:[%s7164_s3 + $0x10] sm:$0xff]  ;;  %v8030_v21 = vld [vmem:[#allocation45_spill] sm:$0xff] }
 0x487   : > { %v8018_v49 = vmov 20   ;;  %v2225_v11 = vadd.f32 %v8019_v27, %v2121_v46  ;;  %v2226_v55 = vadd.f32 %v8020_v0, %v2122_v25  ;;  %v2317_v13 = vmul.f32 %v2299_v34, %v2281_v44  ;;  %v8026_v46 = vld [vmem:[#allocation35_spill] sm:$0xff]  ;;  %v8066_v12 = vld [vmem:[#allocation30_spill] sm:$0xff] }
 0x488   : > { %3353 = vset.pattern.permute.xlu2 %v8018_v49  ;;  %v6262_v43 = vpop.permute.xlu2 %2347  ;;  %v2318_v56 = vmul.f32 %v2299_v34, %v2282_v39  ;;  %v1121_v54 = vadd.f32 %v8021_v22, %v5708_v63  ;;  %v1226_v10 = vadd.f32 %v8023_v40, %v8022_v7  ;;  %v1227_v1 = vadd.f32 %v8025_v16, %v8024_v24  ;;  %v8027_v25 = vld [vmem:[#allocation43_spill] sm:$0xff] }
 0x489   : > { %v1317_v61 = vmul.f32 %v8017_v9, %v1281_v31  ;;  %2922 = vperm.xlu0 %3361, %v6276_v62   ;;  %v1224_v35 = vadd.f32 %v8027_v25, %v8026_v46  ;;  %v8029_v63 = vld [vmem:[#allocation131_spill] sm:$0xff]  ;;  %v6285_v44 = vadd.f32 %v2317_v13, %v2225_v11  ;;  %v8031_v9 = vld [vmem:[#allocation170_spill] sm:$0xff]  ;;  %v6292_v7 = vpop.permute.xlu0 %2655  ;;  %vm2673_vm7 = vcmp.lt.s32.totalorder %v3785_v28, 97 }
 0x48a   : > { %v1368_v50 = vsel %vm1358_vm9, %v8029_v63, %v8028_v17  ;;  %v6287_v39 = vadd.f32 %v2318_v56, %v2226_v55  ;;  %v1225_v31 = vadd.f32 %v8030_v21, %v1121_v54  ;;  %v1386_v34 = vmul.f32 %v8031_v9, %v1369_v6  ;;  %v8032_v27 = vld [vmem:[#allocation171_spill] sm:$0xff]  ;;  %v8037_v13 = vld [vmem:[#allocation6_spill] sm:$0xff] }
 0x48b   : > { %v1387_v0 = vmul.f32 %v8032_v27, %v1363_v53  ;;  %v1330_v22 = vadd.f32 %v1318_v59, %v1226_v10  ;;  %v1331_v40 = vadd.f32 %v1319_v15, %v1227_v1  ;;  %v1328_v24 = vadd.f32 %v1316_v3, %v1224_v35  ;;  %v8033_v16 = vld [vmem:[#allocation155_spill] sm:$0xff]  ;;  %v8035_v59 = vld [vmem:[#allocation128_spill] sm:$0xff]  ;;  %v8040_v35 = vld [vmem:[#allocation146_spill] sm:$0xff] }
 0x48c   : > { %v8034_v46 = vld [vmem:[#allocation151_spill] sm:$0xff]  ;;  %v1329_v55 = vadd.f32 %v1317_v61, %v1225_v31  ;;  %v1362_v53 = vsel %vm1358_vm9, %v8028_v17, %v8029_v63  ;;  %v1384_v6 = vmul.f32 %v8031_v9, %v1368_v50  ;;  %v8036_v15 = vld [vmem:[#allocation132_spill] sm:$0xff]  ;;  %v1422_v17 = vmul.f32 %v8040_v35, %v1386_v34  ;;  %v8041_v50 = vld [vmem:[#allocation169_spill] sm:$0xff] }
 0x48d   : > { %v1467_v25 = vsel %vm1462_vm8, %v8034_v46, %v8033_v16  ;;  %v1473_v11 = vsel %vm1462_vm8, %v8033_v16, %v8034_v46  ;;  %v1472_v3 = vsel %vm1462_vm8, %v8036_v15, %v8035_v59  ;;  %2549 = vrot.lane.b32.xlu1 %v8037_v13, %s3440_s15  ;;  %v1466_v56 = vsel %vm1462_vm8, %v8035_v59, %v8036_v15  ;;  %v8038_v54 = vld [vmem:[#allocation231_spill] sm:$0xff]  ;;  %v8039_v1 = vld [vmem:[#allocation232_spill] sm:$0xff]  ;;  %v2307_v9 = vpop.permute.xlu1 %2306 }
 0x48e   : > { %v2285_v10 = vmul.f32 %v7960_v36, %v8038_v54  ;;  %v2286_v61 = vmul.f32 %v7961_v60, %v8039_v1  ;;  %2551 = vrot.lane.b32.xlu2 %v7943_v51, %s3440_s15  ;;  %3355 = vset.pattern.permute.xlu1 %v8018_v49  ;;  %v1423_v63 = vmul.f32 %v8040_v35, %v1387_v0  ;;  %v8044_v15 = vld [vmem:[#allocation156_spill] sm:$0xff]  ;;  %v8046_v35 = vld [vmem:[#allocation157_spill] sm:$0xff]  ;;  %vm8048_vm8 = vcmp.lt.s32.totalorder %v3785_v28, 1 }
 0x48f   : > { %v1490_v21 = vmul.f32 %v8041_v50, %v1473_v11  ;;  %v1491_v31 = vmul.f32 %v7937_v8, %v1467_v25  ;;  %v1385_v16 = vmul.f32 %v8032_v27, %v1362_v53  ;;  %v1488_v36 = vmul.f32 %v8041_v50, %v1472_v3  ;;  %v8042_v25 = vld [vmem:[#allocation135_spill] sm:$0xff]  ;;  %v8047_v50 = vld [vmem:[#allocation154_spill] sm:$0xff]  ;;  %vm8049_vm9 = vmmov %vm8048_vm8 }
 0x490   : > { %v2354_v46 = vpop.permute.xlu2 %2353  ;;  %v6330_v60 = vmul.f32 %v2307_v9, %v2285_v10  ;;  %v6332_v59 = vmul.f32 %v2307_v9, %v2286_v61  ;;  %v1489_v49 = vmul.f32 %v7937_v8, %v1466_v56  ;;  %v7501_v27 = vmov 24   ;;  %v8043_v8 = vld [vmem:[#allocation159_spill] sm:$0xff]  ;;  %v8045_v10 = vld [vmem:[#allocation153_spill] sm:$0xff]  ;;  %vm8061_vm3 = vmmov %vm8048_vm8 }
 0x491   : > { %v6338_v34 = vsel %vm2361_vm11, %v6199_v42, %v2354_v46  ;;  %v6343_v0 = vsel %vm2361_vm11, %v2354_v46, %v6199_v42  ;;  %3365 = vset.pattern.permute.xlu0 %v7501_v27  ;;  %v1420_v11 = vmul.f32 %v8042_v25, %v1384_v6  ;;  %v1421_v53 = vmul.f32 %v8042_v25, %v1385_v16  ;;  %v2662_v61 = vpop.permute.xlu0 %2661  ;;  %v8051_v25 = vld [vmem:[#allocation9_spill] sm:$0xff] }
 0x492   : > { %v1571_v3 = vsel %vm1566_vm10, %v8044_v15, %v8043_v8  ;;  %v1577_v42 = vsel %vm1566_vm10, %v8043_v8, %v8044_v15  ;;  %3034 = vperm.xlu0 %3365, %v6084_v32   ;;  %v1434_v56 = vadd.f32 %v1422_v17, %v1330_v22  ;;  %v1435_v54 = vadd.f32 %v1423_v63, %v1331_v40  ;;  %v8050_v17 = vld [vmem:[#allocation158_spill] sm:$0xff] }
 0x493   : > { %v1526_v1 = vmul.f32 %v8045_v10, %v1490_v21  ;;  %v1527_v6 = vmul.f32 %v8045_v10, %v1491_v31  ;;  %v1675_v9 = vsel %vm8048_vm8, %v8047_v50, %v8046_v35  ;;  %v1681_v16 = vsel %vm8049_vm9, %v8046_v35, %v8047_v50  ;;  %v8052_v10 = vld [vmem:[#allocation8_spill] sm:$0xff]  ;;  %v8053_v35 = vld [vmem:[#allocation181_spill] sm:$0xff] }
 0x494   : > { %v6371_v22 = vsel %vm2673_vm7, %v6225_v2, %v2662_v61  ;;  %v6376_v40 = vsel %vm2673_vm7, %v2662_v61, %v6225_v2  ;;  %v1524_v63 = vmul.f32 %v8050_v17, %v1488_v36  ;;  %v1525_v21 = vmul.f32 %v8050_v17, %v1489_v49  ;;  %v8054_v2 = vld [vmem:[#allocation182_spill] sm:$0xff] }
 0x495   : > { %v1594_v31 = vmul.f32 %v7947_v4, %v1577_v42  ;;  %v1595_v46 = vmul.f32 %v7948_v20, %v1571_v3  ;;  %2555 = vrot.lane.b32.xlu1 %v8051_v25, %s3440_s15  ;;  %v1432_v8 = vadd.f32 %v1420_v11, %v1328_v24  ;;  %v1433_v15 = vadd.f32 %v1421_v53, %v1329_v55  ;;  %v8055_v36 = vld [vmem:[#allocation10_spill] sm:$0xff]  ;;  %v6396_v14 = vpop.permute.xlu1 %2339  ;;  %v8057_v11 = vld [vmem:[#allocation164_spill] sm:$0xff] }
 0x496   : > { %v6386_v50 = vmul.f32 %v8053_v35, %v8052_v10  ;;  %v6390_v61 = vmul.f32 %v8054_v2, %v7858_v45  ;;  %2557 = vrot.lane.b32.xlu2 %v8055_v36, %s3440_s15  ;;  %v1538_v49 = vadd.f32 %v1526_v1, %v1434_v56  ;;  %v1539_v42 = vadd.f32 %v1527_v6, %v1435_v54  ;;  %v8056_v17 = vld [vmem:[#allocation162_spill] sm:$0xff]  ;;  %v8058_v53 = vld [vmem:[#allocation160_spill] sm:$0xff] }
 0x497   : > { %v1630_v3 = vmul.f32 %v8056_v17, %v1594_v31  ;;  %v1631_v27 = vmul.f32 %v8056_v17, %v1595_v46  ;;  %v1698_v24 = vmul.f32 %v7971_v5, %v1681_v16  ;;  %v1699_v55 = vmul.f32 %v7972_v33, %v1675_v9  ;;  %v8059_v31 = vld [vmem:[#allocation175_spill] sm:$0xff]  ;;  %v8060_v46 = vld [vmem:[#allocation166_spill] sm:$0xff] }
 0x498   : > { %v1570_v35 = vsel %vm1566_vm10, %v8058_v53, %v8057_v11  ;;  %v1576_v56 = vsel %vm1566_vm10, %v8057_v11, %v8058_v53  ;;  %v2360_v54 = vpop.permute.xlu2 %2359  ;;  %v6408_v1 = vadd.f32 %v1524_v63, %v1432_v8  ;;  %v6410_v6 = vadd.f32 %v1525_v21, %v1433_v15  ;;  %vm8062_vm10 = vmmov %vm8061_vm3  ;;  %v8063_v21 = vld [vmem:[#allocation27_spill] sm:$0xff]  ;;  %v8064_v15 = vld [vmem:[#allocation32_spill] sm:$0xff] }
 0x499   : > { %v2367_v16 = vsel %vm2361_vm11, %v6262_v43, %v2360_v54  ;;  %v2373_v9 = vsel %vm2361_vm11, %v2360_v54, %v6262_v43  ;;  %v1674_v2 = vsel %vm8061_vm3, %v8060_v46, %v8059_v31  ;;  %v1680_v63 = vsel %vm8062_vm10, %v8059_v31, %v8060_v46  ;;  %v8065_v11 = vld [vmem:[#allocation11_spill] sm:$0xff]  ;;  %v2668_v51 = vpop.permute.xlu0 %2667 }
 0x49a   : > { %v2391_v8 = vmul.f32 %v8063_v21, %v2367_v16  ;;  %v2392_v17 = vmul.f32 %v8064_v15, %v2373_v9  ;;  %2871 = vrot.lane.b32.xlu0 %v8065_v11, %s3445_s9  ;;  %v1642_v53 = vadd.f32 %v1630_v3, %v1538_v49  ;;  %v1643_v36 = vadd.f32 %v1631_v27, %v1539_v42  ;;  %v8069_v49 = vld [vmem:[#allocation194_spill] sm:$0xff] }
 0x49b   : > { %v1592_v43 = vmul.f32 %v7947_v4, %v1576_v56  ;;  %v1593_v54 = vmul.f32 %v7948_v20, %v1570_v35  ;;  %v6440_v9 = vsel %vm2673_vm7, %v6292_v7, %v2668_v51  ;;  %v6445_v4 = vsel %vm2673_vm7, %v2668_v51, %v6292_v7 }
 0x49c   : > { %v2427_v31 = vmul.f32 %v8066_v12, %v2391_v8  ;;  %v2428_v16 = vmul.f32 %v8066_v12, %v2392_v17  ;;  %8067 = vst [vmem:[#allocation58_spill] sm:$0xff] %v6440_v9  ;;  %v1696_v20 = vmul.f32 %v7971_v5, %v1680_v63  ;;  %v1697_v27 = vmul.f32 %v7972_v33, %v1674_v2  ;;  %v8070_v12 = vld [vmem:[#allocation12_spill] sm:$0xff]  ;;  %v8075_v2 = vld [vmem:[#allocation185_spill] sm:$0xff]  ;;  %v8076_v8 = vld [vmem:[#allocation198_spill] sm:$0xff] }
 0x49d   : > { %8068 = vst [vmem:[#allocation64_spill] sm:$0xff] %v6445_v4  ;;  %v1734_v42 = vmul.f32 %v8069_v49, %v1698_v24  ;;  %v1735_v3 = vmul.f32 %v8069_v49, %v1699_v55  ;;  %2561 = vrot.lane.b32.xlu1 %v8070_v12, %s3440_s15  ;;  %v6453_v35 = vperm.slane %v3218_v26, 0  ;;  %v6455_v56 = vperm.slane %v3218_v26, 1  ;;  %v8074_v33 = vld [vmem:[#allocation168_spill] sm:$0xff]  ;;  %v6471_v46 = vpop.permute.xlu1 %2345  ;;  %v8077_v17 = vld [vmem:[#allocation195_spill] sm:$0xff]  ;;  %v8081_v9 = vld [vmem:[#allocation209_spill] sm:$0xff] }
 0x49e   : > { %2563 = vrot.lane.b32.xlu2 %v3713_v47, %s3440_s15  ;;  %v6460_v51 = vadd.f32 %v2427_v31, %v6235_v19  ;;  %v6463_v5 = vadd.f32 %v2428_v16, %v6237_v18  ;;  %v1628_v7 = vmul.f32 %v8074_v33, %v1592_v43  ;;  %v1629_v24 = vmul.f32 %v8074_v33, %v1593_v54  ;;  %v8078_v54 = vld [vmem:[#allocation191_spill] sm:$0xff]  ;;  %v8079_v31 = vld [vmem:[#allocation186_spill] sm:$0xff] }
 0x49f   : > { %8071 = vst [vmem:[#allocation60_spill] sm:$0xff] %v6453_v35  ;;  %v2385_v55 = vmul.f32 %v8063_v21, %v6338_v34  ;;  %v2386_v26 = vmul.f32 %v8064_v15, %v6343_v0  ;;  %v1732_v63 = vmul.f32 %v8075_v2, %v1696_v20  ;;  %v1733_v19 = vmul.f32 %v8075_v2, %v1697_v27 }
 0x4a0   : > { %8072 = vst [vmem:[#allocation66_spill] sm:$0xff] %v6455_v56  ;;  %v1846_v18 = vsel %vm1841_vm13, %v8077_v17, %v8076_v8  ;;  %v1852_v43 = vsel %vm1841_vm13, %v8076_v8, %v8077_v17  ;;  %v2403_v34 = vpop.permute.xlu2 %2402  ;;  %v1950_v0 = vsel %vm1945_vm14, %v8079_v31, %v8078_v54  ;;  %v1956_v16 = vsel %vm1945_vm14, %v8078_v54, %v8079_v31  ;;  %v8080_v17 = vld [vmem:[#allocation208_spill] sm:$0xff]  ;;  %v8088_v31 = vld [vmem:[#allocation41_spill] sm:$0xff] }
 0x4a1   : > { %8073 = vst [vmem:[#allocation65_spill] sm:$0xff] %v6463_v5  ;;  %v2421_v20 = vmul.f32 %v2403_v34, %v2385_v55  ;;  %v2422_v27 = vmul.f32 %v2403_v34, %v2386_v26  ;;  %v1746_v49 = vadd.f32 %v1734_v42, %v1642_v53  ;;  %v1747_v33 = vadd.f32 %v1735_v3, %v1643_v36  ;;  %v2707_v55 = vpop.permute.xlu0 %2706  ;;  %v8082_v26 = vld [vmem:[#allocation31_spill] sm:$0xff]  ;;  %v8083_v53 = vld [vmem:[#allocation240_spill] sm:$0xff]  ;;  %v8084_v3 = vld [vmem:[#allocation193_spill] sm:$0xff] }
 0x4a2   : > { %v2693_v2 = vmul.f32 %v6453_v35, %v6371_v22  ;;  %v2694_v8 = vmul.f32 %v6455_v56, %v6376_v40  ;;  %3026 = vperm.xlu0 %3365, %v6276_v62   ;;  %v1869_v4 = vmul.f32 %v8080_v17, %v1846_v18  ;;  %v1870_v47 = vmul.f32 %v8081_v9, %v1852_v43  ;;  %v8085_v18 = vld [vmem:[#allocation15_spill] sm:$0xff]  ;;  %v8092_v56 = vld [vmem:[#allocation16_spill] sm:$0xff] }
 0x4a3   : > { %v2433_v5 = vadd.f32 %v2421_v20, %v6285_v44  ;;  %v2434_v54 = vadd.f32 %v2422_v27, %v6287_v39  ;;  %v2054_v36 = vsel %vm2049_vm15, %v8083_v53, %v8082_v26  ;;  %v2060_v22 = vsel %vm2049_vm15, %v8082_v26, %v8083_v53  ;;  %v8086_v43 = vld [vmem:[#allocation47_spill] sm:$0xff]  ;;  %v8091_v26 = vld [vmem:[#allocation61_spill] sm:$0xff] }
 0x4a4   : > { %v6508_v40 = vmul.f32 %v2707_v55, %v2693_v2  ;;  %v6510_v42 = vmul.f32 %v2707_v55, %v2694_v8  ;;  %v1801_v44 = vmul.f32 %v8084_v3, %v6386_v50  ;;  %v1802_v39 = vmul.f32 %v8084_v3, %v6390_v61  ;;  %v8090_v8 = vld [vmem:[#allocation201_spill] sm:$0xff] }
 0x4a5   : > { %2567 = vrot.lane.b32.xlu1 %v8085_v18, %s3440_s15  ;;  %v6519_v34 = vadd.f32 %v8086_v43, %v2433_v5  ;;  %v6522_v20 = vadd.f32 %v8088_v31, %v2434_v54  ;;  %v1973_v27 = vmul.f32 %v5012_v23, %v1950_v0  ;;  %v1974_v2 = vmul.f32 %v5014_v37, %v1956_v16  ;;  %v2352_v43 = vpop.permute.xlu1 %2351  ;;  %v8093_v54 = vld [vmem:[#allocation36_spill] sm:$0xff]  ;;  %v8096_v31 = vld [vmem:[#allocation197_spill] sm:$0xff] }
 0x4a6   : > { %v1905_v55 = vmul.f32 %v8090_v8, %v1869_v4  ;;  %v1906_v50 = vmul.f32 %v8090_v8, %v1870_v47  ;;  %2602 = vperm.xlu2 %3353, %v8091_v26   ;;  %v1813_v61 = vadd.f32 %v1801_v44, %v1746_v49  ;;  %v1814_v53 = vadd.f32 %v1802_v39, %v1747_v33 }
 0x4a7   : > { %8087 = vst [vmem:[#allocation70_spill] sm:$0xff] %v6519_v34  ;;  %v2077_v3 = vmul.f32 %v5017_v48, %v2054_v36  ;;  %v2078_v5 = vmul.f32 %v5019_v57, %v2060_v22  ;;  %v2158_v0 = vsel %vm2153_vm12, %v8093_v54, %v8092_v56  ;;  %v2164_v4 = vsel %vm2153_vm12, %v8092_v56, %v8093_v54  ;;  %v8094_v22 = vld [vmem:[#allocation235_spill] sm:$0xff]  ;;  %v8095_v56 = vld [vmem:[#allocation18_spill] sm:$0xff] }
 0x4a8   : > { %8089 = vst [vmem:[#allocation67_spill] sm:$0xff] %v6522_v20  ;;  %v2411_v47 = vpop.permute.xlu2 %2410  ;;  %v6542_v16 = vsel %vm2361_vm11, %v6396_v14, %v2352_v43  ;;  %v6547_v49 = vsel %vm2361_vm11, %v2352_v43, %v6396_v14  ;;  %v1640_v33 = vadd.f32 %v1628_v7, %v6408_v1  ;;  %v1641_v36 = vadd.f32 %v1629_v24, %v6410_v6  ;;  %v8097_v54 = vld [vmem:[#allocation19_spill] sm:$0xff]  ;;  %v8098_v14 = vld [vmem:[#allocation21_spill] sm:$0xff] }
 0x4a9   : > { %v2009_v44 = vmul.f32 %v8094_v22, %v1973_v27  ;;  %v2010_v39 = vmul.f32 %v8094_v22, %v1974_v2  ;;  %v1799_v8 = vmul.f32 %v8096_v31, %v8095_v56  ;;  %v1800_v35 = vmul.f32 %v8096_v31, %v8097_v54  ;;  %v6563_v24 = vpop.permute.xlu0 %2726  ;;  %v8099_v22 = vld [vmem:[#allocation203_spill] sm:$0xff]  ;;  %v8100_v56 = vld [vmem:[#allocation200_spill] sm:$0xff] }
 0x4aa   : > { %v1917_v20 = vadd.f32 %v1905_v55, %v1813_v61  ;;  %v1918_v34 = vadd.f32 %v1906_v50, %v1814_v53  ;;  %2975 = vrot.lane.b32.xlu0 %v8065_v11, %s3447_s10  ;;  %v2113_v43 = vmul.f32 %v8098_v14, %v2077_v3  ;;  %v2114_v1 = vmul.f32 %v8098_v14, %v2078_v5  ;;  %v8101_v3 = vld [vmem:[#allocation17_spill] sm:$0xff] }
 0x4ab   : > { %v2181_v6 = vmul.f32 %v7842_v41, %v2158_v0  ;;  %v2182_v7 = vmul.f32 %v7843_v29, %v2164_v4  ;;  %v1744_v27 = vadd.f32 %v1732_v63, %v1640_v33  ;;  %v1745_v2 = vadd.f32 %v1733_v19, %v1641_v36  ;;  %v8102_v4 = vld [vmem:[#allocation199_spill] sm:$0xff]  ;;  %v8103_v33 = vld [vmem:[#allocation196_spill] sm:$0xff] }
 0x4ac   : > { %v1845_v55 = vsel %vm1841_vm13, %v8100_v56, %v8099_v22  ;;  %v1851_v50 = vsel %vm1841_vm13, %v8099_v22, %v8100_v56  ;;  %v2021_v61 = vadd.f32 %v2009_v44, %v1917_v20  ;;  %v2022_v53 = vadd.f32 %v2010_v39, %v1918_v34  ;;  %v8104_v34 = vld [vmem:[#allocation207_spill] sm:$0xff]  ;;  %v8105_v20 = vld [vmem:[#allocation204_spill] sm:$0xff] }
 0x4ad   : > { %v2217_v5 = vmul.f32 %v8101_v3, %v2181_v6  ;;  %v2218_v0 = vmul.f32 %v8101_v3, %v2182_v7  ;;  %2610 = vperm.xlu1 %3355, %v6276_v62   ;;  %v1811_v63 = vadd.f32 %v1799_v8, %v1744_v27  ;;  %v1812_v19 = vadd.f32 %v1800_v35, %v1745_v2  ;;  %v2358_v54 = vpop.permute.xlu1 %2357 }
 0x4ae   : > { %v2053_v36 = vsel %vm2049_vm15, %v8103_v33, %v8102_v4  ;;  %v2059_v31 = vsel %vm2049_vm15, %v8102_v4, %v8103_v33  ;;  %2614 = vperm.xlu2 %3353, %v6189_v52   ;;  %v1949_v44 = vsel %vm1945_vm14, %v8105_v20, %v8104_v34  ;;  %v1955_v35 = vsel %vm1945_vm14, %v8104_v34, %v8105_v20  ;;  %v8107_v34 = vld [vmem:[#allocation220_spill] sm:$0xff] }
 0x4af   : > { %v2125_v39 = vadd.f32 %v2113_v43, %v2021_v61  ;;  %v2126_v8 = vadd.f32 %v2114_v1, %v2022_v53  ;;  %v1867_v14 = vmul.f32 %v8080_v17, %v1845_v55  ;;  %v1868_v6 = vmul.f32 %v8081_v9, %v1851_v50  ;;  %v8106_v61 = vld [vmem:[#allocation205_spill] sm:$0xff] }
 0x4b0   : > { %v6595_v7 = vpop.permute.xlu2 %2443  ;;  %v2366_v27 = vsel %vm2361_vm11, %v6471_v46, %v2358_v54  ;;  %v2372_v2 = vsel %vm2361_vm11, %v2358_v54, %v6471_v46  ;;  %v1971_v55 = vmul.f32 %v5012_v23, %v1949_v44  ;;  %v1972_v50 = vmul.f32 %v5014_v37, %v1955_v35  ;;  %v8108_v44 = vld [vmem:[#allocation34_spill] sm:$0xff]  ;;  %v8109_v37 = vld [vmem:[#allocation4_spill] sm:$0xff]  ;;  %v8110_v35 = vld [vmem:[#allocation29_spill] sm:$0xff] }
 0x4b1   : > { %v2229_v22 = vadd.f32 %v2217_v5, %v2125_v39  ;;  %v2230_v56 = vadd.f32 %v2218_v0, %v2126_v8  ;;  %v2389_v43 = vmul.f32 %v8063_v21, %v2366_v27  ;;  %v2390_v1 = vmul.f32 %v8064_v15, %v2372_v2  ;;  %v6612_v0 = vpop.permute.xlu0 %2757 }
 0x4b2   : > { %v1903_v17 = vmul.f32 %v8106_v61, %v1867_v14  ;;  %v1904_v9 = vmul.f32 %v8106_v61, %v1868_v6  ;;  %3018 = vperm.xlu0 %3365, %v8091_v26   ;;  %v2075_v4 = vmul.f32 %v5017_v48, %v2053_v36  ;;  %v2076_v33 = vmul.f32 %v5019_v57, %v2059_v31  ;;  %v8113_v61 = vld [vmem:[#allocation20_spill] sm:$0xff] }
 0x4b3   : > { %v2333_v53 = vadd.f32 %v6330_v60, %v2229_v22  ;;  %v2334_v46 = vadd.f32 %v6332_v59, %v2230_v56  ;;  %v2425_v3 = vmul.f32 %v2411_v47, %v2389_v43  ;;  %v2426_v5 = vmul.f32 %v2411_v47, %v2390_v1  ;;  %v8111_v43 = vld [vmem:[#allocation48_spill] sm:$0xff] }
 0x4b4   : > { %v2007_v20 = vmul.f32 %v8107_v34, %v1971_v55  ;;  %v2008_v23 = vmul.f32 %v8107_v34, %v1972_v50  ;;  %v2157_v26 = vsel %vm2153_vm12, %v8109_v37, %v8108_v44  ;;  %v2163_v60 = vsel %vm2153_vm12, %v8108_v44, %v8109_v37  ;;  %v8119_v44 = vld [vmem:[#allocation57_spill] sm:$0xff] }
 0x4b5   : > { %2618 = vperm.xlu1 %3355, %v6084_v32   ;;  %v6627_v59 = vadd.f32 %v2425_v3, %v2333_v53  ;;  %v6629_v48 = vadd.f32 %v2426_v5, %v2334_v46  ;;  %v2383_v57 = vmul.f32 %v8063_v21, %v6542_v16  ;;  %v2384_v47 = vmul.f32 %v8064_v15, %v6547_v49  ;;  %v2399_v54 = vpop.permute.xlu1 %2398  ;;  %v8115_v53 = vld [vmem:[#allocation3_spill] sm:$0xff]  ;;  %v8116_v46 = vld [vmem:[#allocation33_spill] sm:$0xff] }
 0x4b6   : > { %2622 = vperm.xlu2 %3353, %v6242_v30   ;;  %v1915_v36 = vadd.f32 %v1903_v17, %v1811_v63  ;;  %v1916_v31 = vadd.f32 %v1904_v9, %v1812_v19  ;;  %v2111_v39 = vmul.f32 %v8110_v35, %v2075_v4  ;;  %v2112_v8 = vmul.f32 %v8110_v35, %v2076_v33  ;;  %v8112_v63 = vld [vmem:[#allocation37_spill] sm:$0xff] }
 0x4b7   : > { %v2179_v14 = vmul.f32 %v7842_v41, %v2157_v26  ;;  %v2180_v6 = vmul.f32 %v7843_v29, %v2163_v60  ;;  %v2419_v2 = vmul.f32 %v2399_v54, %v2383_v57  ;;  %v2420_v22 = vmul.f32 %v2399_v54, %v2384_v47  ;;  %v8114_v41 = vld [vmem:[#allocation24_spill] sm:$0xff] }
 0x4b8   : > { %v2450_v27 = vpop.permute.xlu2 %2449  ;;  %v2019_v16 = vadd.f32 %v2007_v20, %v1915_v36  ;;  %v2020_v56 = vadd.f32 %v2008_v23, %v1916_v31  ;;  %v2387_v29 = vmul.f32 %v8063_v21, %v8114_v41  ;;  %v2388_v3 = vmul.f32 %v8064_v15, %v8116_v46  ;;  %v8118_v20 = vld [vmem:[#allocation53_spill] sm:$0xff] }
 0x4b9   : > { %v2215_v49 = vmul.f32 %v8111_v43, %v2179_v14  ;;  %v2216_v1 = vmul.f32 %v8111_v43, %v2180_v6  ;;  %v2431_v19 = vadd.f32 %v2419_v2, %v8112_v63  ;;  %v2432_v17 = vadd.f32 %v2420_v22, %v8113_v61  ;;  %v6644_v9 = vpop.permute.xlu0 %2763  ;;  %v8120_v14 = vld [vmem:[#allocation50_spill] sm:$0xff] }
 0x4ba   : > { %v2123_v55 = vadd.f32 %v2111_v39, %v2019_v16  ;;  %v2124_v50 = vadd.f32 %v2112_v8, %v2020_v56  ;;  %v8117_v33 = vmov 21   ;;  %v8121_v2 = vld [vmem:[#allocation54_spill] sm:$0xff]  ;;  %vm2777_vm11 = vcmp.lt.s32.totalorder %v3785_v28, 96 }
 0x4bb   : > { %vm2881_vm12 = vcmp.lt.s32.totalorder %v3785_v28, 95  ;;  %vm2985_vm13 = vcmp.lt.s32.totalorder %v3785_v28, 94  ;;  %vm3093_vm14 = vcmask 392192   ;;  %vm3126_vm15 = vcmask 1043456  }
 0x4bc   : > { %v2227_v5 = vadd.f32 %v2215_v49, %v2123_v55  ;;  %v2228_v4 = vadd.f32 %v2216_v1, %v2124_v50 }
 0x4bd   : > { %2651 = vrot.lane.b32.xlu1 %v8115_v53, %s3442_s17  ;;  %v2407_v34 = vpop.permute.xlu1 %2406 }
 0x4be   : > { %2653 = vrot.lane.b32.xlu2 %v8037_v13, %s3442_s17  ;;  %3357 = vset.pattern.permute.xlu1 %v8117_v33  ;;  %v2331_v23 = vadd.f32 %v8118_v20, %v2227_v5  ;;  %v2332_v21 = vadd.f32 %v8119_v44, %v2228_v4  ;;  %v2423_v26 = vmul.f32 %v2407_v34, %v2387_v29 }
 0x4bf   : > { %3358 = vset.pattern.permute.xlu2 %v8117_v33  ;;  %v2424_v60 = vmul.f32 %v2407_v34, %v2388_v3  ;;  %v8122_v33 = vld [vmem:[#allocation63_spill] sm:$0xff] }
 0x4c0   : > { %v2456_v37 = vpop.permute.xlu2 %2455  ;;  %v6664_v47 = vadd.f32 %v2423_v26, %v2331_v23 }
 0x4c1   : > { %v2467_v15 = vsel %vm2465_vm0, %v6595_v7, %v2456_v37  ;;  %v2473_v57 = vsel %vm2465_vm0, %v2456_v37, %v6595_v7  ;;  %v6666_v36 = vadd.f32 %v2424_v60, %v2332_v21  ;;  %v6668_v31 = vpop.permute.xlu0 %2865 }
 0x4c2   : > { %v2487_v6 = vmul.f32 %v8120_v14, %v2467_v15  ;;  %v2488_v22 = vmul.f32 %v8121_v2, %v2473_v57  ;;  %v8123_v15 = vld [vmem:[#allocation49_spill] sm:$0xff] }
 0x4c5   : > { %2657 = vrot.lane.b32.xlu1 %v8052_v10, %s3442_s17  ;;  %v2442_v35 = vpop.permute.xlu1 %2441 }
 0x4c6   : > { %2659 = vrot.lane.b32.xlu2 %v8051_v25, %s3442_s17 }
 0x4c8   : > { %v2462_v39 = vpop.permute.xlu2 %2461 }
 0x4c9   : > { %v2470_v8 = vsel %vm2465_vm0, %v2450_v27, %v2462_v39  ;;  %v2476_v7 = vsel %vm2465_vm0, %v2462_v39, %v2450_v27 }
 0x4ca   : > { %v6678_v54 = vpop.permute.xlu0 %2879  ;;  %v2494_v41 = vmul.f32 %v8121_v2, %v2476_v7 }
 0x4cd   : > { %2663 = vrot.lane.b32.xlu1 %v8065_v11, %s3442_s17  ;;  %v2448_v16 = vpop.permute.xlu1 %2447 }
 0x4ce   : > { %2665 = vrot.lane.b32.xlu2 %v8070_v12, %s3442_s17 }
 0x4d0   : > { %v2503_v56 = vpop.permute.xlu2 %2502 }
 0x4d1   : > { %v2523_v43 = vmul.f32 %v2503_v56, %v2487_v6  ;;  %v2524_v49 = vmul.f32 %v2503_v56, %v2488_v22  ;;  %v3449_v22 = vmov 22  }
 0x4d2   : > { %v2770_v63 = vpop.permute.xlu0 %2769 }
 0x4d3   : > { %v2535_v1 = vadd.f32 %v2523_v43, %v2431_v19  ;;  %v2536_v27 = vadd.f32 %v2524_v49, %v2432_v17  ;;  %v6690_v61 = vsel %vm2777_vm11, %v6612_v0, %v2770_v63  ;;  %v6695_v55 = vsel %vm2777_vm11, %v2770_v63, %v6612_v0 }
 0x4d4   : > { %v2493_v17 = vmul.f32 %v8120_v14, %v2470_v8  ;;  %v8125_v8 = vld [vmem:[#allocation5_spill] sm:$0xff] }
 0x4d5   : > { %2669 = vrot.lane.b32.xlu1 %v7858_v45, %s3442_s17  ;;  %v6700_v50 = vadd.f32 %v6180_v38, %v2535_v1  ;;  %v6703_v19 = vadd.f32 %v6182_v58, %v2536_v27  ;;  %v2454_v29 = vpop.permute.xlu1 %2453 }
 0x4d6   : > { %2671 = vrot.lane.b32.xlu2 %v8085_v18, %s3442_s17  ;;  %v2466_v0 = vsel %vm2465_vm0, %v2442_v35, %v2454_v29  ;;  %v2472_v3 = vsel %vm2465_vm0, %v2454_v29, %v2442_v35  ;;  %v8124_v35 = vld [vmem:[#allocation51_spill] sm:$0xff] }
 0x4d7   : > { %v2486_v21 = vmul.f32 %v8121_v2, %v2472_v3  ;;  %v8127_v29 = vld [vmem:[#allocation39_spill] sm:$0xff] }
 0x4d8   : > { %v2515_v46 = vpop.permute.xlu2 %2514 }
 0x4d9   : > { %v2529_v38 = vmul.f32 %v2515_v46, %v2493_v17  ;;  %v2530_v5 = vmul.f32 %v2515_v46, %v2494_v41  ;;  %v8126_v41 = vld [vmem:[#allocation7_spill] sm:$0xff]  ;;  %v2495_v46 = vmul.f32 %v8120_v14, %v8127_v29  ;;  %v8132_v29 = vld [vmem:[#allocation13_spill] sm:$0xff] }
 0x4db   : > { %v6714_v58 = vadd.f32 %v2529_v38, %v6627_v59  ;;  %v6717_v4 = vadd.f32 %v2530_v5, %v6629_v48  ;;  %v2485_v59 = vmul.f32 %v8120_v14, %v2466_v0  ;;  %v8128_v0 = vld [vmem:[#allocation40_spill] sm:$0xff] }
 0x4dc   : > { %v2496_v3 = vmul.f32 %v8121_v2, %v8128_v0 }
 0x4dd   : > { %2710 = vperm.xlu1 %3357, %v8122_v33   ;;  %v2460_v34 = vpop.permute.xlu1 %2459 }
 0x4de   : > { %2714 = vperm.xlu2 %3358, %v6276_v62   ;;  %v2469_v23 = vsel %vm2465_vm0, %v2448_v16, %v2460_v34  ;;  %v2475_v44 = vsel %vm2465_vm0, %v2460_v34, %v2448_v16 }
 0x4df   : > { %v2491_v7 = vmul.f32 %v8120_v14, %v2469_v23  ;;  %v2492_v6 = vmul.f32 %v8121_v2, %v2475_v44  ;;  %v8129_v23 = vld [vmem:[#allocation65_spill] sm:$0xff]  ;;  %v8130_v2 = vld [vmem:[#allocation59_spill] sm:$0xff] }
 0x4e0   : > { %v2546_v20 = vpop.permute.xlu2 %2545 }
 0x4e5   : > { %2718 = vperm.xlu1 %3357, %v6189_v52  }
 0x4e6   : > { %2722 = vperm.xlu2 %3358, %v6084_v32  }
 0x4e7   : > { %v2499_v48 = vpop.permute.xlu1 %2498 }
 0x4e8   : > { %v2552_v37 = vpop.permute.xlu2 %2551  ;;  %v2521_v26 = vmul.f32 %v2499_v48, %v2485_v59  ;;  %v2522_v60 = vmul.f32 %v2499_v48, %v2486_v21  ;;  %v8131_v59 = vld [vmem:[#allocation56_spill] sm:$0xff] }
 0x4ea   : > { %v2533_v57 = vadd.f32 %v2521_v26, %v8123_v15  ;;  %v2534_v39 = vadd.f32 %v2522_v60, %v8124_v35 }
 0x4ed   : > { %2753 = vrot.lane.b32.xlu1 %v8125_v8, %s3444_s18 }
 0x4ee   : > { %2755 = vrot.lane.b32.xlu2 %v8115_v53, %s3444_s18  ;;  %3359 = vset.pattern.permute.xlu1 %v3449_v22 }
 0x4ef   : > { %v2511_v16 = vpop.permute.xlu1 %2510  ;;  %3360 = vset.pattern.permute.xlu2 %v3449_v22 }
 0x4f0   : > { %v2558_v56 = vpop.permute.xlu2 %2557  ;;  %v2527_v43 = vmul.f32 %v2511_v16, %v2491_v7  ;;  %v2528_v49 = vmul.f32 %v2511_v16, %v2492_v6 }
 0x4f1   : > { %v2570_v1 = vsel %vm2569_vm5, %v2546_v20, %v2558_v56  ;;  %v2576_v27 = vsel %vm2569_vm5, %v2558_v56, %v2546_v20 }
 0x4f2   : > { %v2539_v63 = vadd.f32 %v2527_v43, %v6664_v47  ;;  %v2540_v17 = vadd.f32 %v2528_v49, %v6666_v36  ;;  %v2589_v44 = vmul.f32 %v8130_v2, %v2570_v1  ;;  %v2590_v21 = vmul.f32 %v8131_v59, %v2576_v27 }
 0x4f5   : > { %2759 = vrot.lane.b32.xlu1 %v8126_v41, %s3444_s18 }
 0x4f6   : > { %2761 = vrot.lane.b32.xlu2 %v8052_v10, %s3444_s18 }
 0x4f7   : > { %v2519_v38 = vpop.permute.xlu1 %2518 }
 0x4f8   : > { %v2564_v5 = vpop.permute.xlu2 %2563  ;;  %v2531_v33 = vmul.f32 %v2519_v38, %v2495_v46  ;;  %v2532_v34 = vmul.f32 %v2519_v38, %v2496_v3 }
 0x4f9   : > { %v2573_v47 = vsel %vm2569_vm5, %v2552_v37, %v2564_v5  ;;  %v2579_v36 = vsel %vm2569_vm5, %v2564_v5, %v2552_v37 }
 0x4fa   : > { %v2543_v20 = vadd.f32 %v2531_v33, %v6460_v51  ;;  %v2544_v14 = vadd.f32 %v2532_v34, %v8129_v23  ;;  %v2595_v6 = vmul.f32 %v8130_v2, %v2573_v47  ;;  %v2596_v16 = vmul.f32 %v8131_v59, %v2579_v36 }
 0x4fd   : > { %2773 = vrot.lane.b32.xlu1 %v7858_v45, %s3444_s18 }
 0x4fe   : > { %2775 = vrot.lane.b32.xlu2 %v8085_v18, %s3444_s18 }
 0x4ff   : > { %v2550_v48 = vpop.permute.xlu1 %2549 }
 0x500   : > { %v2603_v26 = vpop.permute.xlu2 %2602 }
 0x501   : > { %v2625_v60 = vmul.f32 %v2603_v26, %v2589_v44  ;;  %v2626_v15 = vmul.f32 %v2603_v26, %v2590_v21  ;;  %v8134_v26 = vld [vmem:[#allocation70_spill] sm:$0xff] }
 0x503   : > { %v2637_v35 = vadd.f32 %v2625_v60, %v2533_v57  ;;  %v2638_v37 = vadd.f32 %v2626_v15, %v2534_v39  ;;  %v8135_v15 = vld [vmem:[#allocation67_spill] sm:$0xff] }
 0x505   : > { %2867 = vrot.lane.b32.xlu1 %v8051_v25, %s3445_s9  ;;  %v6768_v51 = vadd.f32 %v6508_v40, %v2637_v35  ;;  %v6771_v7 = vadd.f32 %v6510_v42, %v2638_v37 }
 0x506   : > { %2877 = vrot.lane.b32.xlu2 %v7858_v45, %s3445_s9 }
 0x507   : > { %v2556_v56 = vpop.permute.xlu1 %2555 }
 0x508   : > { %v2615_v43 = vpop.permute.xlu2 %2614 }
 0x509   : > { %v2631_v57 = vmul.f32 %v2615_v43, %v2595_v6  ;;  %v2632_v39 = vmul.f32 %v2615_v43, %v2596_v16 }
 0x50b   : > { %v6777_v49 = vadd.f32 %v2631_v57, %v2539_v63  ;;  %v6779_v25 = vadd.f32 %v2632_v39, %v2540_v17  ;;  %v8133_v63 = vmov 23  }
 0x50d   : > { %2826 = vperm.xlu1 %3359, %v6084_v32  }
 0x50e   : > { %2830 = vperm.xlu2 %3360, %v6242_v30  }
 0x50f   : > { %v2562_v40 = vpop.permute.xlu1 %2561 }
 0x510   : > { %v2623_v42 = vpop.permute.xlu2 %2622  ;;  %v2572_v1 = vsel %vm2569_vm5, %v2550_v48, %v2562_v40  ;;  %v2578_v27 = vsel %vm2569_vm5, %v2562_v40, %v2550_v48 }
 0x511   : > { %v2594_v36 = vmul.f32 %v8131_v59, %v2578_v27  ;;  %v8138_v27 = vld [vmem:[#allocation60_spill] sm:$0xff] }
 0x515   : > { %2771 = vrot.lane.b32.xlu1 %v8132_v29, %s3444_s18 }
 0x516   : > { %2969 = vrot.lane.b32.xlu2 %v8052_v10, %s3447_s10  ;;  %3362 = vset.pattern.permute.xlu1 %v8133_v63  ;;  %v2593_v10 = vmul.f32 %v8130_v2, %v2572_v1 }
 0x517   : > { %v2568_v17 = vpop.permute.xlu1 %2567 }
 0x518   : > { %v2654_v32 = vpop.permute.xlu2 %2653  ;;  %v2575_v46 = vsel %vm2569_vm5, %v2556_v56, %v2568_v17  ;;  %v2581_v0 = vsel %vm2569_vm5, %v2568_v17, %v2556_v56  ;;  %v8139_v17 = vld [vmem:[#allocation66_spill] sm:$0xff] }
 0x519   : > { %v2599_v3 = vmul.f32 %v8130_v2, %v2575_v46  ;;  %v2600_v38 = vmul.f32 %v8131_v59, %v2581_v0 }
 0x51b   : > { %v2635_v5 = vmul.f32 %v2623_v42, %v2599_v3  ;;  %v2636_v33 = vmul.f32 %v2623_v42, %v2600_v38 }
 0x51d   : > { %v2647_v34 = vadd.f32 %v2635_v5, %v2543_v20  ;;  %v2648_v47 = vadd.f32 %v2636_v33, %v2544_v14  ;;  %2981 = vrot.lane.b32.xlu1 %v7858_v45, %s3447_s10  ;;  %v8136_v20 = vld [vmem:[#allocation55_spill] sm:$0xff]  ;;  %v8137_v14 = vld [vmem:[#allocation62_spill] sm:$0xff] }
 0x51e   : > { %2983 = vrot.lane.b32.xlu2 %v8085_v18, %s3447_s10  ;;  %v2597_v45 = vmul.f32 %v8130_v2, %v8136_v20  ;;  %v2598_v37 = vmul.f32 %v8131_v59, %v8137_v14 }
 0x51f   : > { %v2611_v23 = vpop.permute.xlu1 %2610 }
 0x520   : > { %v2660_v44 = vpop.permute.xlu2 %2659  ;;  %v2629_v21 = vmul.f32 %v2611_v23, %v2593_v10  ;;  %v2630_v48 = vmul.f32 %v2611_v23, %v2594_v36 }
 0x522   : > { %v2641_v60 = vadd.f32 %v2629_v21, %v8134_v26  ;;  %v2642_v35 = vadd.f32 %v2630_v48, %v8135_v15 }
 0x525   : > { %2934 = vperm.xlu1 %3362, %v6242_v30  }
 0x526   : > { %2861 = vrot.lane.b32.xlu2 %v8037_v13, %s3445_s9 }
 0x527   : > { %v2619_v18 = vpop.permute.xlu1 %2618 }
 0x528   : > { %v2666_v6 = vpop.permute.xlu2 %2665  ;;  %v2633_v16 = vmul.f32 %v2619_v18, %v2597_v45  ;;  %v2634_v56 = vmul.f32 %v2619_v18, %v2598_v37 }
 0x529   : > { %v2676_v43 = vsel %vm2673_vm7, %v2654_v32, %v2666_v6  ;;  %v2682_v57 = vsel %vm2673_vm7, %v2666_v6, %v2654_v32 }
 0x52a   : > { %v2645_v39 = vadd.f32 %v2633_v16, %v6714_v58  ;;  %v2646_v2 = vadd.f32 %v2634_v56, %v6717_v4  ;;  %v2697_v3 = vmul.f32 %v8138_v27, %v2676_v43  ;;  %v2698_v38 = vmul.f32 %v8139_v17, %v2682_v57 }
 0x52d   : > { %2863 = vrot.lane.b32.xlu1 %v8126_v41, %s3445_s9 }
 0x52e   : > { %2873 = vrot.lane.b32.xlu2 %v8070_v12, %s3445_s9  ;;  %3363 = vset.pattern.permute.xlu1 %v3449_v22 }
 0x52f   : > { %v2652_v59 = vpop.permute.xlu1 %2651 }
 0x530   : > { %v2672_v40 = vpop.permute.xlu2 %2671 }
 0x531   : > { %v2679_v42 = vsel %vm2673_vm7, %v2660_v44, %v2672_v40  ;;  %v2685_v1 = vsel %vm2673_vm7, %v2672_v40, %v2660_v44  ;;  %v8143_v40 = vld [vmem:[#allocation64_spill] sm:$0xff] }
 0x532   : > { %v2703_v58 = vmul.f32 %v8138_v27, %v2679_v42  ;;  %v2704_v4 = vmul.f32 %v8139_v17, %v2685_v1 }
 0x534   : > { %v2739_v32 = vmul.f32 %v6563_v24, %v2703_v58  ;;  %v2740_v41 = vmul.f32 %v6563_v24, %v2704_v4  ;;  %v8140_v24 = vmov 24  }
 0x535   : > { %2818 = vperm.xlu1 %3363, %v6276_v62   ;;  %v8141_v62 = vld [vmem:[#allocation10_spill] sm:$0xff] }
 0x536   : > { %2822 = vperm.xlu2 %3360, %v6189_v52   ;;  %v6834_v46 = vadd.f32 %v2739_v32, %v2647_v34  ;;  %v6836_v0 = vadd.f32 %v2740_v41, %v2648_v47  ;;  %v3391_v41 = vld [vmem:[%s7164_s3] sm:$0xff] }
 0x537   : > { %v2658_v5 = vpop.permute.xlu1 %2657 }
 0x538   : > { %v2715_v33 = vpop.permute.xlu2 %2714 }
 0x539   : > { %v2733_v10 = vmul.f32 %v2715_v33, %v2697_v3  ;;  %v2734_v36 = vmul.f32 %v2715_v33, %v2698_v38 }
 0x53b   : > { %v6840_v23 = vadd.f32 %v2733_v10, %v2641_v60  ;;  %v6842_v44 = vadd.f32 %v2734_v36, %v2642_v35 }
 0x53d   : > { %3364 = vset.pattern.permute.xlu1 %v8140_v24 }
 0x53e   : > { %2765 = vrot.lane.b32.xlu2 %v8141_v62, %s3444_s18  ;;  %3038 = vperm.xlu1 %3364, %v6242_v30  }
 0x53f   : > { %v2664_v34 = vpop.permute.xlu1 %2663 }
 0x540   : > { %v2723_v47 = vpop.permute.xlu2 %2722  ;;  %v2675_v21 = vsel %vm2673_vm7, %v2652_v59, %v2664_v34  ;;  %v2681_v48 = vsel %vm2673_vm7, %v2664_v34, %v2652_v59 }
 0x541   : > { %v2695_v37 = vmul.f32 %v8138_v27, %v2675_v21  ;;  %v2696_v18 = vmul.f32 %v8139_v17, %v2681_v48 }
 0x546   : > { %2965 = vrot.lane.b32.xlu2 %v8037_v13, %s3447_s10  ;;  %2767 = vrot.lane.b32.xlu1 %v8065_v11, %s3444_s18 }
 0x547   : > { %v2670_v26 = vpop.permute.xlu1 %2669  ;;  %3366 = vset.pattern.permute.xlu1 %v8133_v63 }
 0x548   : > { %v6857_v60 = vpop.permute.xlu2 %2755  ;;  %v2678_v30 = vsel %vm2673_vm7, %v2658_v5, %v2670_v26  ;;  %v2684_v15 = vsel %vm2673_vm7, %v2670_v26, %v2658_v5 }
 0x549   : > { %v2701_v35 = vmul.f32 %v8138_v27, %v2678_v30  ;;  %v2702_v20 = vmul.f32 %v8139_v17, %v2684_v15 }
 0x54b   : > { %v2737_v45 = vmul.f32 %v2723_v47, %v2701_v35  ;;  %v2738_v13 = vmul.f32 %v2723_v47, %v2702_v20  ;;  %v3392_v47 = vld [vmem:[%s7164_s3 + $0x18] sm:$0xff] }
 0x54d   : > { %v6865_v14 = vadd.f32 %v2737_v45, %v2645_v39  ;;  %v6867_v11 = vadd.f32 %v2738_v13, %v2646_v2  ;;  %v8142_v2 = vld [vmem:[#allocation58_spill] sm:$0xff] }
 0x54e   : > { %2979 = vrot.lane.b32.xlu2 %v8132_v29, %s3447_s10  ;;  %2977 = vrot.lane.b32.xlu1 %v8070_v12, %s3447_s10  ;;  %v2699_v59 = vmul.f32 %v8138_v27, %v8142_v2  ;;  %v2700_v29 = vmul.f32 %v8139_v17, %v8143_v40 }
 0x54f   : > { %v2711_v6 = vpop.permute.xlu1 %2710 }
 0x550   : > { %v6875_v16 = vpop.permute.xlu2 %2761  ;;  %v2731_v56 = vmul.f32 %v2711_v6, %v2695_v37  ;;  %v2732_v43 = vmul.f32 %v2711_v6, %v2696_v18 }
 0x552   : > { %v6878_v57 = vadd.f32 %v2731_v56, %v6700_v50  ;;  %v6881_v39 = vadd.f32 %v2732_v43, %v6703_v19 }
 0x556   : > { %2857 = vrot.lane.b32.xlu2 %v8125_v8, %s3445_s9  ;;  %2926 = vperm.xlu1 %3366, %v6189_v52   ;;  %v3219_v52 = vld [vmem:[%s7166_s5 + $0x26] ss:$8 sm:$0x3] }
 0x557   : > { %v2719_v12 = vpop.permute.xlu1 %2718  ;;  %v6910_v4 = vperm.slane %v3219_v52, 0  ;;  %v6912_v32 = vperm.slane %v3219_v52, 1 }
 0x558   : > { %v2776_v42 = vpop.permute.xlu2 %2775  ;;  %v2735_v1 = vmul.f32 %v2719_v12, %v2699_v59  ;;  %v2736_v58 = vmul.f32 %v2719_v12, %v2700_v29  ;;  %v3220_v29 = vld [vmem:[%s7166_s5 + $0x27] ss:$8 sm:$0x3] }
 0x55a   : > { %v2747_v50 = vadd.f32 %v2735_v1, %v6777_v49  ;;  %v2748_v19 = vadd.f32 %v2736_v58, %v6779_v25  ;;  %v2783_v49 = vsel %vm2777_vm11, %v6644_v9, %v2776_v42  ;;  %v2789_v25 = vsel %vm2777_vm11, %v2776_v42, %v6644_v9 }
 0x55b   : > { %v2807_v3 = vmul.f32 %v6910_v4, %v2783_v49  ;;  %v2808_v38 = vmul.f32 %v6912_v32, %v2789_v25  ;;  %v6977_v58 = vperm.slane %v3220_v29, 0 }
 0x55e   : > { %2869 = vrot.lane.b32.xlu2 %v8141_v62, %s3445_s9  ;;  %2859 = vrot.lane.b32.xlu1 %v8115_v53, %s3445_s9 }
 0x55f   : > { %v6896_v27 = vpop.permute.xlu1 %2753  ;;  %3367 = vset.pattern.permute.xlu1 %v3449_v22  ;;  %v3390_v22 = vld [vmem:[%s7164_s3 + $0x8] sm:$0xff] }
 0x560   : > { %v6899_v17 = vpop.permute.xlu2 %2877 }
 0x561   : > { %v2886_v49 = vsel %vm2881_vm12, %v6668_v31, %v6899_v17 }
 0x566   : > { %2814 = vperm.xlu2 %3360, %v3390_v22   ;;  %2810 = vperm.xlu1 %3367, %v3391_v41  }
 0x567   : > { %v2760_v5 = vpop.permute.xlu1 %2759 }
 0x568   : > { %v2831_v9 = vpop.permute.xlu2 %2830 }
 0x569   : > { %v2843_v33 = vmul.f32 %v2831_v9, %v2807_v3  ;;  %v2844_v10 = vmul.f32 %v2831_v9, %v2808_v38  ;;  %v2802_v3 = vmul.f32 %v6912_v32, %v6695_v55 }
 0x56b   : > { %v6923_v36 = vadd.f32 %v2843_v33, %v6834_v46  ;;  %v6926_v34 = vadd.f32 %v2844_v10, %v6836_v0  ;;  %v2909_v10 = vmul.f32 %v6977_v58, %v2886_v49 }
 0x56e   : > { %2961 = vrot.lane.b32.xlu2 %v8125_v8, %s3447_s10  ;;  %3368 = vset.pattern.permute.xlu1 %v8140_v24  ;;  %v6942_v8 = vpop.permute.xlu0 %2971 }
 0x56f   : > { %3030 = vperm.xlu1 %3368, %v3392_v47   ;;  %v2774_v21 = vpop.permute.xlu1 %2773  ;;  %3370 = vset.pattern.permute.xlu2 %v8133_v63 }
 0x570   : > { %v2970_v48 = vpop.permute.xlu2 %2969  ;;  %v2782_v42 = vsel %vm2777_vm11, %v6875_v16, %v2774_v21  ;;  %v2788_v1 = vsel %vm2777_vm11, %v2774_v21, %v6875_v16  ;;  %v2892_v16 = vsel %vm2881_vm12, %v6899_v17, %v6668_v31 }
 0x571   : > { %v2805_v25 = vmul.f32 %v6910_v4, %v2782_v42 }
 0x576   : > { %2973 = vrot.lane.b32.xlu2 %v8141_v62, %s3447_s10  ;;  %v2931_v15 = vpop.permute.xlu0 %2930 }
 0x577   : > { %2963 = vrot.lane.b32.xlu1 %v8115_v53, %s3447_s10  ;;  %v2868_v46 = vpop.permute.xlu1 %2867 }
 0x578   : > { %v6939_v0 = vpop.permute.xlu2 %2983  ;;  %3369 = vset.pattern.permute.xlu1 %v8133_v63  ;;  %v2893_v55 = vsel %vm2881_vm12, %v6678_v54, %v2868_v46 }
 0x57e   : > { %2918 = vperm.xlu2 %3370, %v3390_v22   ;;  %v6953_v63 = vpop.permute.xlu0 %2875 }
 0x57f   : > { %2914 = vperm.xlu1 %3369, %v3391_v41   ;;  %v2827_v26 = vpop.permute.xlu1 %2826  ;;  %v2801_v41 = vmul.f32 %v6910_v4, %v6690_v61  ;;  %v2887_v61 = vsel %vm2881_vm12, %v2868_v46, %v6678_v54 }
 0x580   : > { %v6944_v30 = vpop.permute.xlu2 %2861  ;;  %v2841_v31 = vmul.f32 %v2827_v26, %v2805_v25  ;;  %v2911_v46 = vmul.f32 %v6977_v58, %v2887_v61 }
 0x586   : > { %v6961_v2 = vpop.permute.xlu0 %2967 }
 0x587   : > { %3371 = vset.pattern.permute.xlu1 %v8140_v24  ;;  %v2772_v35 = vpop.permute.xlu1 %2771 }
 0x588   : > { %v6947_v62 = vpop.permute.xlu2 %2873  ;;  %v2781_v53 = vsel %vm2777_vm11, %v2760_v5, %v2772_v35  ;;  %v2787_v20 = vsel %vm2777_vm11, %v2772_v35, %v2760_v5  ;;  %3022 = vperm.xlu1 %3371, %v3390_v22   ;;  %v2806_v22 = vmul.f32 %v6912_v32, %v2788_v1 }
 0x589   : > { %v2803_v45 = vmul.f32 %v6910_v4, %v2781_v53  ;;  %v2804_v13 = vmul.f32 %v6912_v32, %v2787_v20 }
 0x58a   : > { %v2842_v17 = vmul.f32 %v2827_v26, %v2806_v22  ;;  %v2853_v26 = vadd.f32 %v2841_v31, %v6865_v14  ;;  %v2991_v14 = vsel %vm2985_vm13, %v6942_v8, %v6939_v0 }
 0x58e   : > { %v6968_v12 = vpop.permute.xlu0 %2922 }
 0x58f   : > { %v2982_v37 = vpop.permute.xlu1 %2981 }
 0x590   : > { %v2823_v18 = vpop.permute.xlu2 %2822  ;;  %v2990_v38 = vsel %vm2985_vm13, %v2970_v48, %v2982_v37  ;;  %v2996_v5 = vsel %vm2985_vm13, %v2982_v37, %v2970_v48 }
 0x591   : > { %v2839_v6 = vmul.f32 %v2823_v18, %v2803_v45  ;;  %v2840_v24 = vmul.f32 %v2823_v18, %v2804_v13  ;;  %v2854_v45 = vadd.f32 %v2842_v17, %v6867_v11 }
 0x593   : > { %v6957_v56 = vadd.f32 %v2839_v6, %v2747_v50  ;;  %v6959_v43 = vadd.f32 %v2840_v24, %v2748_v19  ;;  %v6979_v50 = vperm.slane %v3220_v29, 1  ;;  %v3221_v19 = vld [vmem:[%s7166_s5 + $0x30] ss:$8 sm:$0x3]  ;;  %v2945_v6 = vmul.f32 %v2931_v15, %v2909_v10 }
 0x594   : > { %v7005_v9 = vperm.slane %v3221_v19, 0  ;;  %v7007_v33 = vperm.slane %v3221_v19, 1 }
 0x595   : > { %v2910_v47 = vmul.f32 %v6979_v50, %v2892_v16  ;;  %v2912_v24 = vmul.f32 %v6979_v50, %v2893_v55 }
 0x596   : > { %v3013_v48 = vmul.f32 %v7005_v9, %v2990_v38  ;;  %v3014_v35 = vmul.f32 %v7007_v33, %v2996_v5  ;;  %v3035_v18 = vpop.permute.xlu0 %3034  ;;  %v3015_v49 = vmul.f32 %v7005_v9, %v2991_v14 }
 0x597   : > { %v2935_v59 = vpop.permute.xlu1 %2934  ;;  %v2946_v54 = vmul.f32 %v2931_v15, %v2910_v47  ;;  %v2957_v15 = vadd.f32 %v2945_v6, %v2853_v26 }
 0x598   : > { %v6985_v52 = vpop.permute.xlu2 %2765  ;;  %v3049_v11 = vmul.f32 %v3035_v18, %v3013_v48  ;;  %v2947_v29 = vmul.f32 %v2935_v59, %v2911_v46  ;;  %v2948_v42 = vmul.f32 %v2935_v59, %v2912_v24 }
 0x599   : > { %v2958_v19 = vadd.f32 %v2946_v54, %v2854_v45 }
 0x59a   : > { %v3061_v22 = vadd.f32 %v3049_v11, %v2957_v15  ;;  %v2960_v38 = vadd.f32 %v2948_v42, %v6926_v34 }
 0x59c   : > { %v3073_v17 = vmax.f32 %v3061_v22, 0.0 }
 0x59f   : > { %v6963_v40 = vpop.permute.xlu1 %2863 }
 0x5a0   : > { %v2966_v1 = vpop.permute.xlu2 %2965  ;;  %v2891_v34 = vsel %vm2881_vm12, %v6953_v63, %v6963_v40 }
 0x5a1   : > { %v2908_v26 = vmul.f32 %v6979_v50, %v2891_v34 }
 0x5a7   : > { %v2819_v21 = vpop.permute.xlu1 %2818 }
 0x5a8   : > { %v2837_v53 = vmul.f32 %v2819_v21, %v2801_v41  ;;  %v2838_v20 = vmul.f32 %v2819_v21, %v2802_v3  ;;  %v2959_v3 = vadd.f32 %v2947_v29, %v6923_v36  ;;  %v2980_v61 = vpop.permute.xlu2 %2979  ;;  %v2885_v36 = vsel %vm2881_vm12, %v6963_v40, %v6953_v63 }
 0x5a9   : > { %v2778_v63 = vsel %vm2777_vm11, %v6896_v27, %v6985_v52  ;;  %v2784_v40 = vsel %vm2777_vm11, %v6985_v52, %v6896_v27 }
 0x5aa   : > { %v7022_v13 = vadd.f32 %v2837_v53, %v6840_v23  ;;  %v7025_v37 = vadd.f32 %v2838_v20, %v6842_v44  ;;  %v2997_v23 = vsel %vm2985_vm13, %v6939_v0, %v6942_v8  ;;  %v3050_v44 = vmul.f32 %v3035_v18, %v3014_v35 }
 0x5ab   : > { %v3016_v16 = vmul.f32 %v7007_v33, %v2997_v23  ;;  %v2907_v20 = vmul.f32 %v6977_v58, %v2885_v36  ;;  %v2872_v23 = vpop.permute.xlu0 %2871  ;;  %v2797_v29 = vmul.f32 %v6910_v4, %v2778_v63  ;;  %v2798_v42 = vmul.f32 %v6912_v32, %v2784_v40 }
 0x5ac   : > { %v3062_v41 = vadd.f32 %v3050_v44, %v2958_v19  ;;  %v2890_v44 = vsel %vm2881_vm12, %v6947_v62, %v6944_v30 }
 0x5ae   : > { %v3074_v10 = vmax.f32 %v3062_v41, 0.0 }
 0x5b0   : > { %v3039_v25 = vpop.permute.xlu1 %3038  ;;  %v7043_v53 = vpop.permute.xlu2 %2857 }
 0x5b1   : > { %v3051_v5 = vmul.f32 %v3039_v25, %v3015_v49  ;;  %v3052_v0 = vmul.f32 %v3039_v25, %v3016_v16  ;;  %v2906_v25 = vmul.f32 %v6979_v50, %v2890_v44 }
 0x5b3   : > { %v3063_v8 = vadd.f32 %v3051_v5, %v2959_v3  ;;  %v3064_v31 = vadd.f32 %v3052_v0, %v2960_v38  ;;  %v3027_v41 = vpop.permute.xlu0 %3026  ;;  %v2989_v3 = vsel %vm2985_vm13, %v6961_v2, %v2980_v61  ;;  %v2995_v38 = vsel %vm2985_vm13, %v2980_v61, %v6961_v2 }
 0x5b4   : > { %v2942_v0 = vmul.f32 %v6968_v12, %v2906_v25 }
 0x5b5   : > { %v3075_v59 = vmax.f32 %v3063_v8, 0.0  ;;  %v3076_v47 = vmax.f32 %v3064_v31, 0.0  ;;  %v3011_v31 = vmul.f32 %v7005_v9, %v2989_v3 }
 0x5b7   : > { %v3082_v55 = vpack.c.bf16 %v3075_v59, %v3073_v17  ;;  %v3083_v21 = vpack.c.bf16 %v3076_v47, %v3074_v10  ;;  %v3012_v17 = vmul.f32 %v7007_v33, %v2995_v38  ;;  %v2954_v59 = vadd.f32 %v2942_v0, %v7025_v37 }
 0x5b8   : > { %v7041_v48 = vpop.permute.xlu1 %2767  ;;  %v2870_v54 = vpop.permute.xlu2 %2869 }
 0x5b9   : > { %3102 = vmatpush.bf16.msra.mxu0 %v3082_v55  ;;  %3115 = vmatpush.bf16.msra.mxu1 %v3083_v21 }
 0x5bb   : > { %v2976_v37 = vpop.permute.xlu0 %2975 }
 0x5c0   : > { %v2978_v35 = vpop.permute.xlu1 %2977  ;;  %v7067_v11 = vpop.permute.xlu2 %2814 }
 0x5c1   : > { %v2994_v27 = vsel %vm2985_vm13, %v2978_v35, %v2966_v1 }
 0x5c2   : > { %v3010_v22 = vmul.f32 %v7007_v33, %v2994_v27 }
 0x5c4   : > { %v3046_v8 = vmul.f32 %v3027_v41, %v3010_v22  ;;  %v3019_v22 = vpop.permute.xlu0 %3018 }
 0x5c6   : > { %v3058_v2 = vadd.f32 %v3046_v8, %v2954_v59 }
 0x5c8   : > { %v2927_v45 = vpop.permute.xlu1 %2926  ;;  %v3070_v34 = vmax.f32 %v3058_v2, 0.0 }
 0x5c9   : > { %v2943_v18 = vmul.f32 %v2927_v45, %v2907_v20  ;;  %v2944_v6 = vmul.f32 %v2927_v45, %v2908_v26  ;;  %v3085_v26 = vstv %s3084_s22 }
 0x5cb   : > { %v2955_v46 = vadd.f32 %v2943_v18, %v6957_v56  ;;  %v2956_v24 = vadd.f32 %v2944_v6, %v6959_v43  ;;  %v2884_v56 = vsel %vm2881_vm12, %v6944_v30, %v6947_v62  ;;  %v2988_v43 = vsel %vm2985_vm13, %v2966_v1, %v2978_v35 }
 0x5cc   : > { %v2905_v15 = vmul.f32 %v6977_v58, %v2884_v56  ;;  %v3009_v19 = vmul.f32 %v7005_v9, %v2988_v43  ;;  %v2779_v56 = vsel %vm2777_vm11, %v6857_v60, %v7041_v48  ;;  %v2785_v43 = vsel %vm2777_vm11, %v7041_v48, %v6857_v60 }
 0x5cd   : > { %v2799_v27 = vmul.f32 %v6910_v4, %v2779_v56 }
 0x5ce   : > { %v2941_v1 = vmul.f32 %v6968_v12, %v2905_v15  ;;  %v3045_v5 = vmul.f32 %v3027_v41, %v3009_v19 }
 0x5d0   : > { %v7057_v14 = vpop.permute.xlu1 %2859 }
 0x5d8   : > { %v2811_v52 = vpop.permute.xlu1 %2810 }
 0x5d9   : > { %v2833_v49 = vmul.f32 %v2811_v52, %v2797_v29  ;;  %v2834_v16 = vmul.f32 %v2811_v52, %v2798_v42  ;;  %v2883_v42 = vsel %vm2881_vm12, %v7057_v14, %v2872_v23  ;;  %v2800_v52 = vmul.f32 %v6912_v32, %v2785_v43 }
 0x5db   : > { %v7088_v30 = vadd.f32 %v2833_v49, %v6768_v51  ;;  %v7091_v62 = vadd.f32 %v2834_v16, %v6771_v7  ;;  %v2953_v51 = vadd.f32 %v2941_v1, %v7022_v13  ;;  %v2962_v7 = vpop.permute.xlu2 %2961  ;;  %v257_v13 = vld [vmem:[%s3581_s0] sm:$0xff]  ;;  %v2835_v16 = vmul.f32 %v7067_v11, %v2799_v27 }
 0x5dc   : > { %v3086_v45 = vmul.f32 %v3085_v26, %v257_v13  ;;  %v2836_v25 = vmul.f32 %v7067_v11, %v2800_v52 }
 0x5dd   : > { %v3057_v47 = vadd.f32 %v3045_v5, %v2953_v51 }
 0x5de   : > { %3088 = vst [vmem:[#allocation1] ss:$2 sm:$0xff] %v3086_v45 }
 0x5df   : > { %v3069_v12 = vmax.f32 %v3057_v47, 0.0 }
 0x5e1   : > { %v3031_v10 = vpop.permute.xlu1 %3030 }
 0x5e2   : > { %v3047_v55 = vmul.f32 %v3031_v10, %v3011_v31  ;;  %v3048_v21 = vmul.f32 %v3031_v10, %v3012_v17 }
 0x5e3   : > { %v2974_v63 = vpop.permute.xlu2 %2973 }
 0x5e4   : > { %v3059_v61 = vadd.f32 %v3047_v55, %v2955_v46  ;;  %v3060_v35 = vadd.f32 %v3048_v21, %v2956_v24  ;;  %v2882_v46 = vsel %vm2881_vm12, %v7043_v53, %v2870_v54  ;;  %v2888_v24 = vsel %vm2881_vm12, %v2870_v54, %v7043_v53 }
 0x5e5   : > { %v2901_v44 = vmul.f32 %v6977_v58, %v2882_v46  ;;  %v2902_v29 = vmul.f32 %v6979_v50, %v2888_v24  ;;  %v2889_v53 = vsel %vm2881_vm12, %v2872_v23, %v7057_v14  ;;  %v2986_v60 = vsel %vm2985_vm13, %v2962_v7, %v2974_v63 }
 0x5e6   : > { %v3071_v36 = vmax.f32 %v3059_v61, 0.0  ;;  %v3072_v20 = vmax.f32 %v3060_v35, 0.0  ;;  %v2992_v48 = vsel %vm2985_vm13, %v2974_v63, %v2962_v7  ;;  %v2903_v14 = vmul.f32 %v6977_v58, %v2883_v42 }
 0x5e7   : > { %v2904_v23 = vmul.f32 %v6979_v50, %v2889_v53  ;;  %v3005_v4 = vmul.f32 %v7005_v9, %v2986_v60  ;;  %v3006_v32 = vmul.f32 %v7007_v33, %v2992_v48  ;;  %v2847_v58 = vadd.f32 %v2835_v16, %v6878_v57 }
 0x5e8   : > { %v3080_v18 = vpack.c.bf16 %v3071_v36, %v3069_v12  ;;  %v3081_v6 = vpack.c.bf16 %v3072_v20, %v3070_v34  ;;  %v2848_v50 = vadd.f32 %v2836_v25, %v6881_v39  ;;  %v3089_v12 = vld.sshfl [vmem:[#allocation1] sm:$0xff pattern:$0x75316420] }
 0x5e9   : > { %v2964_v40 = vpop.permute.xlu1 %2963  ;;  %v3041_v0 = vmul.f32 %v3019_v22, %v3005_v4  ;;  %v3042_v8 = vmul.f32 %v3019_v22, %v3006_v32 }
 0x5ea   : > { %3103 = vmatpush.bf16.msra.mxu0 %v3080_v18  ;;  %3116 = vmatpush.bf16.msra.mxu1 %v3081_v6  ;;  %v2987_v3 = vsel %vm2985_vm13, %v2964_v40, %v2976_v37  ;;  %v2993_v38 = vsel %vm2985_vm13, %v2976_v37, %v2964_v40 }
 0x5eb   : > { %v2919_v15 = vpop.permute.xlu2 %2918  ;;  %v3007_v51 = vmul.f32 %v7005_v9, %v2987_v3  ;;  %v3008_v7 = vmul.f32 %v7007_v33, %v2993_v38  ;;  %v3077_v9 = vld [vmem:[%s7165_s4] sm:$0x3]  ;;  %v3090_v33 = vld.sshfl [vmem:[#allocation1 + $0x8] sm:$0xff pattern:$0x75316420] }
 0x5ec   : > { %v2939_v41 = vmul.f32 %v2919_v15, %v2903_v14  ;;  %v2940_v1 = vmul.f32 %v2919_v15, %v2904_v23 }
 0x5ee   : > { %v2951_v31 = vadd.f32 %v2939_v41, %v2847_v58  ;;  %v2952_v17 = vadd.f32 %v2940_v1, %v2848_v50 }
 0x5f1   : > { %v2915_v54 = vpop.permute.xlu1 %2914 }
 0x5f2   : > { %v2937_v19 = vmul.f32 %v2915_v54, %v2901_v44  ;;  %v2938_v49 = vmul.f32 %v2915_v54, %v2902_v29 }
 0x5f4   : > { %v2949_v5 = vadd.f32 %v2937_v19, %v7088_v30  ;;  %v2950_v11 = vadd.f32 %v2938_v49, %v7091_v62 }
 0x5f6   : > { %v3053_v47 = vadd.f32 %v3041_v0, %v2949_v5  ;;  %v3054_v55 = vadd.f32 %v3042_v8, %v2950_v11 }
 0x5f8   : > { %v3065_v57 = vmax.f32 %v3053_v47, 0.0  ;;  %v3066_v61 = vmax.f32 %v3054_v55, 0.0 }
 0x5fa   : > { %v3023_v59 = vpop.permute.xlu1 %3022 }
 0x5fb   : > { %v3043_v10 = vmul.f32 %v3023_v59, %v3007_v51  ;;  %v3044_v28 = vmul.f32 %v3023_v59, %v3008_v7 }
 0x5fd   : > { %v3055_v30 = vadd.f32 %v3043_v10, %v2951_v31  ;;  %v3056_v21 = vadd.f32 %v3044_v28, %v2952_v17 }
 0x5ff   : > { %v3067_v62 = vmax.f32 %v3055_v30, 0.0  ;;  %v3068_v2 = vmax.f32 %v3056_v21, 0.0 }
 0x601   : > { %v3078_v39 = vpack.c.bf16 %v3067_v62, %v3065_v57  ;;  %v3079_v35 = vpack.c.bf16 %v3068_v2, %v3066_v61 }
 0x603   : > { %3104 = vmatpush.bf16.msra.mxu0 %v3078_v39  ;;  %3117 = vmatpush.bf16.msra.mxu1 %v3079_v35 }
 0x606   : > { %3222 = vmatmul.msk.bf16.vlgmr.msra.gmra.mxu0 %vm3093_vm14, %v3077_v9  ;;  %3223 = vmatmul.msk.bf16.vlgmr.msra.gmra.mxu1 %vm3093_vm14, %v3077_v9 }
 0x683   : > { %v3106_v36 = vpop.f32.mrf.mxu0  ;;  %v3119_v34 = vpop.f32.mrf.mxu1 }
 0x684   : > { %v3120_v20 = vadd.f32 %v3119_v34, %v3090_v33  ;;  %v3107_v13 = vadd.f32 %v3106_v36, %v3089_v12 }
 0x686   : > { %v3125_v26 = vrot.slane %v3120_v20, 4 }
 0x688   : > { %v3127_v45 = vsel %vm3126_vm15, %v3107_v13, %v3125_v26 }
 0x689   : > { %3129 = vst [vmem:[%s254_s27] sm:$0xff] %v3127_v45 }
 0x68b   : > { %v3108_v18 = vpop.f32.mrf.mxu0  ;;  %v3121_v6 = vpop.f32.mrf.mxu1 }
 0x68c PF: > { %s17_s23 = sadd.s32 1, %s3399_s23  }
 0x68d   : > { %p14_p4 = scmp.ge.s32.totalorder %s17_s23, 4  }
 0x68f   :  { %16 = sbr.rel (!%p14_p4) target bundleno = 2 (0x2), region = 101 }

</bundles_post_ra>
